<compile_context>
chip_gen: v7x
topology: tpu7x:2x2x1
jax: 0.10.0
libtpu: 0.0.40
codegen_flags: <defaults>
</compile_context>

<pallas_src>
import functools

import jax
import jax.numpy as jnp
from jax.experimental import pallas as pl
from jax.experimental.pallas import tpu as pltpu

# bf16 weights / matmul inputs are the fast single-pass MXU path on v5e/v6e/v7x;
# set to jnp.float32 for bit-closer-to-torch numerics.
MATMUL_DTYPE = jnp.bfloat16

VMEM = pl.BlockSpec(memory_space=pltpu.MemorySpace.VMEM)
LN_EPS = 1e-5
NUM_REWARD_BINS = 41
UNIMIX = 0.01


# ------------------------------ layout helpers ------------------------------ #

def _round_up(x, m=128):
    return ((x + m - 1) // m) * m


def _qkv_offsets(hidden):
    seg = _round_up(hidden)
    return 0, seg, 2 * seg, 3 * seg            # q, k, v column offsets, total


def _head_cat_offsets(hidden, half, ck):
    o_dec = 0
    o_rw = _round_up(hidden)
    o_ct = o_rw + _round_up(half)
    o_dyn = o_ct + _round_up(half)
    total = o_dyn + _round_up(ck)
    return o_dec, o_rw, o_ct, o_dyn, total


def _out_offsets(state_dim, hidden, ck):
    o_ns = 0
    o_rw = state_dim
    o_ct = o_rw + NUM_REWARD_BINS
    o_kl = o_ct + 1
    o_h = o_kl + 1
    o_z = o_h + hidden
    total = o_z + ck
    return o_ns, o_rw, o_ct, o_kl, o_h, o_z, total, _round_up(total)


# ------------------------------ kernel helpers ------------------------------ #

def _mm(x, w):
    """MXU matmul: lhs cast to the (bf16) weight dtype, f32 accumulation."""
    return jnp.dot(x.astype(w.dtype), w, preferred_element_type=jnp.float32)


def _ln(x, g, b, eps=LN_EPS):
    mean = jnp.mean(x, axis=-1, keepdims=True)
    xc = x - mean
    var = jnp.mean(xc * xc, axis=-1, keepdims=True)
    return xc * jax.lax.rsqrt(var + eps) * g + b


def _relu(x):
    return jnp.maximum(x, 0.0)


# ------------------------------- fused kernel ------------------------------- #

def _storm_kernel(
    # activations / constants
    states_ref, actions_ref, gumbel_ref, pos_ref, seg_ref, sel_ref,
    # state encoder
    se0_w, se0_b, se_rb1_w, se_rb1_b, se_rb2_w, se_rb2_b, se_out_w, se_out_b,
    # action mixer
    am0_w, am0_b, am_ln1_g, am_ln1_b, am1_w, am1_b, am_ln2_g, am_ln2_b,
    # transformer (per-layer weights stacked on a leading L axis, VMEM resident)
    t_wqkv, t_bqkv, t_wo, t_bo, t_g1, t_be1, t_w1, t_b1, t_w2, t_b2, t_g2, t_be2,
    # heads
    head_cat_w, head_cat_b, dec_rb1_w, dec_rb1_b, dec_rb2_w, dec_rb2_b,
    dec_out_w, dec_out_b, rw1_w, rw1_b, ct1_w, ct1_b,
    # packed output slab
    out_ref,
    *, batch, seq, hidden, num_heads, num_layers, num_categories, num_classes,
    state_dim):
    ck = num_categories * num_classes
    half = hidden // 2
    head_dim = hidden // num_heads
    scale = 1.0 / float(head_dim) ** 0.5

    # ---------------- state encoder: Linear+ReLU, ResidualBlock, Linear ------
    x = states_ref[...]                                           # (M, state_dim)
    h = _relu(_mm(x, se0_w[...]) + se0_b[...])
    r = _relu(_mm(h, se_rb1_w[...]) + se_rb1_b[...])
    h = _relu(_mm(r, se_rb2_w[...]) + se_rb2_b[...] + h)          # residual + ReLU
    logits = _mm(h, se_out_w[...]) + se_out_b[...]                # (M, CK)
    # unimix exactly as the torch module: 0.99*logits + 0.01/num_classes
    state_logits = (1.0 - UNIMIX) * logits + UNIMIX / num_classes

    # ---------------- Gumbel-max categorical sample -> straight one-hot ------
    y = state_logits + gumbel_ref[...]
    oh = []
    for c in range(num_categories):
        yc = y[:, c * num_classes:(c + 1) * num_classes]
        oh.append((yc == jnp.max(yc, axis=-1, keepdims=True)).astype(jnp.float32))
    z_t = jnp.concatenate(oh, axis=-1)                            # (M, CK)

    # ---------------- action mixer + positional encoding ---------------------
    combined = jnp.concatenate([z_t, actions_ref[...]], axis=-1)  # (M, CK + A)
    e = _relu(_mm(combined, am0_w[...]) + am0_b[...])
    e = _ln(e, am_ln1_g[...], am_ln1_b[...])
    e = _mm(e, am1_w[...]) + am1_b[...]
    e = _ln(e, am_ln2_g[...], am_ln2_b[...])
    e = e + pos_ref[...]                                          # pre-tiled (M, H)

    # ---------------- transformer encoder (post-LN, ReLU FF) -----------------
    o_q, o_k, o_v, _ = _qkv_offsets(hidden)
    xt = e
    for layer in range(num_layers):                               # static loop, L=2
        qkv = _mm(xt, t_wqkv[layer]) + t_bqkv[layer]              # (M, 3*pad128(H))
        q = qkv[:, o_q:o_q + hidden]                              # 128-aligned slices
        k = qkv[:, o_k:o_k + hidden]
        v = qkv[:, o_v:o_v + hidden]
        heads = []
        for hh in range(num_heads):
            cs = slice(hh * head_dim, (hh + 1) * head_dim)
            qh = q[:, cs].reshape(batch, seq, head_dim).astype(MATMUL_DTYPE)
            kh = k[:, cs].reshape(batch, seq, head_dim).astype(MATMUL_DTYPE)
            vh = v[:, cs].reshape(batch, seq, head_dim).astype(MATMUL_DTYPE)
            s = jnp.einsum('bqd,bkd->bqk', qh, kh,
                           preferred_element_type=jnp.float32) * scale
            s = s - jnp.max(s, axis=-1, keepdims=True)
            p = jnp.exp(s)
            p = p * pl.reciprocal(jnp.sum(p, axis=-1, keepdims=True), approx=True)
            av = jnp.einsum('bqk,bkd->bqd', p.astype(MATMUL_DTYPE), vh,
                            preferred_element_type=jnp.float32)
            heads.append(av.reshape(batch * seq, head_dim))
        attn = jnp.concatenate(heads, axis=-1)                    # (M, H)
        attn = _mm(attn, t_wo[layer]) + t_bo[layer]
        xt = _ln(xt + attn, t_g1[layer], t_be1[layer])            # post-LN
        ff = _relu(_mm(xt, t_w1[layer]) + t_b1[layer])
        ff = _mm(ff, t_w2[layer]) + t_b2[layer]
        xt = _ln(xt + ff, t_g2[layer], t_be2[layer])

    # ---------------- last-timestep rows via constant selection matmul -------
    sel = sel_ref[...]                                            # (B, M) 0/1
    h_last = jnp.dot(sel, xt, preferred_element_type=jnp.float32)          # (B, H)
    lsl = jnp.dot(sel, state_logits, preferred_element_type=jnp.float32)   # (B, CK)
    z_last = jnp.dot(sel, z_t, preferred_element_type=jnp.float32)         # (B, CK)

    # ---------------- heads (one wide, 128-aligned first matmul) -------------
    o_dec, o_rw, o_ct, o_dyn, _ = _head_cat_offsets(hidden, half, ck)
    cat = _mm(h_last, head_cat_w[...]) + head_cat_b[...]
    d0 = _relu(cat[:, o_dec:o_dec + hidden])
    rw0 = _relu(cat[:, o_rw:o_rw + half])
    ct0 = _relu(cat[:, o_ct:o_ct + half])
    dyn = cat[:, o_dyn:o_dyn + ck]                                # dynamics logits

    r = _relu(_mm(d0, dec_rb1_w[...]) + dec_rb1_b[...])
    d = _relu(_mm(r, dec_rb2_w[...]) + dec_rb2_b[...] + d0)
    next_state = _mm(d, dec_out_w[...]) + dec_out_b[...]          # (B, state_dim)
    reward = _mm(rw0, rw1_w[...]) + rw1_b[...]                    # (B, 41)
    cont = jax.nn.sigmoid(_mm(ct0, ct1_w[...]) + ct1_b[...])      # (B, 1)

    # ---------------- KL( Cat(lsl) || Cat(dyn) ), mean over (B, C) -----------
    # segment log-softmax via one block-diagonal segment-sum matmul (f32).
    seg = seg_ref[...]                                            # (CK, CK)

    def seg_log_softmax(t):
        t = t - jnp.max(t, axis=-1, keepdims=True)                # shift-invariant
        ssum = jnp.dot(jnp.exp(t), seg, preferred_element_type=jnp.float32)
        return t - jnp.log(ssum)

    lp = seg_log_softmax(lsl)
    lq = seg_log_softmax(dyn)
    kl_row = jnp.sum(jnp.exp(lp) * (lp - lq), axis=-1, keepdims=True)   # (B, 1)
    kl = jnp.sum(kl_row, axis=0, keepdims=True) / float(batch * num_categories)
    kl_col = kl + jnp.zeros((batch, 1), jnp.float32)

    # ---------------- lane-dense packed output slab ---------------------------
    _, _, _, _, _, _, total, out_w = _out_offsets(state_dim, hidden, ck)
    pieces = [next_state, reward, cont, kl_col, h_last, z_last]
    if out_w > total:
        pieces.append(jnp.zeros((batch, out_w - total), jnp.float32))
    out_ref[...] = jnp.concatenate(pieces, axis=-1)


# ------------------------------ pallas wrapper ------------------------------- #

PARAM_ORDER = (
    "se0_w", "se0_b", "se_rb1_w", "se_rb1_b", "se_rb2_w", "se_rb2_b",
    "se_out_w", "se_out_b",
    "am0_w", "am0_b", "am_ln1_g", "am_ln1_b", "am1_w", "am1_b",
    "am_ln2_g", "am_ln2_b",
    "t_wqkv", "t_bqkv", "t_wo", "t_bo", "t_g1", "t_be1", "t_w1", "t_b1",
    "t_w2", "t_b2", "t_g2", "t_be2",
    "head_cat_w", "head_cat_b", "dec_rb1_w", "dec_rb1_b", "dec_rb2_w",
    "dec_rb2_b", "dec_out_w", "dec_out_b", "rw1_w", "rw1_b", "ct1_w", "ct1_b",
)


def storm_forward(params, states, actions, sample_key, *, num_categories,
                  num_classes, num_heads):
    B, S, state_dim = states.shape
    hidden = params["am1_w"].shape[1]
    num_layers = params["t_wqkv"].shape[0]
    ck = num_categories * num_classes
    m = B * S

    x = states.reshape(m, state_dim).astype(jnp.float32)
    a = actions.reshape(m, actions.shape[-1]).astype(jnp.float32)
    # Pre-drawn Gumbel noise -> exact categorical sample via in-kernel argmax.
    gumbel = jax.random.gumbel(sample_key, (m, ck), jnp.float32)
    # Positional encoding pre-tiled to (B*S, H); constant selection / segment
    # matrices are constant-folded under jit.
    pos = jnp.tile(params["pos_enc"][0, :S, :], (B, 1))
    idx = jnp.arange(ck)
    seg = (idx[:, None] // num_classes == idx[None, :] // num_classes
           ).astype(jnp.float32)                                   # (CK, CK)
    sel = jnp.zeros((B, m), jnp.float32).at[
        jnp.arange(B), jnp.arange(B) * S + (S - 1)].set(1.0)       # (B, M)

    o_ns, o_rw, o_ct, o_kl, o_h, o_z, _, out_w = _out_offsets(state_dim, hidden, ck)

    kernel = functools.partial(
        _storm_kernel, batch=B, seq=S, hidden=hidden, num_heads=num_heads,
        num_layers=num_layers, num_categories=num_categories,
        num_classes=num_classes, state_dim=state_dim)

    args = (x, a, gumbel, pos, seg, sel) + tuple(params[k] for k in PARAM_ORDER)

    slab = pl.pallas_call(
        kernel,
        out_shape=jax.ShapeDtypeStruct((B, out_w), jnp.float32),
        in_specs=[VMEM] * len(args),
        out_specs=VMEM,
    )(*args)

    next_state = slab[:, o_ns:o_ns + state_dim]
    reward_logits = slab[:, o_rw:o_rw + NUM_REWARD_BINS]
    continuation = slab[:, o_ct:o_ct + 1]
    kl_loss = slab[0, o_kl]
    h_last = slab[:, o_h:o_h + hidden]
    z_last = slab[:, o_z:o_z + ck]
    return next_state, reward_logits, continuation, h_last, kl_loss, z_last


# ------------------------------ parameter setup ------------------------------ #

def _dense(key, din, dout, scale=0.1):
    kw, kb = jax.random.split(key)
    w = jax.random.normal(kw, (din, dout), jnp.float32) * scale
    b = jax.random.normal(kb, (dout,), jnp.float32) * scale
    return w, b


def init_params(key, state_dim, action_dim, hidden_dim, num_categories,
                num_classes, num_layers):
    H = hidden_dim
    half = H // 2
    ck = num_categories * num_classes
    input_dim = ck + action_dim
    wdt = MATMUL_DTYPE

    keys = iter(jax.random.split(key, 64))

    def dense_w(din, dout):
        w, b = _dense(next(keys), din, dout)
        return w.astype(wdt), b.reshape(1, dout)      # bias kept f32, shape (1, n)

    p = {}
    # state_encoder: Linear(state,H) ReLU ResidualBlock(H) Linear(H, C*K)
    p["se0_w"], p["se0_b"] = dense_w(state_dim, H)
    p["se_rb1_w"], p["se_rb1_b"] = dense_w(H, H)
    p["se_rb2_w"], p["se_rb2_b"] = dense_w(H, H)
    p["se_out_w"], p["se_out_b"] = dense_w(H, ck)

    # action_mixer: Linear(input,H) ReLU LN Linear(H,H) LN
    p["am0_w"], p["am0_b"] = dense_w(input_dim, H)
    p["am_ln1_g"] = jnp.ones((1, H), jnp.float32)
    p["am_ln1_b"] = jnp.zeros((1, H), jnp.float32)
    p["am1_w"], p["am1_b"] = dense_w(H, H)
    p["am_ln2_g"] = jnp.ones((1, H), jnp.float32)
    p["am_ln2_b"] = jnp.zeros((1, H), jnp.float32)

    # positional encoding parameter (1, 10, H) as in the torch module
    p["pos_enc"] = jax.random.normal(next(keys), (1, 10, H), jnp.float32)

    # transformer layers: q|k|v segments padded to 128-lane boundaries, weights
    # stacked on a leading L axis (kept fully VMEM resident at this size).
    o_q, o_k, o_v, qkv_w = _qkv_offsets(H)
    wqkv, bqkv, wo, bo = [], [], [], []
    g1, be1, w1, b1, w2, b2, g2, be2 = [], [], [], [], [], [], [], []
    for _ in range(num_layers):
        wq, bq = _dense(next(keys), H, H)
        wk, bk = _dense(next(keys), H, H)
        wv, bv = _dense(next(keys), H, H)
        w_pad = jnp.zeros((H, qkv_w), jnp.float32)
        w_pad = w_pad.at[:, o_q:o_q + H].set(wq)
        w_pad = w_pad.at[:, o_k:o_k + H].set(wk)
        w_pad = w_pad.at[:, o_v:o_v + H].set(wv)
        b_pad = jnp.zeros((1, qkv_w), jnp.float32)
        b_pad = b_pad.at[:, o_q:o_q + H].set(bq[None])
        b_pad = b_pad.at[:, o_k:o_k + H].set(bk[None])
        b_pad = b_pad.at[:, o_v:o_v + H].set(bv[None])
        wqkv.append(w_pad)
        bqkv.append(b_pad)
        w, b = _dense(next(keys), H, H); wo.append(w); bo.append(b.reshape(1, H))
        g1.append(jnp.ones((1, H), jnp.float32))
        be1.append(jnp.zeros((1, H), jnp.float32))
        w, b = _dense(next(keys), H, 2 * H); w1.append(w); b1.append(b.reshape(1, 2 * H))
        w, b = _dense(next(keys), 2 * H, H); w2.append(w); b2.append(b.reshape(1, H))
        g2.append(jnp.ones((1, H), jnp.float32))
        be2.append(jnp.zeros((1, H), jnp.float32))
    p["t_wqkv"] = jnp.stack(wqkv).astype(wdt)
    p["t_bqkv"] = jnp.stack(bqkv)
    p["t_wo"] = jnp.stack(wo).astype(wdt)
    p["t_bo"] = jnp.stack(bo)
    p["t_g1"] = jnp.stack(g1); p["t_be1"] = jnp.stack(be1)
    p["t_w1"] = jnp.stack(w1).astype(wdt); p["t_b1"] = jnp.stack(b1)
    p["t_w2"] = jnp.stack(w2).astype(wdt); p["t_b2"] = jnp.stack(b2)
    p["t_g2"] = jnp.stack(g2); p["t_be2"] = jnp.stack(be2)

    # heads: decoder-in | reward0 | continuation0 | dynamics first-layer weights
    # concatenated with each segment padded to a 128-lane boundary.
    o_dec, o_rw, o_ct, o_dyn, cat_w = _head_cat_offsets(H, half, ck)
    dec0_w, dec0_b = _dense(next(keys), H, H)
    rw0_w, rw0_b = _dense(next(keys), H, half)
    ct0_w, ct0_b = _dense(next(keys), H, half)
    dyn_w, dyn_b = _dense(next(keys), H, ck)
    wcat = jnp.zeros((H, cat_w), jnp.float32)
    wcat = wcat.at[:, o_dec:o_dec + H].set(dec0_w)
    wcat = wcat.at[:, o_rw:o_rw + half].set(rw0_w)
    wcat = wcat.at[:, o_ct:o_ct + half].set(ct0_w)
    wcat = wcat.at[:, o_dyn:o_dyn + ck].set(dyn_w)
    bcat = jnp.zeros((1, cat_w), jnp.float32)
    bcat = bcat.at[:, o_dec:o_dec + H].set(dec0_b[None])
    bcat = bcat.at[:, o_rw:o_rw + half].set(rw0_b[None])
    bcat = bcat.at[:, o_ct:o_ct + half].set(ct0_b[None])
    bcat = bcat.at[:, o_dyn:o_dyn + ck].set(dyn_b[None])
    p["head_cat_w"] = wcat.astype(wdt)
    p["head_cat_b"] = bcat

    p["dec_rb1_w"], p["dec_rb1_b"] = dense_w(H, H)
    p["dec_rb2_w"], p["dec_rb2_b"] = dense_w(H, H)
    p["dec_out_w"], p["dec_out_b"] = dense_w(H, state_dim)
    p["rw1_w"], p["rw1_b"] = dense_w(half, NUM_REWARD_BINS)
    p["ct1_w"], p["ct1_b"] = dense_w(half, 1)
    return p


# ------------------------------------ main ----------------------------------- #

if __name__ == "__main__":
    # small config consistent with the module
    batch, seq = 2, 8
    state_dim, action_dim = 16, 8
    hidden_dim = 32
    num_categories, num_classes = 4, 8
    num_layers, num_heads = 2, 8

    root = jax.random.PRNGKey(0)
    k_param, k_state, k_act, k_sample = jax.random.split(root, 4)

    params = init_params(k_param, state_dim, action_dim, hidden_dim,
                         num_categories, num_classes, num_layers)
    states = jax.random.normal(k_state, (batch, seq, state_dim), jnp.float32)
    actions = jax.random.normal(k_act, (batch, seq, action_dim), jnp.float32)

    fwd = jax.jit(functools.partial(storm_forward,
                                    num_categories=num_categories,
                                    num_classes=num_classes,
                                    num_heads=num_heads))
    outs = jax.block_until_ready(fwd(params, states, actions, k_sample))

    next_state, reward_logits, continuation, h_last, kl_loss, z_last = outs
    assert next_state.shape == (batch, state_dim)
    assert reward_logits.shape == (batch, 41)
    assert continuation.shape == (batch, 1)
    assert h_last.shape == (batch, hidden_dim)
    assert kl_loss.shape == ()
    assert z_last.shape == (batch, num_categories * num_classes)
    assert bool(jnp.all(jnp.isfinite(next_state)))
    assert bool(jnp.isfinite(kl_loss))
    print("KERNEL_OK")
</pallas_src>

<mosaic_0001>
module attributes {stable_mosaic.version = 11 : i64} {
  func.func @_storm_kernel(%arg0: memref<16x16xf32, #tpu.memory_space<vmem>>, %arg1: memref<16x8xf32, #tpu.memory_space<vmem>>, %arg2: memref<16x32xf32, #tpu.memory_space<vmem>>, %arg3: memref<16x32xf32, #tpu.memory_space<vmem>>, %arg4: memref<32x32xf32, #tpu.memory_space<vmem>>, %arg5: memref<2x16xf32, #tpu.memory_space<vmem>>, %arg6: memref<16x32xbf16, #tpu.memory_space<vmem>>, %arg7: memref<1x32xf32, #tpu.memory_space<vmem>>, %arg8: memref<32x32xbf16, #tpu.memory_space<vmem>>, %arg9: memref<1x32xf32, #tpu.memory_space<vmem>>, %arg10: memref<32x32xbf16, #tpu.memory_space<vmem>>, %arg11: memref<1x32xf32, #tpu.memory_space<vmem>>, %arg12: memref<32x32xbf16, #tpu.memory_space<vmem>>, %arg13: memref<1x32xf32, #tpu.memory_space<vmem>>, %arg14: memref<40x32xbf16, #tpu.memory_space<vmem>>, %arg15: memref<1x32xf32, #tpu.memory_space<vmem>>, %arg16: memref<1x32xf32, #tpu.memory_space<vmem>>, %arg17: memref<1x32xf32, #tpu.memory_space<vmem>>, %arg18: memref<32x32xbf16, #tpu.memory_space<vmem>>, %arg19: memref<1x32xf32, #tpu.memory_space<vmem>>, %arg20: memref<1x32xf32, #tpu.memory_space<vmem>>, %arg21: memref<1x32xf32, #tpu.memory_space<vmem>>, %arg22: memref<2x32x384xbf16, #tpu.memory_space<vmem>>, %arg23: memref<2x1x384xf32, #tpu.memory_space<vmem>>, %arg24: memref<2x32x32xbf16, #tpu.memory_space<vmem>>, %arg25: memref<2x1x32xf32, #tpu.memory_space<vmem>>, %arg26: memref<2x1x32xf32, #tpu.memory_space<vmem>>, %arg27: memref<2x1x32xf32, #tpu.memory_space<vmem>>, %arg28: memref<2x32x64xbf16, #tpu.memory_space<vmem>>, %arg29: memref<2x1x64xf32, #tpu.memory_space<vmem>>, %arg30: memref<2x64x32xbf16, #tpu.memory_space<vmem>>, %arg31: memref<2x1x32xf32, #tpu.memory_space<vmem>>, %arg32: memref<2x1x32xf32, #tpu.memory_space<vmem>>, %arg33: memref<2x1x32xf32, #tpu.memory_space<vmem>>, %arg34: memref<32x512xbf16, #tpu.memory_space<vmem>>, %arg35: memref<1x512xf32, #tpu.memory_space<vmem>>, %arg36: memref<32x32xbf16, #tpu.memory_space<vmem>>, %arg37: memref<1x32xf32, #tpu.memory_space<vmem>>, %arg38: memref<32x32xbf16, #tpu.memory_space<vmem>>, %arg39: memref<1x32xf32, #tpu.memory_space<vmem>>, %arg40: memref<32x16xbf16, #tpu.memory_space<vmem>>, %arg41: memref<1x16xf32, #tpu.memory_space<vmem>>, %arg42: memref<16x41xbf16, #tpu.memory_space<vmem>>, %arg43: memref<1x41xf32, #tpu.memory_space<vmem>>, %arg44: memref<16x1xbf16, #tpu.memory_space<vmem>>, %arg45: memref<1x1xf32, #tpu.memory_space<vmem>>, %arg46: memref<2x128xf32, #tpu.memory_space<vmem>>) attributes {dimension_semantics = [], scalar_prefetch = 0 : i64, scratch_operands = 0 : i64, tpu.core_type = #tpu.core_type<tc>} {
    %c0 = arith.constant 0 : index
    %c0_0 = arith.constant 0 : index
    %0 = vector.load %arg0[%c0, %c0_0] : memref<16x16xf32, #tpu.memory_space<vmem>>, vector<16x16xf32>
    %c0_1 = arith.constant 0 : index
    %c0_2 = arith.constant 0 : index
    %1 = vector.load %arg6[%c0_1, %c0_2] : memref<16x32xbf16, #tpu.memory_space<vmem>>, vector<16x32xbf16>
    %2 = arith.truncf %0 : vector<16x16xf32> to vector<16x16xbf16>
    %cst = arith.constant dense<0.000000e+00> : vector<16x32xf32>
    %3 = tpu.matmul %2, %1, %cst {dimension_numbers = #tpu.dot_dimension_numbers<[1], [0], [0], [1], [0, 0, 1, 1], [], []>} : vector<16x16xbf16>, vector<16x32xbf16>, vector<16x32xf32> -> vector<16x32xf32>
    %c0_3 = arith.constant 0 : index
    %c0_4 = arith.constant 0 : index
    %4 = vector.load %arg7[%c0_3, %c0_4] : memref<1x32xf32, #tpu.memory_space<vmem>>, vector<1x32xf32>
    %5 = vector.broadcast %4 : vector<1x32xf32> to vector<16x32xf32>
    %6 = arith.addf %3, %5 : vector<16x32xf32>
    %cst_5 = arith.constant 0.000000e+00 : f32
    %7 = vector.broadcast %cst_5 : f32 to vector<16x32xf32>
    %8 = arith.maximumf %6, %7 : vector<16x32xf32>
    %c0_6 = arith.constant 0 : index
    %c0_7 = arith.constant 0 : index
    %9 = vector.load %arg8[%c0_6, %c0_7] : memref<32x32xbf16, #tpu.memory_space<vmem>>, vector<32x32xbf16>
    %10 = arith.truncf %8 : vector<16x32xf32> to vector<16x32xbf16>
    %cst_8 = arith.constant dense<0.000000e+00> : vector<16x32xf32>
    %11 = tpu.matmul %10, %9, %cst_8 {dimension_numbers = #tpu.dot_dimension_numbers<[1], [0], [0], [1], [0, 0, 1, 1], [], []>} : vector<16x32xbf16>, vector<32x32xbf16>, vector<16x32xf32> -> vector<16x32xf32>
    %c0_9 = arith.constant 0 : index
    %c0_10 = arith.constant 0 : index
    %12 = vector.load %arg9[%c0_9, %c0_10] : memref<1x32xf32, #tpu.memory_space<vmem>>, vector<1x32xf32>
    %13 = vector.broadcast %12 : vector<1x32xf32> to vector<16x32xf32>
    %14 = arith.addf %11, %13 : vector<16x32xf32>
    %cst_11 = arith.constant 0.000000e+00 : f32
    %15 = vector.broadcast %cst_11 : f32 to vector<16x32xf32>
    %16 = arith.maximumf %14, %15 : vector<16x32xf32>
    %c0_12 = arith.constant 0 : index
    %c0_13 = arith.constant 0 : index
    %17 = vector.load %arg10[%c0_12, %c0_13] : memref<32x32xbf16, #tpu.memory_space<vmem>>, vector<32x32xbf16>
    %18 = arith.truncf %16 : vector<16x32xf32> to vector<16x32xbf16>
    %cst_14 = arith.constant dense<0.000000e+00> : vector<16x32xf32>
    %19 = tpu.matmul %18, %17, %cst_14 {dimension_numbers = #tpu.dot_dimension_numbers<[1], [0], [0], [1], [0, 0, 1, 1], [], []>} : vector<16x32xbf16>, vector<32x32xbf16>, vector<16x32xf32> -> vector<16x32xf32>
    %c0_15 = arith.constant 0 : index
    %c0_16 = arith.constant 0 : index
    %20 = vector.load %arg11[%c0_15, %c0_16] : memref<1x32xf32, #tpu.memory_space<vmem>>, vector<1x32xf32>
    %21 = vector.broadcast %20 : vector<1x32xf32> to vector<16x32xf32>
    %22 = arith.addf %19, %21 : vector<16x32xf32>
    %23 = arith.addf %22, %8 : vector<16x32xf32>
    %cst_17 = arith.constant 0.000000e+00 : f32
    %24 = vector.broadcast %cst_17 : f32 to vector<16x32xf32>
    %25 = arith.maximumf %23, %24 : vector<16x32xf32>
    %c0_18 = arith.constant 0 : index
    %c0_19 = arith.constant 0 : index
    %26 = vector.load %arg12[%c0_18, %c0_19] : memref<32x32xbf16, #tpu.memory_space<vmem>>, vector<32x32xbf16>
    %27 = arith.truncf %25 : vector<16x32xf32> to vector<16x32xbf16>
    %cst_20 = arith.constant dense<0.000000e+00> : vector<16x32xf32>
    %28 = tpu.matmul %27, %26, %cst_20 {dimension_numbers = #tpu.dot_dimension_numbers<[1], [0], [0], [1], [0, 0, 1, 1], [], []>} : vector<16x32xbf16>, vector<32x32xbf16>, vector<16x32xf32> -> vector<16x32xf32>
    %c0_21 = arith.constant 0 : index
    %c0_22 = arith.constant 0 : index
    %29 = vector.load %arg13[%c0_21, %c0_22] : memref<1x32xf32, #tpu.memory_space<vmem>>, vector<1x32xf32>
    %30 = vector.broadcast %29 : vector<1x32xf32> to vector<16x32xf32>
    %31 = arith.addf %28, %30 : vector<16x32xf32>
    %cst_23 = arith.constant 9.900000e-01 : f32
    %32 = vector.broadcast %cst_23 : f32 to vector<16x32xf32>
    %33 = arith.mulf %32, %31 : vector<16x32xf32>
    %cst_24 = arith.constant 1.250000e-03 : f32
    %34 = vector.broadcast %cst_24 : f32 to vector<16x32xf32>
    %35 = arith.addf %33, %34 : vector<16x32xf32>
    %c0_25 = arith.constant 0 : index
    %c0_26 = arith.constant 0 : index
    %36 = vector.load %arg2[%c0_25, %c0_26] : memref<16x32xf32, #tpu.memory_space<vmem>>, vector<16x32xf32>
    %37 = arith.addf %35, %36 : vector<16x32xf32>
    %38 = vector.extract_strided_slice %37 {offsets = [0, 0], sizes = [16, 8], strides = [1, 1]} : vector<16x32xf32> to vector<16x8xf32>
    %cst_27 = arith.constant dense<0xFF800000> : vector<16xf32>
    %39 = vector.multi_reduction <maximumf>, %38, %cst_27 [1] : vector<16x8xf32> to vector<16xf32>
    %40 = vector.shape_cast %39 : vector<16xf32> to vector<16x1xf32>
    %41 = vector.broadcast %40 : vector<16x1xf32> to vector<16x8xf32>
    %42 = arith.cmpf oeq, %38, %41 : vector<16x8xf32>
    %43 = arith.extui %42 : vector<16x8xi1> to vector<16x8xi32>
    %44 = arith.sitofp %43 : vector<16x8xi32> to vector<16x8xf32>
    %45 = vector.extract_strided_slice %37 {offsets = [0, 8], sizes = [16, 8], strides = [1, 1]} : vector<16x32xf32> to vector<16x8xf32>
    %cst_28 = arith.constant dense<0xFF800000> : vector<16xf32>
    %46 = vector.multi_reduction <maximumf>, %45, %cst_28 [1] : vector<16x8xf32> to vector<16xf32>
    %47 = vector.shape_cast %46 : vector<16xf32> to vector<16x1xf32>
    %48 = vector.broadcast %47 : vector<16x1xf32> to vector<16x8xf32>
    %49 = arith.cmpf oeq, %45, %48 : vector<16x8xf32>
    %50 = arith.extui %49 : vector<16x8xi1> to vector<16x8xi32>
    %51 = arith.sitofp %50 : vector<16x8xi32> to vector<16x8xf32>
    %52 = vector.extract_strided_slice %37 {offsets = [0, 16], sizes = [16, 8], strides = [1, 1]} : vector<16x32xf32> to vector<16x8xf32>
    %cst_29 = arith.constant dense<0xFF800000> : vector<16xf32>
    %53 = vector.multi_reduction <maximumf>, %52, %cst_29 [1] : vector<16x8xf32> to vector<16xf32>
    %54 = vector.shape_cast %53 : vector<16xf32> to vector<16x1xf32>
    %55 = vector.broadcast %54 : vector<16x1xf32> to vector<16x8xf32>
    %56 = arith.cmpf oeq, %52, %55 : vector<16x8xf32>
    %57 = arith.extui %56 : vector<16x8xi1> to vector<16x8xi32>
    %58 = arith.sitofp %57 : vector<16x8xi32> to vector<16x8xf32>
    %59 = vector.extract_strided_slice %37 {offsets = [0, 24], sizes = [16, 8], strides = [1, 1]} : vector<16x32xf32> to vector<16x8xf32>
    %cst_30 = arith.constant dense<0xFF800000> : vector<16xf32>
    %60 = vector.multi_reduction <maximumf>, %59, %cst_30 [1] : vector<16x8xf32> to vector<16xf32>
    %61 = vector.shape_cast %60 : vector<16xf32> to vector<16x1xf32>
    %62 = vector.broadcast %61 : vector<16x1xf32> to vector<16x8xf32>
    %63 = arith.cmpf oeq, %59, %62 : vector<16x8xf32>
    %64 = arith.extui %63 : vector<16x8xi1> to vector<16x8xi32>
    %65 = arith.sitofp %64 : vector<16x8xi32> to vector<16x8xf32>
    %66 = tpu.concatenate %44, %51, %58, %65 in 1 : vector<16x8xf32>, vector<16x8xf32>, vector<16x8xf32>, vector<16x8xf32> -> vector<16x32xf32>
    %c0_31 = arith.constant 0 : index
    %c0_32 = arith.constant 0 : index
    %67 = vector.load %arg1[%c0_31, %c0_32] : memref<16x8xf32, #tpu.memory_space<vmem>>, vector<16x8xf32>
    %68 = tpu.concatenate %66, %67 in 1 : vector<16x32xf32>, vector<16x8xf32> -> vector<16x40xf32>
    %c0_33 = arith.constant 0 : index
    %c0_34 = arith.constant 0 : index
    %69 = vector.load %arg14[%c0_33, %c0_34] : memref<40x32xbf16, #tpu.memory_space<vmem>>, vector<40x32xbf16>
    %70 = arith.truncf %68 : vector<16x40xf32> to vector<16x40xbf16>
    %cst_35 = arith.constant dense<0.000000e+00> : vector<16x32xf32>
    %71 = tpu.matmul %70, %69, %cst_35 {dimension_numbers = #tpu.dot_dimension_numbers<[1], [0], [0], [1], [0, 0, 1, 1], [], []>} : vector<16x40xbf16>, vector<40x32xbf16>, vector<16x32xf32> -> vector<16x32xf32>
    %c0_36 = arith.constant 0 : index
    %c0_37 = arith.constant 0 : index
    %72 = vector.load %arg15[%c0_36, %c0_37] : memref<1x32xf32, #tpu.memory_space<vmem>>, vector<1x32xf32>
    %73 = vector.broadcast %72 : vector<1x32xf32> to vector<16x32xf32>
    %74 = arith.addf %71, %73 : vector<16x32xf32>
    %cst_38 = arith.constant 0.000000e+00 : f32
    %75 = vector.broadcast %cst_38 : f32 to vector<16x32xf32>
    %76 = arith.maximumf %74, %75 : vector<16x32xf32>
    %c0_39 = arith.constant 0 : index
    %c0_40 = arith.constant 0 : index
    %77 = vector.load %arg16[%c0_39, %c0_40] : memref<1x32xf32, #tpu.memory_space<vmem>>, vector<1x32xf32>
    %c0_41 = arith.constant 0 : index
    %c0_42 = arith.constant 0 : index
    %78 = vector.load %arg17[%c0_41, %c0_42] : memref<1x32xf32, #tpu.memory_space<vmem>>, vector<1x32xf32>
    %cst_43 = arith.constant dense<0.000000e+00> : vector<16xf32>
    %79 = vector.multi_reduction <add>, %76, %cst_43 [1] : vector<16x32xf32> to vector<16xf32>
    %80 = vector.shape_cast %79 : vector<16xf32> to vector<16x1xf32>
    %cst_44 = arith.constant 3.200000e+01 : f32
    %81 = vector.broadcast %cst_44 : f32 to vector<16x1xf32>
    %82 = arith.divf %80, %81 : vector<16x1xf32>
    %83 = vector.broadcast %82 : vector<16x1xf32> to vector<16x32xf32>
    %84 = arith.subf %76, %83 : vector<16x32xf32>
    %85 = arith.mulf %84, %84 : vector<16x32xf32>
    %cst_45 = arith.constant dense<0.000000e+00> : vector<16xf32>
    %86 = vector.multi_reduction <add>, %85, %cst_45 [1] : vector<16x32xf32> to vector<16xf32>
    %87 = vector.shape_cast %86 : vector<16xf32> to vector<16x1xf32>
    %cst_46 = arith.constant 3.200000e+01 : f32
    %88 = vector.broadcast %cst_46 : f32 to vector<16x1xf32>
    %89 = arith.divf %87, %88 : vector<16x1xf32>
    %cst_47 = arith.constant 9.99999974E-6 : f32
    %90 = vector.broadcast %cst_47 : f32 to vector<16x1xf32>
    %91 = arith.addf %89, %90 : vector<16x1xf32>
    %92 = math.rsqrt %91 : vector<16x1xf32>
    %93 = vector.broadcast %92 : vector<16x1xf32> to vector<16x32xf32>
    %94 = arith.mulf %84, %93 : vector<16x32xf32>
    %95 = vector.broadcast %77 : vector<1x32xf32> to vector<16x32xf32>
    %96 = arith.mulf %94, %95 : vector<16x32xf32>
    %97 = vector.broadcast %78 : vector<1x32xf32> to vector<16x32xf32>
    %98 = arith.addf %96, %97 : vector<16x32xf32>
    %c0_48 = arith.constant 0 : index
    %c0_49 = arith.constant 0 : index
    %99 = vector.load %arg18[%c0_48, %c0_49] : memref<32x32xbf16, #tpu.memory_space<vmem>>, vector<32x32xbf16>
    %100 = arith.truncf %98 : vector<16x32xf32> to vector<16x32xbf16>
    %cst_50 = arith.constant dense<0.000000e+00> : vector<16x32xf32>
    %101 = tpu.matmul %100, %99, %cst_50 {dimension_numbers = #tpu.dot_dimension_numbers<[1], [0], [0], [1], [0, 0, 1, 1], [], []>} : vector<16x32xbf16>, vector<32x32xbf16>, vector<16x32xf32> -> vector<16x32xf32>
    %c0_51 = arith.constant 0 : index
    %c0_52 = arith.constant 0 : index
    %102 = vector.load %arg19[%c0_51, %c0_52] : memref<1x32xf32, #tpu.memory_space<vmem>>, vector<1x32xf32>
    %103 = vector.broadcast %102 : vector<1x32xf32> to vector<16x32xf32>
    %104 = arith.addf %101, %103 : vector<16x32xf32>
    %c0_53 = arith.constant 0 : index
    %c0_54 = arith.constant 0 : index
    %105 = vector.load %arg20[%c0_53, %c0_54] : memref<1x32xf32, #tpu.memory_space<vmem>>, vector<1x32xf32>
    %c0_55 = arith.constant 0 : index
    %c0_56 = arith.constant 0 : index
    %106 = vector.load %arg21[%c0_55, %c0_56] : memref<1x32xf32, #tpu.memory_space<vmem>>, vector<1x32xf32>
    %cst_57 = arith.constant dense<0.000000e+00> : vector<16xf32>
    %107 = vector.multi_reduction <add>, %104, %cst_57 [1] : vector<16x32xf32> to vector<16xf32>
    %108 = vector.shape_cast %107 : vector<16xf32> to vector<16x1xf32>
    %cst_58 = arith.constant 3.200000e+01 : f32
    %109 = vector.broadcast %cst_58 : f32 to vector<16x1xf32>
    %110 = arith.divf %108, %109 : vector<16x1xf32>
    %111 = vector.broadcast %110 : vector<16x1xf32> to vector<16x32xf32>
    %112 = arith.subf %104, %111 : vector<16x32xf32>
    %113 = arith.mulf %112, %112 : vector<16x32xf32>
    %cst_59 = arith.constant dense<0.000000e+00> : vector<16xf32>
    %114 = vector.multi_reduction <add>, %113, %cst_59 [1] : vector<16x32xf32> to vector<16xf32>
    %115 = vector.shape_cast %114 : vector<16xf32> to vector<16x1xf32>
    %cst_60 = arith.constant 3.200000e+01 : f32
    %116 = vector.broadcast %cst_60 : f32 to vector<16x1xf32>
    %117 = arith.divf %115, %116 : vector<16x1xf32>
    %cst_61 = arith.constant 9.99999974E-6 : f32
    %118 = vector.broadcast %cst_61 : f32 to vector<16x1xf32>
    %119 = arith.addf %117, %118 : vector<16x1xf32>
    %120 = math.rsqrt %119 : vector<16x1xf32>
    %121 = vector.broadcast %120 : vector<16x1xf32> to vector<16x32xf32>
    %122 = arith.mulf %112, %121 : vector<16x32xf32>
    %123 = vector.broadcast %105 : vector<1x32xf32> to vector<16x32xf32>
    %124 = arith.mulf %122, %123 : vector<16x32xf32>
    %125 = vector.broadcast %106 : vector<1x32xf32> to vector<16x32xf32>
    %126 = arith.addf %124, %125 : vector<16x32xf32>
    %c0_62 = arith.constant 0 : index
    %c0_63 = arith.constant 0 : index
    %127 = vector.load %arg3[%c0_62, %c0_63] : memref<16x32xf32, #tpu.memory_space<vmem>>, vector<16x32xf32>
    %128 = arith.addf %126, %127 : vector<16x32xf32>
    %c0_64 = arith.constant 0 : index
    %c0_65 = arith.constant 0 : index
    %c0_66 = arith.constant 0 : index
    %129 = vector.load %arg22[%c0_64, %c0_65, %c0_66] : memref<2x32x384xbf16, #tpu.memory_space<vmem>>, vector<1x32x384xbf16>
    %130 = vector.shape_cast %129 : vector<1x32x384xbf16> to vector<32x384xbf16>
    %131 = arith.truncf %128 : vector<16x32xf32> to vector<16x32xbf16>
    %cst_67 = arith.constant dense<0.000000e+00> : vector<16x384xf32>
    %132 = tpu.matmul %131, %130, %cst_67 {dimension_numbers = #tpu.dot_dimension_numbers<[1], [0], [0], [1], [0, 0, 1, 1], [], []>} : vector<16x32xbf16>, vector<32x384xbf16>, vector<16x384xf32> -> vector<16x384xf32>
    %c0_68 = arith.constant 0 : index
    %c0_69 = arith.constant 0 : index
    %c0_70 = arith.constant 0 : index
    %133 = vector.load %arg23[%c0_68, %c0_69, %c0_70] : memref<2x1x384xf32, #tpu.memory_space<vmem>>, vector<1x1x384xf32>
    %134 = vector.shape_cast %133 : vector<1x1x384xf32> to vector<1x384xf32>
    %135 = vector.broadcast %134 : vector<1x384xf32> to vector<16x384xf32>
    %136 = arith.addf %132, %135 : vector<16x384xf32>
    %137 = vector.extract_strided_slice %136 {offsets = [0, 0], sizes = [16, 32], strides = [1, 1]} : vector<16x384xf32> to vector<16x32xf32>
    %138 = vector.extract_strided_slice %136 {offsets = [0, 128], sizes = [16, 32], strides = [1, 1]} : vector<16x384xf32> to vector<16x32xf32>
    %139 = vector.extract_strided_slice %136 {offsets = [0, 256], sizes = [16, 32], strides = [1, 1]} : vector<16x384xf32> to vector<16x32xf32>
    %140 = vector.extract_strided_slice %137 {offsets = [0, 0], sizes = [16, 4], strides = [1, 1]} : vector<16x32xf32> to vector<16x4xf32>
    %141 = vector.shape_cast %140 : vector<16x4xf32> to vector<2x8x4xf32>
    %142 = arith.truncf %141 : vector<2x8x4xf32> to vector<2x8x4xbf16>
    %143 = vector.extract_strided_slice %138 {offsets = [0, 0], sizes = [16, 4], strides = [1, 1]} : vector<16x32xf32> to vector<16x4xf32>
    %144 = vector.shape_cast %143 : vector<16x4xf32> to vector<2x8x4xf32>
    %145 = arith.truncf %144 : vector<2x8x4xf32> to vector<2x8x4xbf16>
    %146 = vector.extract_strided_slice %139 {offsets = [0, 0], sizes = [16, 4], strides = [1, 1]} : vector<16x32xf32> to vector<16x4xf32>
    %147 = vector.shape_cast %146 : vector<16x4xf32> to vector<2x8x4xf32>
    %148 = arith.truncf %147 : vector<2x8x4xf32> to vector<2x8x4xbf16>
    "tpu.trace_start"() <{level = 10 : i32, message = "bqd,bkd->bqk"}> : () -> ()
    %cst_71 = arith.constant dense<0.000000e+00> : vector<2x8x8xf32>
    %149 = tpu.matmul %142, %145, %cst_71 {dimension_numbers = #tpu.dot_dimension_numbers<[2], [2], [1], [1], [0, 0, 0, 1, 1, 1], [0], [0]>} : vector<2x8x4xbf16>, vector<2x8x4xbf16>, vector<2x8x8xf32> -> vector<2x8x8xf32>
    "tpu.trace_stop"() : () -> ()
    %cst_72 = arith.constant 5.000000e-01 : f32
    %150 = vector.broadcast %cst_72 : f32 to vector<2x8x8xf32>
    %151 = arith.mulf %149, %150 : vector<2x8x8xf32>
    %cst_73 = arith.constant dense<0xFF800000> : vector<2x8xf32>
    %152 = vector.multi_reduction <maximumf>, %151, %cst_73 [2] : vector<2x8x8xf32> to vector<2x8xf32>
    %153 = vector.shape_cast %152 : vector<2x8xf32> to vector<2x8x1xf32>
    %154 = vector.broadcast %153 : vector<2x8x1xf32> to vector<2x8x8xf32>
    %155 = arith.subf %151, %154 : vector<2x8x8xf32>
    %156 = math.exp %155 : vector<2x8x8xf32>
    %cst_74 = arith.constant dense<0.000000e+00> : vector<2x8xf32>
    %157 = vector.multi_reduction <add>, %156, %cst_74 [2] : vector<2x8x8xf32> to vector<2x8xf32>
    %158 = vector.shape_cast %157 : vector<2x8xf32> to vector<2x8x1xf32>
    %159 = tpu.reciprocal %158 {approx = true} : vector<2x8x1xf32> -> vector<2x8x1xf32>
    %160 = vector.broadcast %159 : vector<2x8x1xf32> to vector<2x8x8xf32>
    %161 = arith.mulf %156, %160 : vector<2x8x8xf32>
    %162 = arith.truncf %161 : vector<2x8x8xf32> to vector<2x8x8xbf16>
    "tpu.trace_start"() <{level = 10 : i32, message = "bqk,bkd->bqd"}> : () -> ()
    %cst_75 = arith.constant dense<0.000000e+00> : vector<2x8x4xf32>
    %163 = tpu.matmul %162, %148, %cst_75 {dimension_numbers = #tpu.dot_dimension_numbers<[2], [1], [1], [2], [0, 0, 0, 1, 1, 2], [0], [0]>} : vector<2x8x8xbf16>, vector<2x8x4xbf16>, vector<2x8x4xf32> -> vector<2x8x4xf32>
    "tpu.trace_stop"() : () -> ()
    %164 = vector.shape_cast %163 : vector<2x8x4xf32> to vector<16x4xf32>
    %165 = vector.extract_strided_slice %137 {offsets = [0, 4], sizes = [16, 4], strides = [1, 1]} : vector<16x32xf32> to vector<16x4xf32>
    %166 = vector.shape_cast %165 : vector<16x4xf32> to vector<2x8x4xf32>
    %167 = arith.truncf %166 : vector<2x8x4xf32> to vector<2x8x4xbf16>
    %168 = vector.extract_strided_slice %138 {offsets = [0, 4], sizes = [16, 4], strides = [1, 1]} : vector<16x32xf32> to vector<16x4xf32>
    %169 = vector.shape_cast %168 : vector<16x4xf32> to vector<2x8x4xf32>
    %170 = arith.truncf %169 : vector<2x8x4xf32> to vector<2x8x4xbf16>
    %171 = vector.extract_strided_slice %139 {offsets = [0, 4], sizes = [16, 4], strides = [1, 1]} : vector<16x32xf32> to vector<16x4xf32>
    %172 = vector.shape_cast %171 : vector<16x4xf32> to vector<2x8x4xf32>
    %173 = arith.truncf %172 : vector<2x8x4xf32> to vector<2x8x4xbf16>
    "tpu.trace_start"() <{level = 10 : i32, message = "bqd,bkd->bqk"}> : () -> ()
    %cst_76 = arith.constant dense<0.000000e+00> : vector<2x8x8xf32>
    %174 = tpu.matmul %167, %170, %cst_76 {dimension_numbers = #tpu.dot_dimension_numbers<[2], [2], [1], [1], [0, 0, 0, 1, 1, 1], [0], [0]>} : vector<2x8x4xbf16>, vector<2x8x4xbf16>, vector<2x8x8xf32> -> vector<2x8x8xf32>
    "tpu.trace_stop"() : () -> ()
    %cst_77 = arith.constant 5.000000e-01 : f32
    %175 = vector.broadcast %cst_77 : f32 to vector<2x8x8xf32>
    %176 = arith.mulf %174, %175 : vector<2x8x8xf32>
    %cst_78 = arith.constant dense<0xFF800000> : vector<2x8xf32>
    %177 = vector.multi_reduction <maximumf>, %176, %cst_78 [2] : vector<2x8x8xf32> to vector<2x8xf32>
    %178 = vector.shape_cast %177 : vector<2x8xf32> to vector<2x8x1xf32>
    %179 = vector.broadcast %178 : vector<2x8x1xf32> to vector<2x8x8xf32>
    %180 = arith.subf %176, %179 : vector<2x8x8xf32>
    %181 = math.exp %180 : vector<2x8x8xf32>
    %cst_79 = arith.constant dense<0.000000e+00> : vector<2x8xf32>
    %182 = vector.multi_reduction <add>, %181, %cst_79 [2] : vector<2x8x8xf32> to vector<2x8xf32>
    %183 = vector.shape_cast %182 : vector<2x8xf32> to vector<2x8x1xf32>
    %184 = tpu.reciprocal %183 {approx = true} : vector<2x8x1xf32> -> vector<2x8x1xf32>
    %185 = vector.broadcast %184 : vector<2x8x1xf32> to vector<2x8x8xf32>
    %186 = arith.mulf %181, %185 : vector<2x8x8xf32>
    %187 = arith.truncf %186 : vector<2x8x8xf32> to vector<2x8x8xbf16>
    "tpu.trace_start"() <{level = 10 : i32, message = "bqk,bkd->bqd"}> : () -> ()
    %cst_80 = arith.constant dense<0.000000e+00> : vector<2x8x4xf32>
    %188 = tpu.matmul %187, %173, %cst_80 {dimension_numbers = #tpu.dot_dimension_numbers<[2], [1], [1], [2], [0, 0, 0, 1, 1, 2], [0], [0]>} : vector<2x8x8xbf16>, vector<2x8x4xbf16>, vector<2x8x4xf32> -> vector<2x8x4xf32>
    "tpu.trace_stop"() : () -> ()
    %189 = vector.shape_cast %188 : vector<2x8x4xf32> to vector<16x4xf32>
    %190 = vector.extract_strided_slice %137 {offsets = [0, 8], sizes = [16, 4], strides = [1, 1]} : vector<16x32xf32> to vector<16x4xf32>
    %191 = vector.shape_cast %190 : vector<16x4xf32> to vector<2x8x4xf32>
    %192 = arith.truncf %191 : vector<2x8x4xf32> to vector<2x8x4xbf16>
    %193 = vector.extract_strided_slice %138 {offsets = [0, 8], sizes = [16, 4], strides = [1, 1]} : vector<16x32xf32> to vector<16x4xf32>
    %194 = vector.shape_cast %193 : vector<16x4xf32> to vector<2x8x4xf32>
    %195 = arith.truncf %194 : vector<2x8x4xf32> to vector<2x8x4xbf16>
    %196 = vector.extract_strided_slice %139 {offsets = [0, 8], sizes = [16, 4], strides = [1, 1]} : vector<16x32xf32> to vector<16x4xf32>
    %197 = vector.shape_cast %196 : vector<16x4xf32> to vector<2x8x4xf32>
    %198 = arith.truncf %197 : vector<2x8x4xf32> to vector<2x8x4xbf16>
    "tpu.trace_start"() <{level = 10 : i32, message = "bqd,bkd->bqk"}> : () -> ()
    %cst_81 = arith.constant dense<0.000000e+00> : vector<2x8x8xf32>
    %199 = tpu.matmul %192, %195, %cst_81 {dimension_numbers = #tpu.dot_dimension_numbers<[2], [2], [1], [1], [0, 0, 0, 1, 1, 1], [0], [0]>} : vector<2x8x4xbf16>, vector<2x8x4xbf16>, vector<2x8x8xf32> -> vector<2x8x8xf32>
    "tpu.trace_stop"() : () -> ()
    %cst_82 = arith.constant 5.000000e-01 : f32
    %200 = vector.broadcast %cst_82 : f32 to vector<2x8x8xf32>
    %201 = arith.mulf %199, %200 : vector<2x8x8xf32>
    %cst_83 = arith.constant dense<0xFF800000> : vector<2x8xf32>
    %202 = vector.multi_reduction <maximumf>, %201, %cst_83 [2] : vector<2x8x8xf32> to vector<2x8xf32>
    %203 = vector.shape_cast %202 : vector<2x8xf32> to vector<2x8x1xf32>
    %204 = vector.broadcast %203 : vector<2x8x1xf32> to vector<2x8x8xf32>
    %205 = arith.subf %201, %204 : vector<2x8x8xf32>
    %206 = math.exp %205 : vector<2x8x8xf32>
    %cst_84 = arith.constant dense<0.000000e+00> : vector<2x8xf32>
    %207 = vector.multi_reduction <add>, %206, %cst_84 [2] : vector<2x8x8xf32> to vector<2x8xf32>
    %208 = vector.shape_cast %207 : vector<2x8xf32> to vector<2x8x1xf32>
    %209 = tpu.reciprocal %208 {approx = true} : vector<2x8x1xf32> -> vector<2x8x1xf32>
    %210 = vector.broadcast %209 : vector<2x8x1xf32> to vector<2x8x8xf32>
    %211 = arith.mulf %206, %210 : vector<2x8x8xf32>
    %212 = arith.truncf %211 : vector<2x8x8xf32> to vector<2x8x8xbf16>
    "tpu.trace_start"() <{level = 10 : i32, message = "bqk,bkd->bqd"}> : () -> ()
    %cst_85 = arith.constant dense<0.000000e+00> : vector<2x8x4xf32>
    %213 = tpu.matmul %212, %198, %cst_85 {dimension_numbers = #tpu.dot_dimension_numbers<[2], [1], [1], [2], [0, 0, 0, 1, 1, 2], [0], [0]>} : vector<2x8x8xbf16>, vector<2x8x4xbf16>, vector<2x8x4xf32> -> vector<2x8x4xf32>
    "tpu.trace_stop"() : () -> ()
    %214 = vector.shape_cast %213 : vector<2x8x4xf32> to vector<16x4xf32>
    %215 = vector.extract_strided_slice %137 {offsets = [0, 12], sizes = [16, 4], strides = [1, 1]} : vector<16x32xf32> to vector<16x4xf32>
    %216 = vector.shape_cast %215 : vector<16x4xf32> to vector<2x8x4xf32>
    %217 = arith.truncf %216 : vector<2x8x4xf32> to vector<2x8x4xbf16>
    %218 = vector.extract_strided_slice %138 {offsets = [0, 12], sizes = [16, 4], strides = [1, 1]} : vector<16x32xf32> to vector<16x4xf32>
    %219 = vector.shape_cast %218 : vector<16x4xf32> to vector<2x8x4xf32>
    %220 = arith.truncf %219 : vector<2x8x4xf32> to vector<2x8x4xbf16>
    %221 = vector.extract_strided_slice %139 {offsets = [0, 12], sizes = [16, 4], strides = [1, 1]} : vector<16x32xf32> to vector<16x4xf32>
    %222 = vector.shape_cast %221 : vector<16x4xf32> to vector<2x8x4xf32>
    %223 = arith.truncf %222 : vector<2x8x4xf32> to vector<2x8x4xbf16>
    "tpu.trace_start"() <{level = 10 : i32, message = "bqd,bkd->bqk"}> : () -> ()
    %cst_86 = arith.constant dense<0.000000e+00> : vector<2x8x8xf32>
    %224 = tpu.matmul %217, %220, %cst_86 {dimension_numbers = #tpu.dot_dimension_numbers<[2], [2], [1], [1], [0, 0, 0, 1, 1, 1], [0], [0]>} : vector<2x8x4xbf16>, vector<2x8x4xbf16>, vector<2x8x8xf32> -> vector<2x8x8xf32>
    "tpu.trace_stop"() : () -> ()
    %cst_87 = arith.constant 5.000000e-01 : f32
    %225 = vector.broadcast %cst_87 : f32 to vector<2x8x8xf32>
    %226 = arith.mulf %224, %225 : vector<2x8x8xf32>
    %cst_88 = arith.constant dense<0xFF800000> : vector<2x8xf32>
    %227 = vector.multi_reduction <maximumf>, %226, %cst_88 [2] : vector<2x8x8xf32> to vector<2x8xf32>
    %228 = vector.shape_cast %227 : vector<2x8xf32> to vector<2x8x1xf32>
    %229 = vector.broadcast %228 : vector<2x8x1xf32> to vector<2x8x8xf32>
    %230 = arith.subf %226, %229 : vector<2x8x8xf32>
    %231 = math.exp %230 : vector<2x8x8xf32>
    %cst_89 = arith.constant dense<0.000000e+00> : vector<2x8xf32>
    %232 = vector.multi_reduction <add>, %231, %cst_89 [2] : vector<2x8x8xf32> to vector<2x8xf32>
    %233 = vector.shape_cast %232 : vector<2x8xf32> to vector<2x8x1xf32>
    %234 = tpu.reciprocal %233 {approx = true} : vector<2x8x1xf32> -> vector<2x8x1xf32>
    %235 = vector.broadcast %234 : vector<2x8x1xf32> to vector<2x8x8xf32>
    %236 = arith.mulf %231, %235 : vector<2x8x8xf32>
    %237 = arith.truncf %236 : vector<2x8x8xf32> to vector<2x8x8xbf16>
    "tpu.trace_start"() <{level = 10 : i32, message = "bqk,bkd->bqd"}> : () -> ()
    %cst_90 = arith.constant dense<0.000000e+00> : vector<2x8x4xf32>
    %238 = tpu.matmul %237, %223, %cst_90 {dimension_numbers = #tpu.dot_dimension_numbers<[2], [1], [1], [2], [0, 0, 0, 1, 1, 2], [0], [0]>} : vector<2x8x8xbf16>, vector<2x8x4xbf16>, vector<2x8x4xf32> -> vector<2x8x4xf32>
    "tpu.trace_stop"() : () -> ()
    %239 = vector.shape_cast %238 : vector<2x8x4xf32> to vector<16x4xf32>
    %240 = vector.extract_strided_slice %137 {offsets = [0, 16], sizes = [16, 4], strides = [1, 1]} : vector<16x32xf32> to vector<16x4xf32>
    %241 = vector.shape_cast %240 : vector<16x4xf32> to vector<2x8x4xf32>
    %242 = arith.truncf %241 : vector<2x8x4xf32> to vector<2x8x4xbf16>
    %243 = vector.extract_strided_slice %138 {offsets = [0, 16], sizes = [16, 4], strides = [1, 1]} : vector<16x32xf32> to vector<16x4xf32>
    %244 = vector.shape_cast %243 : vector<16x4xf32> to vector<2x8x4xf32>
    %245 = arith.truncf %244 : vector<2x8x4xf32> to vector<2x8x4xbf16>
    %246 = vector.extract_strided_slice %139 {offsets = [0, 16], sizes = [16, 4], strides = [1, 1]} : vector<16x32xf32> to vector<16x4xf32>
    %247 = vector.shape_cast %246 : vector<16x4xf32> to vector<2x8x4xf32>
    %248 = arith.truncf %247 : vector<2x8x4xf32> to vector<2x8x4xbf16>
    "tpu.trace_start"() <{level = 10 : i32, message = "bqd,bkd->bqk"}> : () -> ()
    %cst_91 = arith.constant dense<0.000000e+00> : vector<2x8x8xf32>
    %249 = tpu.matmul %242, %245, %cst_91 {dimension_numbers = #tpu.dot_dimension_numbers<[2], [2], [1], [1], [0, 0, 0, 1, 1, 1], [0], [0]>} : vector<2x8x4xbf16>, vector<2x8x4xbf16>, vector<2x8x8xf32> -> vector<2x8x8xf32>
    "tpu.trace_stop"() : () -> ()
    %cst_92 = arith.constant 5.000000e-01 : f32
    %250 = vector.broadcast %cst_92 : f32 to vector<2x8x8xf32>
    %251 = arith.mulf %249, %250 : vector<2x8x8xf32>
    %cst_93 = arith.constant dense<0xFF800000> : vector<2x8xf32>
    %252 = vector.multi_reduction <maximumf>, %251, %cst_93 [2] : vector<2x8x8xf32> to vector<2x8xf32>
    %253 = vector.shape_cast %252 : vector<2x8xf32> to vector<2x8x1xf32>
    %254 = vector.broadcast %253 : vector<2x8x1xf32> to vector<2x8x8xf32>
    %255 = arith.subf %251, %254 : vector<2x8x8xf32>
    %256 = math.exp %255 : vector<2x8x8xf32>
    %cst_94 = arith.constant dense<0.000000e+00> : vector<2x8xf32>
    %257 = vector.multi_reduction <add>, %256, %cst_94 [2] : vector<2x8x8xf32> to vector<2x8xf32>
    %258 = vector.shape_cast %257 : vector<2x8xf32> to vector<2x8x1xf32>
    %259 = tpu.reciprocal %258 {approx = true} : vector<2x8x1xf32> -> vector<2x8x1xf32>
    %260 = vector.broadcast %259 : vector<2x8x1xf32> to vector<2x8x8xf32>
    %261 = arith.mulf %256, %260 : vector<2x8x8xf32>
    %262 = arith.truncf %261 : vector<2x8x8xf32> to vector<2x8x8xbf16>
    "tpu.trace_start"() <{level = 10 : i32, message = "bqk,bkd->bqd"}> : () -> ()
    %cst_95 = arith.constant dense<0.000000e+00> : vector<2x8x4xf32>
    %263 = tpu.matmul %262, %248, %cst_95 {dimension_numbers = #tpu.dot_dimension_numbers<[2], [1], [1], [2], [0, 0, 0, 1, 1, 2], [0], [0]>} : vector<2x8x8xbf16>, vector<2x8x4xbf16>, vector<2x8x4xf32> -> vector<2x8x4xf32>
    "tpu.trace_stop"() : () -> ()
    %264 = vector.shape_cast %263 : vector<2x8x4xf32> to vector<16x4xf32>
    %265 = vector.extract_strided_slice %137 {offsets = [0, 20], sizes = [16, 4], strides = [1, 1]} : vector<16x32xf32> to vector<16x4xf32>
    %266 = vector.shape_cast %265 : vector<16x4xf32> to vector<2x8x4xf32>
    %267 = arith.truncf %266 : vector<2x8x4xf32> to vector<2x8x4xbf16>
    %268 = vector.extract_strided_slice %138 {offsets = [0, 20], sizes = [16, 4], strides = [1, 1]} : vector<16x32xf32> to vector<16x4xf32>
    %269 = vector.shape_cast %268 : vector<16x4xf32> to vector<2x8x4xf32>
    %270 = arith.truncf %269 : vector<2x8x4xf32> to vector<2x8x4xbf16>
    %271 = vector.extract_strided_slice %139 {offsets = [0, 20], sizes = [16, 4], strides = [1, 1]} : vector<16x32xf32> to vector<16x4xf32>
    %272 = vector.shape_cast %271 : vector<16x4xf32> to vector<2x8x4xf32>
    %273 = arith.truncf %272 : vector<2x8x4xf32> to vector<2x8x4xbf16>
    "tpu.trace_start"() <{level = 10 : i32, message = "bqd,bkd->bqk"}> : () -> ()
    %cst_96 = arith.constant dense<0.000000e+00> : vector<2x8x8xf32>
    %274 = tpu.matmul %267, %270, %cst_96 {dimension_numbers = #tpu.dot_dimension_numbers<[2], [2], [1], [1], [0, 0, 0, 1, 1, 1], [0], [0]>} : vector<2x8x4xbf16>, vector<2x8x4xbf16>, vector<2x8x8xf32> -> vector<2x8x8xf32>
    "tpu.trace_stop"() : () -> ()
    %cst_97 = arith.constant 5.000000e-01 : f32
    %275 = vector.broadcast %cst_97 : f32 to vector<2x8x8xf32>
    %276 = arith.mulf %274, %275 : vector<2x8x8xf32>
    %cst_98 = arith.constant dense<0xFF800000> : vector<2x8xf32>
    %277 = vector.multi_reduction <maximumf>, %276, %cst_98 [2] : vector<2x8x8xf32> to vector<2x8xf32>
    %278 = vector.shape_cast %277 : vector<2x8xf32> to vector<2x8x1xf32>
    %279 = vector.broadcast %278 : vector<2x8x1xf32> to vector<2x8x8xf32>
    %280 = arith.subf %276, %279 : vector<2x8x8xf32>
    %281 = math.exp %280 : vector<2x8x8xf32>
    %cst_99 = arith.constant dense<0.000000e+00> : vector<2x8xf32>
    %282 = vector.multi_reduction <add>, %281, %cst_99 [2] : vector<2x8x8xf32> to vector<2x8xf32>
    %283 = vector.shape_cast %282 : vector<2x8xf32> to vector<2x8x1xf32>
    %284 = tpu.reciprocal %283 {approx = true} : vector<2x8x1xf32> -> vector<2x8x1xf32>
    %285 = vector.broadcast %284 : vector<2x8x1xf32> to vector<2x8x8xf32>
    %286 = arith.mulf %281, %285 : vector<2x8x8xf32>
    %287 = arith.truncf %286 : vector<2x8x8xf32> to vector<2x8x8xbf16>
    "tpu.trace_start"() <{level = 10 : i32, message = "bqk,bkd->bqd"}> : () -> ()
    %cst_100 = arith.constant dense<0.000000e+00> : vector<2x8x4xf32>
    %288 = tpu.matmul %287, %273, %cst_100 {dimension_numbers = #tpu.dot_dimension_numbers<[2], [1], [1], [2], [0, 0, 0, 1, 1, 2], [0], [0]>} : vector<2x8x8xbf16>, vector<2x8x4xbf16>, vector<2x8x4xf32> -> vector<2x8x4xf32>
    "tpu.trace_stop"() : () -> ()
    %289 = vector.shape_cast %288 : vector<2x8x4xf32> to vector<16x4xf32>
    %290 = vector.extract_strided_slice %137 {offsets = [0, 24], sizes = [16, 4], strides = [1, 1]} : vector<16x32xf32> to vector<16x4xf32>
    %291 = vector.shape_cast %290 : vector<16x4xf32> to vector<2x8x4xf32>
    %292 = arith.truncf %291 : vector<2x8x4xf32> to vector<2x8x4xbf16>
    %293 = vector.extract_strided_slice %138 {offsets = [0, 24], sizes = [16, 4], strides = [1, 1]} : vector<16x32xf32> to vector<16x4xf32>
    %294 = vector.shape_cast %293 : vector<16x4xf32> to vector<2x8x4xf32>
    %295 = arith.truncf %294 : vector<2x8x4xf32> to vector<2x8x4xbf16>
    %296 = vector.extract_strided_slice %139 {offsets = [0, 24], sizes = [16, 4], strides = [1, 1]} : vector<16x32xf32> to vector<16x4xf32>
    %297 = vector.shape_cast %296 : vector<16x4xf32> to vector<2x8x4xf32>
    %298 = arith.truncf %297 : vector<2x8x4xf32> to vector<2x8x4xbf16>
    "tpu.trace_start"() <{level = 10 : i32, message = "bqd,bkd->bqk"}> : () -> ()
    %cst_101 = arith.constant dense<0.000000e+00> : vector<2x8x8xf32>
    %299 = tpu.matmul %292, %295, %cst_101 {dimension_numbers = #tpu.dot_dimension_numbers<[2], [2], [1], [1], [0, 0, 0, 1, 1, 1], [0], [0]>} : vector<2x8x4xbf16>, vector<2x8x4xbf16>, vector<2x8x8xf32> -> vector<2x8x8xf32>
    "tpu.trace_stop"() : () -> ()
    %cst_102 = arith.constant 5.000000e-01 : f32
    %300 = vector.broadcast %cst_102 : f32 to vector<2x8x8xf32>
    %301 = arith.mulf %299, %300 : vector<2x8x8xf32>
    %cst_103 = arith.constant dense<0xFF800000> : vector<2x8xf32>
    %302 = vector.multi_reduction <maximumf>, %301, %cst_103 [2] : vector<2x8x8xf32> to vector<2x8xf32>
    %303 = vector.shape_cast %302 : vector<2x8xf32> to vector<2x8x1xf32>
    %304 = vector.broadcast %303 : vector<2x8x1xf32> to vector<2x8x8xf32>
    %305 = arith.subf %301, %304 : vector<2x8x8xf32>
    %306 = math.exp %305 : vector<2x8x8xf32>
    %cst_104 = arith.constant dense<0.000000e+00> : vector<2x8xf32>
    %307 = vector.multi_reduction <add>, %306, %cst_104 [2] : vector<2x8x8xf32> to vector<2x8xf32>
    %308 = vector.shape_cast %307 : vector<2x8xf32> to vector<2x8x1xf32>
    %309 = tpu.reciprocal %308 {approx = true} : vector<2x8x1xf32> -> vector<2x8x1xf32>
    %310 = vector.broadcast %309 : vector<2x8x1xf32> to vector<2x8x8xf32>
    %311 = arith.mulf %306, %310 : vector<2x8x8xf32>
    %312 = arith.truncf %311 : vector<2x8x8xf32> to vector<2x8x8xbf16>
    "tpu.trace_start"() <{level = 10 : i32, message = "bqk,bkd->bqd"}> : () -> ()
    %cst_105 = arith.constant dense<0.000000e+00> : vector<2x8x4xf32>
    %313 = tpu.matmul %312, %298, %cst_105 {dimension_numbers = #tpu.dot_dimension_numbers<[2], [1], [1], [2], [0, 0, 0, 1, 1, 2], [0], [0]>} : vector<2x8x8xbf16>, vector<2x8x4xbf16>, vector<2x8x4xf32> -> vector<2x8x4xf32>
    "tpu.trace_stop"() : () -> ()
    %314 = vector.shape_cast %313 : vector<2x8x4xf32> to vector<16x4xf32>
    %315 = vector.extract_strided_slice %137 {offsets = [0, 28], sizes = [16, 4], strides = [1, 1]} : vector<16x32xf32> to vector<16x4xf32>
    %316 = vector.shape_cast %315 : vector<16x4xf32> to vector<2x8x4xf32>
    %317 = arith.truncf %316 : vector<2x8x4xf32> to vector<2x8x4xbf16>
    %318 = vector.extract_strided_slice %138 {offsets = [0, 28], sizes = [16, 4], strides = [1, 1]} : vector<16x32xf32> to vector<16x4xf32>
    %319 = vector.shape_cast %318 : vector<16x4xf32> to vector<2x8x4xf32>
    %320 = arith.truncf %319 : vector<2x8x4xf32> to vector<2x8x4xbf16>
    %321 = vector.extract_strided_slice %139 {offsets = [0, 28], sizes = [16, 4], strides = [1, 1]} : vector<16x32xf32> to vector<16x4xf32>
    %322 = vector.shape_cast %321 : vector<16x4xf32> to vector<2x8x4xf32>
    %323 = arith.truncf %322 : vector<2x8x4xf32> to vector<2x8x4xbf16>
    "tpu.trace_start"() <{level = 10 : i32, message = "bqd,bkd->bqk"}> : () -> ()
    %cst_106 = arith.constant dense<0.000000e+00> : vector<2x8x8xf32>
    %324 = tpu.matmul %317, %320, %cst_106 {dimension_numbers = #tpu.dot_dimension_numbers<[2], [2], [1], [1], [0, 0, 0, 1, 1, 1], [0], [0]>} : vector<2x8x4xbf16>, vector<2x8x4xbf16>, vector<2x8x8xf32> -> vector<2x8x8xf32>
    "tpu.trace_stop"() : () -> ()
    %cst_107 = arith.constant 5.000000e-01 : f32
    %325 = vector.broadcast %cst_107 : f32 to vector<2x8x8xf32>
    %326 = arith.mulf %324, %325 : vector<2x8x8xf32>
    %cst_108 = arith.constant dense<0xFF800000> : vector<2x8xf32>
    %327 = vector.multi_reduction <maximumf>, %326, %cst_108 [2] : vector<2x8x8xf32> to vector<2x8xf32>
    %328 = vector.shape_cast %327 : vector<2x8xf32> to vector<2x8x1xf32>
    %329 = vector.broadcast %328 : vector<2x8x1xf32> to vector<2x8x8xf32>
    %330 = arith.subf %326, %329 : vector<2x8x8xf32>
    %331 = math.exp %330 : vector<2x8x8xf32>
    %cst_109 = arith.constant dense<0.000000e+00> : vector<2x8xf32>
    %332 = vector.multi_reduction <add>, %331, %cst_109 [2] : vector<2x8x8xf32> to vector<2x8xf32>
    %333 = vector.shape_cast %332 : vector<2x8xf32> to vector<2x8x1xf32>
    %334 = tpu.reciprocal %333 {approx = true} : vector<2x8x1xf32> -> vector<2x8x1xf32>
    %335 = vector.broadcast %334 : vector<2x8x1xf32> to vector<2x8x8xf32>
    %336 = arith.mulf %331, %335 : vector<2x8x8xf32>
    %337 = arith.truncf %336 : vector<2x8x8xf32> to vector<2x8x8xbf16>
    "tpu.trace_start"() <{level = 10 : i32, message = "bqk,bkd->bqd"}> : () -> ()
    %cst_110 = arith.constant dense<0.000000e+00> : vector<2x8x4xf32>
    %338 = tpu.matmul %337, %323, %cst_110 {dimension_numbers = #tpu.dot_dimension_numbers<[2], [1], [1], [2], [0, 0, 0, 1, 1, 2], [0], [0]>} : vector<2x8x8xbf16>, vector<2x8x4xbf16>, vector<2x8x4xf32> -> vector<2x8x4xf32>
    "tpu.trace_stop"() : () -> ()
    %339 = vector.shape_cast %338 : vector<2x8x4xf32> to vector<16x4xf32>
    %340 = tpu.concatenate %164, %189, %214, %239, %264, %289, %314, %339 in 1 : vector<16x4xf32>, vector<16x4xf32>, vector<16x4xf32>, vector<16x4xf32>, vector<16x4xf32>, vector<16x4xf32>, vector<16x4xf32>, vector<16x4xf32> -> vector<16x32xf32>
    %c0_111 = arith.constant 0 : index
    %c0_112 = arith.constant 0 : index
    %c0_113 = arith.constant 0 : index
    %341 = vector.load %arg24[%c0_111, %c0_112, %c0_113] : memref<2x32x32xbf16, #tpu.memory_space<vmem>>, vector<1x32x32xbf16>
    %342 = vector.shape_cast %341 : vector<1x32x32xbf16> to vector<32x32xbf16>
    %343 = arith.truncf %340 : vector<16x32xf32> to vector<16x32xbf16>
    %cst_114 = arith.constant dense<0.000000e+00> : vector<16x32xf32>
    %344 = tpu.matmul %343, %342, %cst_114 {dimension_numbers = #tpu.dot_dimension_numbers<[1], [0], [0], [1], [0, 0, 1, 1], [], []>} : vector<16x32xbf16>, vector<32x32xbf16>, vector<16x32xf32> -> vector<16x32xf32>
    %c0_115 = arith.constant 0 : index
    %c0_116 = arith.constant 0 : index
    %c0_117 = arith.constant 0 : index
    %345 = vector.load %arg25[%c0_115, %c0_116, %c0_117] : memref<2x1x32xf32, #tpu.memory_space<vmem>>, vector<1x1x32xf32>
    %346 = vector.shape_cast %345 : vector<1x1x32xf32> to vector<1x32xf32>
    %347 = vector.broadcast %346 : vector<1x32xf32> to vector<16x32xf32>
    %348 = arith.addf %344, %347 : vector<16x32xf32>
    %349 = arith.addf %128, %348 : vector<16x32xf32>
    %c0_118 = arith.constant 0 : index
    %c0_119 = arith.constant 0 : index
    %c0_120 = arith.constant 0 : index
    %350 = vector.load %arg26[%c0_118, %c0_119, %c0_120] : memref<2x1x32xf32, #tpu.memory_space<vmem>>, vector<1x1x32xf32>
    %351 = vector.shape_cast %350 : vector<1x1x32xf32> to vector<1x32xf32>
    %c0_121 = arith.constant 0 : index
    %c0_122 = arith.constant 0 : index
    %c0_123 = arith.constant 0 : index
    %352 = vector.load %arg27[%c0_121, %c0_122, %c0_123] : memref<2x1x32xf32, #tpu.memory_space<vmem>>, vector<1x1x32xf32>
    %353 = vector.shape_cast %352 : vector<1x1x32xf32> to vector<1x32xf32>
    %cst_124 = arith.constant dense<0.000000e+00> : vector<16xf32>
    %354 = vector.multi_reduction <add>, %349, %cst_124 [1] : vector<16x32xf32> to vector<16xf32>
    %355 = vector.shape_cast %354 : vector<16xf32> to vector<16x1xf32>
    %cst_125 = arith.constant 3.200000e+01 : f32
    %356 = vector.broadcast %cst_125 : f32 to vector<16x1xf32>
    %357 = arith.divf %355, %356 : vector<16x1xf32>
    %358 = vector.broadcast %357 : vector<16x1xf32> to vector<16x32xf32>
    %359 = arith.subf %349, %358 : vector<16x32xf32>
    %360 = arith.mulf %359, %359 : vector<16x32xf32>
    %cst_126 = arith.constant dense<0.000000e+00> : vector<16xf32>
    %361 = vector.multi_reduction <add>, %360, %cst_126 [1] : vector<16x32xf32> to vector<16xf32>
    %362 = vector.shape_cast %361 : vector<16xf32> to vector<16x1xf32>
    %cst_127 = arith.constant 3.200000e+01 : f32
    %363 = vector.broadcast %cst_127 : f32 to vector<16x1xf32>
    %364 = arith.divf %362, %363 : vector<16x1xf32>
    %cst_128 = arith.constant 9.99999974E-6 : f32
    %365 = vector.broadcast %cst_128 : f32 to vector<16x1xf32>
    %366 = arith.addf %364, %365 : vector<16x1xf32>
    %367 = math.rsqrt %366 : vector<16x1xf32>
    %368 = vector.broadcast %367 : vector<16x1xf32> to vector<16x32xf32>
    %369 = arith.mulf %359, %368 : vector<16x32xf32>
    %370 = vector.broadcast %351 : vector<1x32xf32> to vector<16x32xf32>
    %371 = arith.mulf %369, %370 : vector<16x32xf32>
    %372 = vector.broadcast %353 : vector<1x32xf32> to vector<16x32xf32>
    %373 = arith.addf %371, %372 : vector<16x32xf32>
    %c0_129 = arith.constant 0 : index
    %c0_130 = arith.constant 0 : index
    %c0_131 = arith.constant 0 : index
    %374 = vector.load %arg28[%c0_129, %c0_130, %c0_131] : memref<2x32x64xbf16, #tpu.memory_space<vmem>>, vector<1x32x64xbf16>
    %375 = vector.shape_cast %374 : vector<1x32x64xbf16> to vector<32x64xbf16>
    %376 = arith.truncf %373 : vector<16x32xf32> to vector<16x32xbf16>
    %cst_132 = arith.constant dense<0.000000e+00> : vector<16x64xf32>
    %377 = tpu.matmul %376, %375, %cst_132 {dimension_numbers = #tpu.dot_dimension_numbers<[1], [0], [0], [1], [0, 0, 1, 1], [], []>} : vector<16x32xbf16>, vector<32x64xbf16>, vector<16x64xf32> -> vector<16x64xf32>
    %c0_133 = arith.constant 0 : index
    %c0_134 = arith.constant 0 : index
    %c0_135 = arith.constant 0 : index
    %378 = vector.load %arg29[%c0_133, %c0_134, %c0_135] : memref<2x1x64xf32, #tpu.memory_space<vmem>>, vector<1x1x64xf32>
    %379 = vector.shape_cast %378 : vector<1x1x64xf32> to vector<1x64xf32>
    %380 = vector.broadcast %379 : vector<1x64xf32> to vector<16x64xf32>
    %381 = arith.addf %377, %380 : vector<16x64xf32>
    %cst_136 = arith.constant 0.000000e+00 : f32
    %382 = vector.broadcast %cst_136 : f32 to vector<16x64xf32>
    %383 = arith.maximumf %381, %382 : vector<16x64xf32>
    %c0_137 = arith.constant 0 : index
    %c0_138 = arith.constant 0 : index
    %c0_139 = arith.constant 0 : index
    %384 = vector.load %arg30[%c0_137, %c0_138, %c0_139] : memref<2x64x32xbf16, #tpu.memory_space<vmem>>, vector<1x64x32xbf16>
    %385 = vector.shape_cast %384 : vector<1x64x32xbf16> to vector<64x32xbf16>
    %386 = arith.truncf %383 : vector<16x64xf32> to vector<16x64xbf16>
    %cst_140 = arith.constant dense<0.000000e+00> : vector<16x32xf32>
    %387 = tpu.matmul %386, %385, %cst_140 {dimension_numbers = #tpu.dot_dimension_numbers<[1], [0], [0], [1], [0, 0, 1, 1], [], []>} : vector<16x64xbf16>, vector<64x32xbf16>, vector<16x32xf32> -> vector<16x32xf32>
    %c0_141 = arith.constant 0 : index
    %c0_142 = arith.constant 0 : index
    %c0_143 = arith.constant 0 : index
    %388 = vector.load %arg31[%c0_141, %c0_142, %c0_143] : memref<2x1x32xf32, #tpu.memory_space<vmem>>, vector<1x1x32xf32>
    %389 = vector.shape_cast %388 : vector<1x1x32xf32> to vector<1x32xf32>
    %390 = vector.broadcast %389 : vector<1x32xf32> to vector<16x32xf32>
    %391 = arith.addf %387, %390 : vector<16x32xf32>
    %392 = arith.addf %373, %391 : vector<16x32xf32>
    %c0_144 = arith.constant 0 : index
    %c0_145 = arith.constant 0 : index
    %c0_146 = arith.constant 0 : index
    %393 = vector.load %arg32[%c0_144, %c0_145, %c0_146] : memref<2x1x32xf32, #tpu.memory_space<vmem>>, vector<1x1x32xf32>
    %394 = vector.shape_cast %393 : vector<1x1x32xf32> to vector<1x32xf32>
    %c0_147 = arith.constant 0 : index
    %c0_148 = arith.constant 0 : index
    %c0_149 = arith.constant 0 : index
    %395 = vector.load %arg33[%c0_147, %c0_148, %c0_149] : memref<2x1x32xf32, #tpu.memory_space<vmem>>, vector<1x1x32xf32>
    %396 = vector.shape_cast %395 : vector<1x1x32xf32> to vector<1x32xf32>
    %cst_150 = arith.constant dense<0.000000e+00> : vector<16xf32>
    %397 = vector.multi_reduction <add>, %392, %cst_150 [1] : vector<16x32xf32> to vector<16xf32>
    %398 = vector.shape_cast %397 : vector<16xf32> to vector<16x1xf32>
    %cst_151 = arith.constant 3.200000e+01 : f32
    %399 = vector.broadcast %cst_151 : f32 to vector<16x1xf32>
    %400 = arith.divf %398, %399 : vector<16x1xf32>
    %401 = vector.broadcast %400 : vector<16x1xf32> to vector<16x32xf32>
    %402 = arith.subf %392, %401 : vector<16x32xf32>
    %403 = arith.mulf %402, %402 : vector<16x32xf32>
    %cst_152 = arith.constant dense<0.000000e+00> : vector<16xf32>
    %404 = vector.multi_reduction <add>, %403, %cst_152 [1] : vector<16x32xf32> to vector<16xf32>
    %405 = vector.shape_cast %404 : vector<16xf32> to vector<16x1xf32>
    %cst_153 = arith.constant 3.200000e+01 : f32
    %406 = vector.broadcast %cst_153 : f32 to vector<16x1xf32>
    %407 = arith.divf %405, %406 : vector<16x1xf32>
    %cst_154 = arith.constant 9.99999974E-6 : f32
    %408 = vector.broadcast %cst_154 : f32 to vector<16x1xf32>
    %409 = arith.addf %407, %408 : vector<16x1xf32>
    %410 = math.rsqrt %409 : vector<16x1xf32>
    %411 = vector.broadcast %410 : vector<16x1xf32> to vector<16x32xf32>
    %412 = arith.mulf %402, %411 : vector<16x32xf32>
    %413 = vector.broadcast %394 : vector<1x32xf32> to vector<16x32xf32>
    %414 = arith.mulf %412, %413 : vector<16x32xf32>
    %415 = vector.broadcast %396 : vector<1x32xf32> to vector<16x32xf32>
    %416 = arith.addf %414, %415 : vector<16x32xf32>
    %c1 = arith.constant 1 : index
    %c0_155 = arith.constant 0 : index
    %c0_156 = arith.constant 0 : index
    %417 = vector.load %arg22[%c1, %c0_155, %c0_156] : memref<2x32x384xbf16, #tpu.memory_space<vmem>>, vector<1x32x384xbf16>
    %418 = vector.shape_cast %417 : vector<1x32x384xbf16> to vector<32x384xbf16>
    %419 = arith.truncf %416 : vector<16x32xf32> to vector<16x32xbf16>
    %cst_157 = arith.constant dense<0.000000e+00> : vector<16x384xf32>
    %420 = tpu.matmul %419, %418, %cst_157 {dimension_numbers = #tpu.dot_dimension_numbers<[1], [0], [0], [1], [0, 0, 1, 1], [], []>} : vector<16x32xbf16>, vector<32x384xbf16>, vector<16x384xf32> -> vector<16x384xf32>
    %c1_158 = arith.constant 1 : index
    %c0_159 = arith.constant 0 : index
    %c0_160 = arith.constant 0 : index
    %421 = vector.load %arg23[%c1_158, %c0_159, %c0_160] : memref<2x1x384xf32, #tpu.memory_space<vmem>>, vector<1x1x384xf32>
    %422 = vector.shape_cast %421 : vector<1x1x384xf32> to vector<1x384xf32>
    %423 = vector.broadcast %422 : vector<1x384xf32> to vector<16x384xf32>
    %424 = arith.addf %420, %423 : vector<16x384xf32>
    %425 = vector.extract_strided_slice %424 {offsets = [0, 0], sizes = [16, 32], strides = [1, 1]} : vector<16x384xf32> to vector<16x32xf32>
    %426 = vector.extract_strided_slice %424 {offsets = [0, 128], sizes = [16, 32], strides = [1, 1]} : vector<16x384xf32> to vector<16x32xf32>
    %427 = vector.extract_strided_slice %424 {offsets = [0, 256], sizes = [16, 32], strides = [1, 1]} : vector<16x384xf32> to vector<16x32xf32>
    %428 = vector.extract_strided_slice %425 {offsets = [0, 0], sizes = [16, 4], strides = [1, 1]} : vector<16x32xf32> to vector<16x4xf32>
    %429 = vector.shape_cast %428 : vector<16x4xf32> to vector<2x8x4xf32>
    %430 = arith.truncf %429 : vector<2x8x4xf32> to vector<2x8x4xbf16>
    %431 = vector.extract_strided_slice %426 {offsets = [0, 0], sizes = [16, 4], strides = [1, 1]} : vector<16x32xf32> to vector<16x4xf32>
    %432 = vector.shape_cast %431 : vector<16x4xf32> to vector<2x8x4xf32>
    %433 = arith.truncf %432 : vector<2x8x4xf32> to vector<2x8x4xbf16>
    %434 = vector.extract_strided_slice %427 {offsets = [0, 0], sizes = [16, 4], strides = [1, 1]} : vector<16x32xf32> to vector<16x4xf32>
    %435 = vector.shape_cast %434 : vector<16x4xf32> to vector<2x8x4xf32>
    %436 = arith.truncf %435 : vector<2x8x4xf32> to vector<2x8x4xbf16>
    "tpu.trace_start"() <{level = 10 : i32, message = "bqd,bkd->bqk"}> : () -> ()
    %cst_161 = arith.constant dense<0.000000e+00> : vector<2x8x8xf32>
    %437 = tpu.matmul %430, %433, %cst_161 {dimension_numbers = #tpu.dot_dimension_numbers<[2], [2], [1], [1], [0, 0, 0, 1, 1, 1], [0], [0]>} : vector<2x8x4xbf16>, vector<2x8x4xbf16>, vector<2x8x8xf32> -> vector<2x8x8xf32>
    "tpu.trace_stop"() : () -> ()
    %cst_162 = arith.constant 5.000000e-01 : f32
    %438 = vector.broadcast %cst_162 : f32 to vector<2x8x8xf32>
    %439 = arith.mulf %437, %438 : vector<2x8x8xf32>
    %cst_163 = arith.constant dense<0xFF800000> : vector<2x8xf32>
    %440 = vector.multi_reduction <maximumf>, %439, %cst_163 [2] : vector<2x8x8xf32> to vector<2x8xf32>
    %441 = vector.shape_cast %440 : vector<2x8xf32> to vector<2x8x1xf32>
    %442 = vector.broadcast %441 : vector<2x8x1xf32> to vector<2x8x8xf32>
    %443 = arith.subf %439, %442 : vector<2x8x8xf32>
    %444 = math.exp %443 : vector<2x8x8xf32>
    %cst_164 = arith.constant dense<0.000000e+00> : vector<2x8xf32>
    %445 = vector.multi_reduction <add>, %444, %cst_164 [2] : vector<2x8x8xf32> to vector<2x8xf32>
    %446 = vector.shape_cast %445 : vector<2x8xf32> to vector<2x8x1xf32>
    %447 = tpu.reciprocal %446 {approx = true} : vector<2x8x1xf32> -> vector<2x8x1xf32>
    %448 = vector.broadcast %447 : vector<2x8x1xf32> to vector<2x8x8xf32>
    %449 = arith.mulf %444, %448 : vector<2x8x8xf32>
    %450 = arith.truncf %449 : vector<2x8x8xf32> to vector<2x8x8xbf16>
    "tpu.trace_start"() <{level = 10 : i32, message = "bqk,bkd->bqd"}> : () -> ()
    %cst_165 = arith.constant dense<0.000000e+00> : vector<2x8x4xf32>
    %451 = tpu.matmul %450, %436, %cst_165 {dimension_numbers = #tpu.dot_dimension_numbers<[2], [1], [1], [2], [0, 0, 0, 1, 1, 2], [0], [0]>} : vector<2x8x8xbf16>, vector<2x8x4xbf16>, vector<2x8x4xf32> -> vector<2x8x4xf32>
    "tpu.trace_stop"() : () -> ()
    %452 = vector.shape_cast %451 : vector<2x8x4xf32> to vector<16x4xf32>
    %453 = vector.extract_strided_slice %425 {offsets = [0, 4], sizes = [16, 4], strides = [1, 1]} : vector<16x32xf32> to vector<16x4xf32>
    %454 = vector.shape_cast %453 : vector<16x4xf32> to vector<2x8x4xf32>
    %455 = arith.truncf %454 : vector<2x8x4xf32> to vector<2x8x4xbf16>
    %456 = vector.extract_strided_slice %426 {offsets = [0, 4], sizes = [16, 4], strides = [1, 1]} : vector<16x32xf32> to vector<16x4xf32>
    %457 = vector.shape_cast %456 : vector<16x4xf32> to vector<2x8x4xf32>
    %458 = arith.truncf %457 : vector<2x8x4xf32> to vector<2x8x4xbf16>
    %459 = vector.extract_strided_slice %427 {offsets = [0, 4], sizes = [16, 4], strides = [1, 1]} : vector<16x32xf32> to vector<16x4xf32>
    %460 = vector.shape_cast %459 : vector<16x4xf32> to vector<2x8x4xf32>
    %461 = arith.truncf %460 : vector<2x8x4xf32> to vector<2x8x4xbf16>
    "tpu.trace_start"() <{level = 10 : i32, message = "bqd,bkd->bqk"}> : () -> ()
    %cst_166 = arith.constant dense<0.000000e+00> : vector<2x8x8xf32>
    %462 = tpu.matmul %455, %458, %cst_166 {dimension_numbers = #tpu.dot_dimension_numbers<[2], [2], [1], [1], [0, 0, 0, 1, 1, 1], [0], [0]>} : vector<2x8x4xbf16>, vector<2x8x4xbf16>, vector<2x8x8xf32> -> vector<2x8x8xf32>
    "tpu.trace_stop"() : () -> ()
    %cst_167 = arith.constant 5.000000e-01 : f32
    %463 = vector.broadcast %cst_167 : f32 to vector<2x8x8xf32>
    %464 = arith.mulf %462, %463 : vector<2x8x8xf32>
    %cst_168 = arith.constant dense<0xFF800000> : vector<2x8xf32>
    %465 = vector.multi_reduction <maximumf>, %464, %cst_168 [2] : vector<2x8x8xf32> to vector<2x8xf32>
    %466 = vector.shape_cast %465 : vector<2x8xf32> to vector<2x8x1xf32>
    %467 = vector.broadcast %466 : vector<2x8x1xf32> to vector<2x8x8xf32>
    %468 = arith.subf %464, %467 : vector<2x8x8xf32>
    %469 = math.exp %468 : vector<2x8x8xf32>
    %cst_169 = arith.constant dense<0.000000e+00> : vector<2x8xf32>
    %470 = vector.multi_reduction <add>, %469, %cst_169 [2] : vector<2x8x8xf32> to vector<2x8xf32>
    %471 = vector.shape_cast %470 : vector<2x8xf32> to vector<2x8x1xf32>
    %472 = tpu.reciprocal %471 {approx = true} : vector<2x8x1xf32> -> vector<2x8x1xf32>
    %473 = vector.broadcast %472 : vector<2x8x1xf32> to vector<2x8x8xf32>
    %474 = arith.mulf %469, %473 : vector<2x8x8xf32>
    %475 = arith.truncf %474 : vector<2x8x8xf32> to vector<2x8x8xbf16>
    "tpu.trace_start"() <{level = 10 : i32, message = "bqk,bkd->bqd"}> : () -> ()
    %cst_170 = arith.constant dense<0.000000e+00> : vector<2x8x4xf32>
    %476 = tpu.matmul %475, %461, %cst_170 {dimension_numbers = #tpu.dot_dimension_numbers<[2], [1], [1], [2], [0, 0, 0, 1, 1, 2], [0], [0]>} : vector<2x8x8xbf16>, vector<2x8x4xbf16>, vector<2x8x4xf32> -> vector<2x8x4xf32>
    "tpu.trace_stop"() : () -> ()
    %477 = vector.shape_cast %476 : vector<2x8x4xf32> to vector<16x4xf32>
    %478 = vector.extract_strided_slice %425 {offsets = [0, 8], sizes = [16, 4], strides = [1, 1]} : vector<16x32xf32> to vector<16x4xf32>
    %479 = vector.shape_cast %478 : vector<16x4xf32> to vector<2x8x4xf32>
    %480 = arith.truncf %479 : vector<2x8x4xf32> to vector<2x8x4xbf16>
    %481 = vector.extract_strided_slice %426 {offsets = [0, 8], sizes = [16, 4], strides = [1, 1]} : vector<16x32xf32> to vector<16x4xf32>
    %482 = vector.shape_cast %481 : vector<16x4xf32> to vector<2x8x4xf32>
    %483 = arith.truncf %482 : vector<2x8x4xf32> to vector<2x8x4xbf16>
    %484 = vector.extract_strided_slice %427 {offsets = [0, 8], sizes = [16, 4], strides = [1, 1]} : vector<16x32xf32> to vector<16x4xf32>
    %485 = vector.shape_cast %484 : vector<16x4xf32> to vector<2x8x4xf32>
    %486 = arith.truncf %485 : vector<2x8x4xf32> to vector<2x8x4xbf16>
    "tpu.trace_start"() <{level = 10 : i32, message = "bqd,bkd->bqk"}> : () -> ()
    %cst_171 = arith.constant dense<0.000000e+00> : vector<2x8x8xf32>
    %487 = tpu.matmul %480, %483, %cst_171 {dimension_numbers = #tpu.dot_dimension_numbers<[2], [2], [1], [1], [0, 0, 0, 1, 1, 1], [0], [0]>} : vector<2x8x4xbf16>, vector<2x8x4xbf16>, vector<2x8x8xf32> -> vector<2x8x8xf32>
    "tpu.trace_stop"() : () -> ()
    %cst_172 = arith.constant 5.000000e-01 : f32
    %488 = vector.broadcast %cst_172 : f32 to vector<2x8x8xf32>
    %489 = arith.mulf %487, %488 : vector<2x8x8xf32>
    %cst_173 = arith.constant dense<0xFF800000> : vector<2x8xf32>
    %490 = vector.multi_reduction <maximumf>, %489, %cst_173 [2] : vector<2x8x8xf32> to vector<2x8xf32>
    %491 = vector.shape_cast %490 : vector<2x8xf32> to vector<2x8x1xf32>
    %492 = vector.broadcast %491 : vector<2x8x1xf32> to vector<2x8x8xf32>
    %493 = arith.subf %489, %492 : vector<2x8x8xf32>
    %494 = math.exp %493 : vector<2x8x8xf32>
    %cst_174 = arith.constant dense<0.000000e+00> : vector<2x8xf32>
    %495 = vector.multi_reduction <add>, %494, %cst_174 [2] : vector<2x8x8xf32> to vector<2x8xf32>
    %496 = vector.shape_cast %495 : vector<2x8xf32> to vector<2x8x1xf32>
    %497 = tpu.reciprocal %496 {approx = true} : vector<2x8x1xf32> -> vector<2x8x1xf32>
    %498 = vector.broadcast %497 : vector<2x8x1xf32> to vector<2x8x8xf32>
    %499 = arith.mulf %494, %498 : vector<2x8x8xf32>
    %500 = arith.truncf %499 : vector<2x8x8xf32> to vector<2x8x8xbf16>
    "tpu.trace_start"() <{level = 10 : i32, message = "bqk,bkd->bqd"}> : () -> ()
    %cst_175 = arith.constant dense<0.000000e+00> : vector<2x8x4xf32>
    %501 = tpu.matmul %500, %486, %cst_175 {dimension_numbers = #tpu.dot_dimension_numbers<[2], [1], [1], [2], [0, 0, 0, 1, 1, 2], [0], [0]>} : vector<2x8x8xbf16>, vector<2x8x4xbf16>, vector<2x8x4xf32> -> vector<2x8x4xf32>
    "tpu.trace_stop"() : () -> ()
    %502 = vector.shape_cast %501 : vector<2x8x4xf32> to vector<16x4xf32>
    %503 = vector.extract_strided_slice %425 {offsets = [0, 12], sizes = [16, 4], strides = [1, 1]} : vector<16x32xf32> to vector<16x4xf32>
    %504 = vector.shape_cast %503 : vector<16x4xf32> to vector<2x8x4xf32>
    %505 = arith.truncf %504 : vector<2x8x4xf32> to vector<2x8x4xbf16>
    %506 = vector.extract_strided_slice %426 {offsets = [0, 12], sizes = [16, 4], strides = [1, 1]} : vector<16x32xf32> to vector<16x4xf32>
    %507 = vector.shape_cast %506 : vector<16x4xf32> to vector<2x8x4xf32>
    %508 = arith.truncf %507 : vector<2x8x4xf32> to vector<2x8x4xbf16>
    %509 = vector.extract_strided_slice %427 {offsets = [0, 12], sizes = [16, 4], strides = [1, 1]} : vector<16x32xf32> to vector<16x4xf32>
    %510 = vector.shape_cast %509 : vector<16x4xf32> to vector<2x8x4xf32>
    %511 = arith.truncf %510 : vector<2x8x4xf32> to vector<2x8x4xbf16>
    "tpu.trace_start"() <{level = 10 : i32, message = "bqd,bkd->bqk"}> : () -> ()
    %cst_176 = arith.constant dense<0.000000e+00> : vector<2x8x8xf32>
    %512 = tpu.matmul %505, %508, %cst_176 {dimension_numbers = #tpu.dot_dimension_numbers<[2], [2], [1], [1], [0, 0, 0, 1, 1, 1], [0], [0]>} : vector<2x8x4xbf16>, vector<2x8x4xbf16>, vector<2x8x8xf32> -> vector<2x8x8xf32>
    "tpu.trace_stop"() : () -> ()
    %cst_177 = arith.constant 5.000000e-01 : f32
    %513 = vector.broadcast %cst_177 : f32 to vector<2x8x8xf32>
    %514 = arith.mulf %512, %513 : vector<2x8x8xf32>
    %cst_178 = arith.constant dense<0xFF800000> : vector<2x8xf32>
    %515 = vector.multi_reduction <maximumf>, %514, %cst_178 [2] : vector<2x8x8xf32> to vector<2x8xf32>
    %516 = vector.shape_cast %515 : vector<2x8xf32> to vector<2x8x1xf32>
    %517 = vector.broadcast %516 : vector<2x8x1xf32> to vector<2x8x8xf32>
    %518 = arith.subf %514, %517 : vector<2x8x8xf32>
    %519 = math.exp %518 : vector<2x8x8xf32>
    %cst_179 = arith.constant dense<0.000000e+00> : vector<2x8xf32>
    %520 = vector.multi_reduction <add>, %519, %cst_179 [2] : vector<2x8x8xf32> to vector<2x8xf32>
    %521 = vector.shape_cast %520 : vector<2x8xf32> to vector<2x8x1xf32>
    %522 = tpu.reciprocal %521 {approx = true} : vector<2x8x1xf32> -> vector<2x8x1xf32>
    %523 = vector.broadcast %522 : vector<2x8x1xf32> to vector<2x8x8xf32>
    %524 = arith.mulf %519, %523 : vector<2x8x8xf32>
    %525 = arith.truncf %524 : vector<2x8x8xf32> to vector<2x8x8xbf16>
    "tpu.trace_start"() <{level = 10 : i32, message = "bqk,bkd->bqd"}> : () -> ()
    %cst_180 = arith.constant dense<0.000000e+00> : vector<2x8x4xf32>
    %526 = tpu.matmul %525, %511, %cst_180 {dimension_numbers = #tpu.dot_dimension_numbers<[2], [1], [1], [2], [0, 0, 0, 1, 1, 2], [0], [0]>} : vector<2x8x8xbf16>, vector<2x8x4xbf16>, vector<2x8x4xf32> -> vector<2x8x4xf32>
    "tpu.trace_stop"() : () -> ()
    %527 = vector.shape_cast %526 : vector<2x8x4xf32> to vector<16x4xf32>
    %528 = vector.extract_strided_slice %425 {offsets = [0, 16], sizes = [16, 4], strides = [1, 1]} : vector<16x32xf32> to vector<16x4xf32>
    %529 = vector.shape_cast %528 : vector<16x4xf32> to vector<2x8x4xf32>
    %530 = arith.truncf %529 : vector<2x8x4xf32> to vector<2x8x4xbf16>
    %531 = vector.extract_strided_slice %426 {offsets = [0, 16], sizes = [16, 4], strides = [1, 1]} : vector<16x32xf32> to vector<16x4xf32>
    %532 = vector.shape_cast %531 : vector<16x4xf32> to vector<2x8x4xf32>
    %533 = arith.truncf %532 : vector<2x8x4xf32> to vector<2x8x4xbf16>
    %534 = vector.extract_strided_slice %427 {offsets = [0, 16], sizes = [16, 4], strides = [1, 1]} : vector<16x32xf32> to vector<16x4xf32>
    %535 = vector.shape_cast %534 : vector<16x4xf32> to vector<2x8x4xf32>
    %536 = arith.truncf %535 : vector<2x8x4xf32> to vector<2x8x4xbf16>
    "tpu.trace_start"() <{level = 10 : i32, message = "bqd,bkd->bqk"}> : () -> ()
    %cst_181 = arith.constant dense<0.000000e+00> : vector<2x8x8xf32>
    %537 = tpu.matmul %530, %533, %cst_181 {dimension_numbers = #tpu.dot_dimension_numbers<[2], [2], [1], [1], [0, 0, 0, 1, 1, 1], [0], [0]>} : vector<2x8x4xbf16>, vector<2x8x4xbf16>, vector<2x8x8xf32> -> vector<2x8x8xf32>
    "tpu.trace_stop"() : () -> ()
    %cst_182 = arith.constant 5.000000e-01 : f32
    %538 = vector.broadcast %cst_182 : f32 to vector<2x8x8xf32>
    %539 = arith.mulf %537, %538 : vector<2x8x8xf32>
    %cst_183 = arith.constant dense<0xFF800000> : vector<2x8xf32>
    %540 = vector.multi_reduction <maximumf>, %539, %cst_183 [2] : vector<2x8x8xf32> to vector<2x8xf32>
    %541 = vector.shape_cast %540 : vector<2x8xf32> to vector<2x8x1xf32>
    %542 = vector.broadcast %541 : vector<2x8x1xf32> to vector<2x8x8xf32>
    %543 = arith.subf %539, %542 : vector<2x8x8xf32>
    %544 = math.exp %543 : vector<2x8x8xf32>
    %cst_184 = arith.constant dense<0.000000e+00> : vector<2x8xf32>
    %545 = vector.multi_reduction <add>, %544, %cst_184 [2] : vector<2x8x8xf32> to vector<2x8xf32>
    %546 = vector.shape_cast %545 : vector<2x8xf32> to vector<2x8x1xf32>
    %547 = tpu.reciprocal %546 {approx = true} : vector<2x8x1xf32> -> vector<2x8x1xf32>
    %548 = vector.broadcast %547 : vector<2x8x1xf32> to vector<2x8x8xf32>
    %549 = arith.mulf %544, %548 : vector<2x8x8xf32>
    %550 = arith.truncf %549 : vector<2x8x8xf32> to vector<2x8x8xbf16>
    "tpu.trace_start"() <{level = 10 : i32, message = "bqk,bkd->bqd"}> : () -> ()
    %cst_185 = arith.constant dense<0.000000e+00> : vector<2x8x4xf32>
    %551 = tpu.matmul %550, %536, %cst_185 {dimension_numbers = #tpu.dot_dimension_numbers<[2], [1], [1], [2], [0, 0, 0, 1, 1, 2], [0], [0]>} : vector<2x8x8xbf16>, vector<2x8x4xbf16>, vector<2x8x4xf32> -> vector<2x8x4xf32>
    "tpu.trace_stop"() : () -> ()
    %552 = vector.shape_cast %551 : vector<2x8x4xf32> to vector<16x4xf32>
    %553 = vector.extract_strided_slice %425 {offsets = [0, 20], sizes = [16, 4], strides = [1, 1]} : vector<16x32xf32> to vector<16x4xf32>
    %554 = vector.shape_cast %553 : vector<16x4xf32> to vector<2x8x4xf32>
    %555 = arith.truncf %554 : vector<2x8x4xf32> to vector<2x8x4xbf16>
    %556 = vector.extract_strided_slice %426 {offsets = [0, 20], sizes = [16, 4], strides = [1, 1]} : vector<16x32xf32> to vector<16x4xf32>
    %557 = vector.shape_cast %556 : vector<16x4xf32> to vector<2x8x4xf32>
    %558 = arith.truncf %557 : vector<2x8x4xf32> to vector<2x8x4xbf16>
    %559 = vector.extract_strided_slice %427 {offsets = [0, 20], sizes = [16, 4], strides = [1, 1]} : vector<16x32xf32> to vector<16x4xf32>
    %560 = vector.shape_cast %559 : vector<16x4xf32> to vector<2x8x4xf32>
    %561 = arith.truncf %560 : vector<2x8x4xf32> to vector<2x8x4xbf16>
    "tpu.trace_start"() <{level = 10 : i32, message = "bqd,bkd->bqk"}> : () -> ()
    %cst_186 = arith.constant dense<0.000000e+00> : vector<2x8x8xf32>
    %562 = tpu.matmul %555, %558, %cst_186 {dimension_numbers = #tpu.dot_dimension_numbers<[2], [2], [1], [1], [0, 0, 0, 1, 1, 1], [0], [0]>} : vector<2x8x4xbf16>, vector<2x8x4xbf16>, vector<2x8x8xf32> -> vector<2x8x8xf32>
    "tpu.trace_stop"() : () -> ()
    %cst_187 = arith.constant 5.000000e-01 : f32
    %563 = vector.broadcast %cst_187 : f32 to vector<2x8x8xf32>
    %564 = arith.mulf %562, %563 : vector<2x8x8xf32>
    %cst_188 = arith.constant dense<0xFF800000> : vector<2x8xf32>
    %565 = vector.multi_reduction <maximumf>, %564, %cst_188 [2] : vector<2x8x8xf32> to vector<2x8xf32>
    %566 = vector.shape_cast %565 : vector<2x8xf32> to vector<2x8x1xf32>
    %567 = vector.broadcast %566 : vector<2x8x1xf32> to vector<2x8x8xf32>
    %568 = arith.subf %564, %567 : vector<2x8x8xf32>
    %569 = math.exp %568 : vector<2x8x8xf32>
    %cst_189 = arith.constant dense<0.000000e+00> : vector<2x8xf32>
    %570 = vector.multi_reduction <add>, %569, %cst_189 [2] : vector<2x8x8xf32> to vector<2x8xf32>
    %571 = vector.shape_cast %570 : vector<2x8xf32> to vector<2x8x1xf32>
    %572 = tpu.reciprocal %571 {approx = true} : vector<2x8x1xf32> -> vector<2x8x1xf32>
    %573 = vector.broadcast %572 : vector<2x8x1xf32> to vector<2x8x8xf32>
    %574 = arith.mulf %569, %573 : vector<2x8x8xf32>
    %575 = arith.truncf %574 : vector<2x8x8xf32> to vector<2x8x8xbf16>
    "tpu.trace_start"() <{level = 10 : i32, message = "bqk,bkd->bqd"}> : () -> ()
    %cst_190 = arith.constant dense<0.000000e+00> : vector<2x8x4xf32>
    %576 = tpu.matmul %575, %561, %cst_190 {dimension_numbers = #tpu.dot_dimension_numbers<[2], [1], [1], [2], [0, 0, 0, 1, 1, 2], [0], [0]>} : vector<2x8x8xbf16>, vector<2x8x4xbf16>, vector<2x8x4xf32> -> vector<2x8x4xf32>
    "tpu.trace_stop"() : () -> ()
    %577 = vector.shape_cast %576 : vector<2x8x4xf32> to vector<16x4xf32>
    %578 = vector.extract_strided_slice %425 {offsets = [0, 24], sizes = [16, 4], strides = [1, 1]} : vector<16x32xf32> to vector<16x4xf32>
    %579 = vector.shape_cast %578 : vector<16x4xf32> to vector<2x8x4xf32>
    %580 = arith.truncf %579 : vector<2x8x4xf32> to vector<2x8x4xbf16>
    %581 = vector.extract_strided_slice %426 {offsets = [0, 24], sizes = [16, 4], strides = [1, 1]} : vector<16x32xf32> to vector<16x4xf32>
    %582 = vector.shape_cast %581 : vector<16x4xf32> to vector<2x8x4xf32>
    %583 = arith.truncf %582 : vector<2x8x4xf32> to vector<2x8x4xbf16>
    %584 = vector.extract_strided_slice %427 {offsets = [0, 24], sizes = [16, 4], strides = [1, 1]} : vector<16x32xf32> to vector<16x4xf32>
    %585 = vector.shape_cast %584 : vector<16x4xf32> to vector<2x8x4xf32>
    %586 = arith.truncf %585 : vector<2x8x4xf32> to vector<2x8x4xbf16>
    "tpu.trace_start"() <{level = 10 : i32, message = "bqd,bkd->bqk"}> : () -> ()
    %cst_191 = arith.constant dense<0.000000e+00> : vector<2x8x8xf32>
    %587 = tpu.matmul %580, %583, %cst_191 {dimension_numbers = #tpu.dot_dimension_numbers<[2], [2], [1], [1], [0, 0, 0, 1, 1, 1], [0], [0]>} : vector<2x8x4xbf16>, vector<2x8x4xbf16>, vector<2x8x8xf32> -> vector<2x8x8xf32>
    "tpu.trace_stop"() : () -> ()
    %cst_192 = arith.constant 5.000000e-01 : f32
    %588 = vector.broadcast %cst_192 : f32 to vector<2x8x8xf32>
    %589 = arith.mulf %587, %588 : vector<2x8x8xf32>
    %cst_193 = arith.constant dense<0xFF800000> : vector<2x8xf32>
    %590 = vector.multi_reduction <maximumf>, %589, %cst_193 [2] : vector<2x8x8xf32> to vector<2x8xf32>
    %591 = vector.shape_cast %590 : vector<2x8xf32> to vector<2x8x1xf32>
    %592 = vector.broadcast %591 : vector<2x8x1xf32> to vector<2x8x8xf32>
    %593 = arith.subf %589, %592 : vector<2x8x8xf32>
    %594 = math.exp %593 : vector<2x8x8xf32>
    %cst_194 = arith.constant dense<0.000000e+00> : vector<2x8xf32>
    %595 = vector.multi_reduction <add>, %594, %cst_194 [2] : vector<2x8x8xf32> to vector<2x8xf32>
    %596 = vector.shape_cast %595 : vector<2x8xf32> to vector<2x8x1xf32>
    %597 = tpu.reciprocal %596 {approx = true} : vector<2x8x1xf32> -> vector<2x8x1xf32>
    %598 = vector.broadcast %597 : vector<2x8x1xf32> to vector<2x8x8xf32>
    %599 = arith.mulf %594, %598 : vector<2x8x8xf32>
    %600 = arith.truncf %599 : vector<2x8x8xf32> to vector<2x8x8xbf16>
    "tpu.trace_start"() <{level = 10 : i32, message = "bqk,bkd->bqd"}> : () -> ()
    %cst_195 = arith.constant dense<0.000000e+00> : vector<2x8x4xf32>
    %601 = tpu.matmul %600, %586, %cst_195 {dimension_numbers = #tpu.dot_dimension_numbers<[2], [1], [1], [2], [0, 0, 0, 1, 1, 2], [0], [0]>} : vector<2x8x8xbf16>, vector<2x8x4xbf16>, vector<2x8x4xf32> -> vector<2x8x4xf32>
    "tpu.trace_stop"() : () -> ()
    %602 = vector.shape_cast %601 : vector<2x8x4xf32> to vector<16x4xf32>
    %603 = vector.extract_strided_slice %425 {offsets = [0, 28], sizes = [16, 4], strides = [1, 1]} : vector<16x32xf32> to vector<16x4xf32>
    %604 = vector.shape_cast %603 : vector<16x4xf32> to vector<2x8x4xf32>
    %605 = arith.truncf %604 : vector<2x8x4xf32> to vector<2x8x4xbf16>
    %606 = vector.extract_strided_slice %426 {offsets = [0, 28], sizes = [16, 4], strides = [1, 1]} : vector<16x32xf32> to vector<16x4xf32>
    %607 = vector.shape_cast %606 : vector<16x4xf32> to vector<2x8x4xf32>
    %608 = arith.truncf %607 : vector<2x8x4xf32> to vector<2x8x4xbf16>
    %609 = vector.extract_strided_slice %427 {offsets = [0, 28], sizes = [16, 4], strides = [1, 1]} : vector<16x32xf32> to vector<16x4xf32>
    %610 = vector.shape_cast %609 : vector<16x4xf32> to vector<2x8x4xf32>
    %611 = arith.truncf %610 : vector<2x8x4xf32> to vector<2x8x4xbf16>
    "tpu.trace_start"() <{level = 10 : i32, message = "bqd,bkd->bqk"}> : () -> ()
    %cst_196 = arith.constant dense<0.000000e+00> : vector<2x8x8xf32>
    %612 = tpu.matmul %605, %608, %cst_196 {dimension_numbers = #tpu.dot_dimension_numbers<[2], [2], [1], [1], [0, 0, 0, 1, 1, 1], [0], [0]>} : vector<2x8x4xbf16>, vector<2x8x4xbf16>, vector<2x8x8xf32> -> vector<2x8x8xf32>
    "tpu.trace_stop"() : () -> ()
    %cst_197 = arith.constant 5.000000e-01 : f32
    %613 = vector.broadcast %cst_197 : f32 to vector<2x8x8xf32>
    %614 = arith.mulf %612, %613 : vector<2x8x8xf32>
    %cst_198 = arith.constant dense<0xFF800000> : vector<2x8xf32>
    %615 = vector.multi_reduction <maximumf>, %614, %cst_198 [2] : vector<2x8x8xf32> to vector<2x8xf32>
    %616 = vector.shape_cast %615 : vector<2x8xf32> to vector<2x8x1xf32>
    %617 = vector.broadcast %616 : vector<2x8x1xf32> to vector<2x8x8xf32>
    %618 = arith.subf %614, %617 : vector<2x8x8xf32>
    %619 = math.exp %618 : vector<2x8x8xf32>
    %cst_199 = arith.constant dense<0.000000e+00> : vector<2x8xf32>
    %620 = vector.multi_reduction <add>, %619, %cst_199 [2] : vector<2x8x8xf32> to vector<2x8xf32>
    %621 = vector.shape_cast %620 : vector<2x8xf32> to vector<2x8x1xf32>
    %622 = tpu.reciprocal %621 {approx = true} : vector<2x8x1xf32> -> vector<2x8x1xf32>
    %623 = vector.broadcast %622 : vector<2x8x1xf32> to vector<2x8x8xf32>
    %624 = arith.mulf %619, %623 : vector<2x8x8xf32>
    %625 = arith.truncf %624 : vector<2x8x8xf32> to vector<2x8x8xbf16>
    "tpu.trace_start"() <{level = 10 : i32, message = "bqk,bkd->bqd"}> : () -> ()
    %cst_200 = arith.constant dense<0.000000e+00> : vector<2x8x4xf32>
    %626 = tpu.matmul %625, %611, %cst_200 {dimension_numbers = #tpu.dot_dimension_numbers<[2], [1], [1], [2], [0, 0, 0, 1, 1, 2], [0], [0]>} : vector<2x8x8xbf16>, vector<2x8x4xbf16>, vector<2x8x4xf32> -> vector<2x8x4xf32>
    "tpu.trace_stop"() : () -> ()
    %627 = vector.shape_cast %626 : vector<2x8x4xf32> to vector<16x4xf32>
    %628 = tpu.concatenate %452, %477, %502, %527, %552, %577, %602, %627 in 1 : vector<16x4xf32>, vector<16x4xf32>, vector<16x4xf32>, vector<16x4xf32>, vector<16x4xf32>, vector<16x4xf32>, vector<16x4xf32>, vector<16x4xf32> -> vector<16x32xf32>
    %c1_201 = arith.constant 1 : index
    %c0_202 = arith.constant 0 : index
    %c0_203 = arith.constant 0 : index
    %629 = vector.load %arg24[%c1_201, %c0_202, %c0_203] : memref<2x32x32xbf16, #tpu.memory_space<vmem>>, vector<1x32x32xbf16>
    %630 = vector.shape_cast %629 : vector<1x32x32xbf16> to vector<32x32xbf16>
    %631 = arith.truncf %628 : vector<16x32xf32> to vector<16x32xbf16>
    %cst_204 = arith.constant dense<0.000000e+00> : vector<16x32xf32>
    %632 = tpu.matmul %631, %630, %cst_204 {dimension_numbers = #tpu.dot_dimension_numbers<[1], [0], [0], [1], [0, 0, 1, 1], [], []>} : vector<16x32xbf16>, vector<32x32xbf16>, vector<16x32xf32> -> vector<16x32xf32>
    %c1_205 = arith.constant 1 : index
    %c0_206 = arith.constant 0 : index
    %c0_207 = arith.constant 0 : index
    %633 = vector.load %arg25[%c1_205, %c0_206, %c0_207] : memref<2x1x32xf32, #tpu.memory_space<vmem>>, vector<1x1x32xf32>
    %634 = vector.shape_cast %633 : vector<1x1x32xf32> to vector<1x32xf32>
    %635 = vector.broadcast %634 : vector<1x32xf32> to vector<16x32xf32>
    %636 = arith.addf %632, %635 : vector<16x32xf32>
    %637 = arith.addf %416, %636 : vector<16x32xf32>
    %c1_208 = arith.constant 1 : index
    %c0_209 = arith.constant 0 : index
    %c0_210 = arith.constant 0 : index
    %638 = vector.load %arg26[%c1_208, %c0_209, %c0_210] : memref<2x1x32xf32, #tpu.memory_space<vmem>>, vector<1x1x32xf32>
    %639 = vector.shape_cast %638 : vector<1x1x32xf32> to vector<1x32xf32>
    %c1_211 = arith.constant 1 : index
    %c0_212 = arith.constant 0 : index
    %c0_213 = arith.constant 0 : index
    %640 = vector.load %arg27[%c1_211, %c0_212, %c0_213] : memref<2x1x32xf32, #tpu.memory_space<vmem>>, vector<1x1x32xf32>
    %641 = vector.shape_cast %640 : vector<1x1x32xf32> to vector<1x32xf32>
    %cst_214 = arith.constant dense<0.000000e+00> : vector<16xf32>
    %642 = vector.multi_reduction <add>, %637, %cst_214 [1] : vector<16x32xf32> to vector<16xf32>
    %643 = vector.shape_cast %642 : vector<16xf32> to vector<16x1xf32>
    %cst_215 = arith.constant 3.200000e+01 : f32
    %644 = vector.broadcast %cst_215 : f32 to vector<16x1xf32>
    %645 = arith.divf %643, %644 : vector<16x1xf32>
    %646 = vector.broadcast %645 : vector<16x1xf32> to vector<16x32xf32>
    %647 = arith.subf %637, %646 : vector<16x32xf32>
    %648 = arith.mulf %647, %647 : vector<16x32xf32>
    %cst_216 = arith.constant dense<0.000000e+00> : vector<16xf32>
    %649 = vector.multi_reduction <add>, %648, %cst_216 [1] : vector<16x32xf32> to vector<16xf32>
    %650 = vector.shape_cast %649 : vector<16xf32> to vector<16x1xf32>
    %cst_217 = arith.constant 3.200000e+01 : f32
    %651 = vector.broadcast %cst_217 : f32 to vector<16x1xf32>
    %652 = arith.divf %650, %651 : vector<16x1xf32>
    %cst_218 = arith.constant 9.99999974E-6 : f32
    %653 = vector.broadcast %cst_218 : f32 to vector<16x1xf32>
    %654 = arith.addf %652, %653 : vector<16x1xf32>
    %655 = math.rsqrt %654 : vector<16x1xf32>
    %656 = vector.broadcast %655 : vector<16x1xf32> to vector<16x32xf32>
    %657 = arith.mulf %647, %656 : vector<16x32xf32>
    %658 = vector.broadcast %639 : vector<1x32xf32> to vector<16x32xf32>
    %659 = arith.mulf %657, %658 : vector<16x32xf32>
    %660 = vector.broadcast %641 : vector<1x32xf32> to vector<16x32xf32>
    %661 = arith.addf %659, %660 : vector<16x32xf32>
    %c1_219 = arith.constant 1 : index
    %c0_220 = arith.constant 0 : index
    %c0_221 = arith.constant 0 : index
    %662 = vector.load %arg28[%c1_219, %c0_220, %c0_221] : memref<2x32x64xbf16, #tpu.memory_space<vmem>>, vector<1x32x64xbf16>
    %663 = vector.shape_cast %662 : vector<1x32x64xbf16> to vector<32x64xbf16>
    %664 = arith.truncf %661 : vector<16x32xf32> to vector<16x32xbf16>
    %cst_222 = arith.constant dense<0.000000e+00> : vector<16x64xf32>
    %665 = tpu.matmul %664, %663, %cst_222 {dimension_numbers = #tpu.dot_dimension_numbers<[1], [0], [0], [1], [0, 0, 1, 1], [], []>} : vector<16x32xbf16>, vector<32x64xbf16>, vector<16x64xf32> -> vector<16x64xf32>
    %c1_223 = arith.constant 1 : index
    %c0_224 = arith.constant 0 : index
    %c0_225 = arith.constant 0 : index
    %666 = vector.load %arg29[%c1_223, %c0_224, %c0_225] : memref<2x1x64xf32, #tpu.memory_space<vmem>>, vector<1x1x64xf32>
    %667 = vector.shape_cast %666 : vector<1x1x64xf32> to vector<1x64xf32>
    %668 = vector.broadcast %667 : vector<1x64xf32> to vector<16x64xf32>
    %669 = arith.addf %665, %668 : vector<16x64xf32>
    %cst_226 = arith.constant 0.000000e+00 : f32
    %670 = vector.broadcast %cst_226 : f32 to vector<16x64xf32>
    %671 = arith.maximumf %669, %670 : vector<16x64xf32>
    %c1_227 = arith.constant 1 : index
    %c0_228 = arith.constant 0 : index
    %c0_229 = arith.constant 0 : index
    %672 = vector.load %arg30[%c1_227, %c0_228, %c0_229] : memref<2x64x32xbf16, #tpu.memory_space<vmem>>, vector<1x64x32xbf16>
    %673 = vector.shape_cast %672 : vector<1x64x32xbf16> to vector<64x32xbf16>
    %674 = arith.truncf %671 : vector<16x64xf32> to vector<16x64xbf16>
    %cst_230 = arith.constant dense<0.000000e+00> : vector<16x32xf32>
    %675 = tpu.matmul %674, %673, %cst_230 {dimension_numbers = #tpu.dot_dimension_numbers<[1], [0], [0], [1], [0, 0, 1, 1], [], []>} : vector<16x64xbf16>, vector<64x32xbf16>, vector<16x32xf32> -> vector<16x32xf32>
    %c1_231 = arith.constant 1 : index
    %c0_232 = arith.constant 0 : index
    %c0_233 = arith.constant 0 : index
    %676 = vector.load %arg31[%c1_231, %c0_232, %c0_233] : memref<2x1x32xf32, #tpu.memory_space<vmem>>, vector<1x1x32xf32>
    %677 = vector.shape_cast %676 : vector<1x1x32xf32> to vector<1x32xf32>
    %678 = vector.broadcast %677 : vector<1x32xf32> to vector<16x32xf32>
    %679 = arith.addf %675, %678 : vector<16x32xf32>
    %680 = arith.addf %661, %679 : vector<16x32xf32>
    %c1_234 = arith.constant 1 : index
    %c0_235 = arith.constant 0 : index
    %c0_236 = arith.constant 0 : index
    %681 = vector.load %arg32[%c1_234, %c0_235, %c0_236] : memref<2x1x32xf32, #tpu.memory_space<vmem>>, vector<1x1x32xf32>
    %682 = vector.shape_cast %681 : vector<1x1x32xf32> to vector<1x32xf32>
    %c1_237 = arith.constant 1 : index
    %c0_238 = arith.constant 0 : index
    %c0_239 = arith.constant 0 : index
    %683 = vector.load %arg33[%c1_237, %c0_238, %c0_239] : memref<2x1x32xf32, #tpu.memory_space<vmem>>, vector<1x1x32xf32>
    %684 = vector.shape_cast %683 : vector<1x1x32xf32> to vector<1x32xf32>
    %cst_240 = arith.constant dense<0.000000e+00> : vector<16xf32>
    %685 = vector.multi_reduction <add>, %680, %cst_240 [1] : vector<16x32xf32> to vector<16xf32>
    %686 = vector.shape_cast %685 : vector<16xf32> to vector<16x1xf32>
    %cst_241 = arith.constant 3.200000e+01 : f32
    %687 = vector.broadcast %cst_241 : f32 to vector<16x1xf32>
    %688 = arith.divf %686, %687 : vector<16x1xf32>
    %689 = vector.broadcast %688 : vector<16x1xf32> to vector<16x32xf32>
    %690 = arith.subf %680, %689 : vector<16x32xf32>
    %691 = arith.mulf %690, %690 : vector<16x32xf32>
    %cst_242 = arith.constant dense<0.000000e+00> : vector<16xf32>
    %692 = vector.multi_reduction <add>, %691, %cst_242 [1] : vector<16x32xf32> to vector<16xf32>
    %693 = vector.shape_cast %692 : vector<16xf32> to vector<16x1xf32>
    %cst_243 = arith.constant 3.200000e+01 : f32
    %694 = vector.broadcast %cst_243 : f32 to vector<16x1xf32>
    %695 = arith.divf %693, %694 : vector<16x1xf32>
    %cst_244 = arith.constant 9.99999974E-6 : f32
    %696 = vector.broadcast %cst_244 : f32 to vector<16x1xf32>
    %697 = arith.addf %695, %696 : vector<16x1xf32>
    %698 = math.rsqrt %697 : vector<16x1xf32>
    %699 = vector.broadcast %698 : vector<16x1xf32> to vector<16x32xf32>
    %700 = arith.mulf %690, %699 : vector<16x32xf32>
    %701 = vector.broadcast %682 : vector<1x32xf32> to vector<16x32xf32>
    %702 = arith.mulf %700, %701 : vector<16x32xf32>
    %703 = vector.broadcast %684 : vector<1x32xf32> to vector<16x32xf32>
    %704 = arith.addf %702, %703 : vector<16x32xf32>
    %c0_245 = arith.constant 0 : index
    %c0_246 = arith.constant 0 : index
    %705 = vector.load %arg5[%c0_245, %c0_246] : memref<2x16xf32, #tpu.memory_space<vmem>>, vector<2x16xf32>
    %cst_247 = arith.constant dense<0.000000e+00> : vector<2x32xf32>
    %706 = tpu.matmul %705, %704, %cst_247 {dimension_numbers = #tpu.dot_dimension_numbers<[1], [0], [0], [1], [0, 0, 1, 1], [], []>} : vector<2x16xf32>, vector<16x32xf32>, vector<2x32xf32> -> vector<2x32xf32>
    %cst_248 = arith.constant dense<0.000000e+00> : vector<2x32xf32>
    %707 = tpu.matmul %705, %35, %cst_248 {dimension_numbers = #tpu.dot_dimension_numbers<[1], [0], [0], [1], [0, 0, 1, 1], [], []>} : vector<2x16xf32>, vector<16x32xf32>, vector<2x32xf32> -> vector<2x32xf32>
    %cst_249 = arith.constant dense<0.000000e+00> : vector<2x32xf32>
    %708 = tpu.matmul %705, %66, %cst_249 {dimension_numbers = #tpu.dot_dimension_numbers<[1], [0], [0], [1], [0, 0, 1, 1], [], []>} : vector<2x16xf32>, vector<16x32xf32>, vector<2x32xf32> -> vector<2x32xf32>
    %c0_250 = arith.constant 0 : index
    %c0_251 = arith.constant 0 : index
    %709 = vector.load %arg34[%c0_250, %c0_251] : memref<32x512xbf16, #tpu.memory_space<vmem>>, vector<32x512xbf16>
    %710 = arith.truncf %706 : vector<2x32xf32> to vector<2x32xbf16>
    %cst_252 = arith.constant dense<0.000000e+00> : vector<2x512xf32>
    %711 = tpu.matmul %710, %709, %cst_252 {dimension_numbers = #tpu.dot_dimension_numbers<[1], [0], [0], [1], [0, 0, 1, 1], [], []>} : vector<2x32xbf16>, vector<32x512xbf16>, vector<2x512xf32> -> vector<2x512xf32>
    %c0_253 = arith.constant 0 : index
    %c0_254 = arith.constant 0 : index
    %712 = vector.load %arg35[%c0_253, %c0_254] : memref<1x512xf32, #tpu.memory_space<vmem>>, vector<1x512xf32>
    %713 = vector.broadcast %712 : vector<1x512xf32> to vector<2x512xf32>
    %714 = arith.addf %711, %713 : vector<2x512xf32>
    %715 = vector.extract_strided_slice %714 {offsets = [0, 0], sizes = [2, 32], strides = [1, 1]} : vector<2x512xf32> to vector<2x32xf32>
    %cst_255 = arith.constant 0.000000e+00 : f32
    %716 = vector.broadcast %cst_255 : f32 to vector<2x32xf32>
    %717 = arith.maximumf %715, %716 : vector<2x32xf32>
    %718 = vector.extract_strided_slice %714 {offsets = [0, 128], sizes = [2, 16], strides = [1, 1]} : vector<2x512xf32> to vector<2x16xf32>
    %cst_256 = arith.constant 0.000000e+00 : f32
    %719 = vector.broadcast %cst_256 : f32 to vector<2x16xf32>
    %720 = arith.maximumf %718, %719 : vector<2x16xf32>
    %721 = vector.extract_strided_slice %714 {offsets = [0, 256], sizes = [2, 16], strides = [1, 1]} : vector<2x512xf32> to vector<2x16xf32>
    %cst_257 = arith.constant 0.000000e+00 : f32
    %722 = vector.broadcast %cst_257 : f32 to vector<2x16xf32>
    %723 = arith.maximumf %721, %722 : vector<2x16xf32>
    %724 = vector.extract_strided_slice %714 {offsets = [0, 384], sizes = [2, 32], strides = [1, 1]} : vector<2x512xf32> to vector<2x32xf32>
    %c0_258 = arith.constant 0 : index
    %c0_259 = arith.constant 0 : index
    %725 = vector.load %arg36[%c0_258, %c0_259] : memref<32x32xbf16, #tpu.memory_space<vmem>>, vector<32x32xbf16>
    %726 = arith.truncf %717 : vector<2x32xf32> to vector<2x32xbf16>
    %cst_260 = arith.constant dense<0.000000e+00> : vector<2x32xf32>
    %727 = tpu.matmul %726, %725, %cst_260 {dimension_numbers = #tpu.dot_dimension_numbers<[1], [0], [0], [1], [0, 0, 1, 1], [], []>} : vector<2x32xbf16>, vector<32x32xbf16>, vector<2x32xf32> -> vector<2x32xf32>
    %c0_261 = arith.constant 0 : index
    %c0_262 = arith.constant 0 : index
    %728 = vector.load %arg37[%c0_261, %c0_262] : memref<1x32xf32, #tpu.memory_space<vmem>>, vector<1x32xf32>
    %729 = vector.broadcast %728 : vector<1x32xf32> to vector<2x32xf32>
    %730 = arith.addf %727, %729 : vector<2x32xf32>
    %cst_263 = arith.constant 0.000000e+00 : f32
    %731 = vector.broadcast %cst_263 : f32 to vector<2x32xf32>
    %732 = arith.maximumf %730, %731 : vector<2x32xf32>
    %c0_264 = arith.constant 0 : index
    %c0_265 = arith.constant 0 : index
    %733 = vector.load %arg38[%c0_264, %c0_265] : memref<32x32xbf16, #tpu.memory_space<vmem>>, vector<32x32xbf16>
    %734 = arith.truncf %732 : vector<2x32xf32> to vector<2x32xbf16>
    %cst_266 = arith.constant dense<0.000000e+00> : vector<2x32xf32>
    %735 = tpu.matmul %734, %733, %cst_266 {dimension_numbers = #tpu.dot_dimension_numbers<[1], [0], [0], [1], [0, 0, 1, 1], [], []>} : vector<2x32xbf16>, vector<32x32xbf16>, vector<2x32xf32> -> vector<2x32xf32>
    %c0_267 = arith.constant 0 : index
    %c0_268 = arith.constant 0 : index
    %736 = vector.load %arg39[%c0_267, %c0_268] : memref<1x32xf32, #tpu.memory_space<vmem>>, vector<1x32xf32>
    %737 = vector.broadcast %736 : vector<1x32xf32> to vector<2x32xf32>
    %738 = arith.addf %735, %737 : vector<2x32xf32>
    %739 = arith.addf %738, %717 : vector<2x32xf32>
    %cst_269 = arith.constant 0.000000e+00 : f32
    %740 = vector.broadcast %cst_269 : f32 to vector<2x32xf32>
    %741 = arith.maximumf %739, %740 : vector<2x32xf32>
    %c0_270 = arith.constant 0 : index
    %c0_271 = arith.constant 0 : index
    %742 = vector.load %arg40[%c0_270, %c0_271] : memref<32x16xbf16, #tpu.memory_space<vmem>>, vector<32x16xbf16>
    %743 = arith.truncf %741 : vector<2x32xf32> to vector<2x32xbf16>
    %cst_272 = arith.constant dense<0.000000e+00> : vector<2x16xf32>
    %744 = tpu.matmul %743, %742, %cst_272 {dimension_numbers = #tpu.dot_dimension_numbers<[1], [0], [0], [1], [0, 0, 1, 1], [], []>} : vector<2x32xbf16>, vector<32x16xbf16>, vector<2x16xf32> -> vector<2x16xf32>
    %c0_273 = arith.constant 0 : index
    %c0_274 = arith.constant 0 : index
    %745 = vector.load %arg41[%c0_273, %c0_274] : memref<1x16xf32, #tpu.memory_space<vmem>>, vector<1x16xf32>
    %746 = vector.broadcast %745 : vector<1x16xf32> to vector<2x16xf32>
    %747 = arith.addf %744, %746 : vector<2x16xf32>
    %c0_275 = arith.constant 0 : index
    %c0_276 = arith.constant 0 : index
    %748 = vector.load %arg42[%c0_275, %c0_276] : memref<16x41xbf16, #tpu.memory_space<vmem>>, vector<16x41xbf16>
    %749 = arith.truncf %720 : vector<2x16xf32> to vector<2x16xbf16>
    %cst_277 = arith.constant dense<0.000000e+00> : vector<2x41xf32>
    %750 = tpu.matmul %749, %748, %cst_277 {dimension_numbers = #tpu.dot_dimension_numbers<[1], [0], [0], [1], [0, 0, 1, 1], [], []>} : vector<2x16xbf16>, vector<16x41xbf16>, vector<2x41xf32> -> vector<2x41xf32>
    %c0_278 = arith.constant 0 : index
    %c0_279 = arith.constant 0 : index
    %751 = vector.load %arg43[%c0_278, %c0_279] : memref<1x41xf32, #tpu.memory_space<vmem>>, vector<1x41xf32>
    %752 = vector.broadcast %751 : vector<1x41xf32> to vector<2x41xf32>
    %753 = arith.addf %750, %752 : vector<2x41xf32>
    %c0_280 = arith.constant 0 : index
    %c0_281 = arith.constant 0 : index
    %754 = vector.load %arg44[%c0_280, %c0_281] : memref<16x1xbf16, #tpu.memory_space<vmem>>, vector<16x1xbf16>
    %755 = arith.truncf %723 : vector<2x16xf32> to vector<2x16xbf16>
    %cst_282 = arith.constant dense<0.000000e+00> : vector<2x1xf32>
    %756 = tpu.matmul %755, %754, %cst_282 {dimension_numbers = #tpu.dot_dimension_numbers<[1], [0], [0], [1], [0, 0, 1, 1], [], []>} : vector<2x16xbf16>, vector<16x1xbf16>, vector<2x1xf32> -> vector<2x1xf32>
    %c0_283 = arith.constant 0 : index
    %c0_284 = arith.constant 0 : index
    %757 = vector.load %arg45[%c0_283, %c0_284] : memref<1x1xf32, #tpu.memory_space<vmem>>, vector<1x1xf32>
    %758 = vector.broadcast %757 : vector<1x1xf32> to vector<2x1xf32>
    %759 = arith.addf %756, %758 : vector<2x1xf32>
    %760 = arith.negf %759 : vector<2x1xf32>
    %761 = math.exp %760 : vector<2x1xf32>
    %cst_285 = arith.constant 1.000000e+00 : f32
    %762 = vector.broadcast %cst_285 : f32 to vector<2x1xf32>
    %763 = arith.addf %762, %761 : vector<2x1xf32>
    %764 = arith.divf %762, %763 : vector<2x1xf32>
    %c0_286 = arith.constant 0 : index
    %c0_287 = arith.constant 0 : index
    %765 = vector.load %arg4[%c0_286, %c0_287] : memref<32x32xf32, #tpu.memory_space<vmem>>, vector<32x32xf32>
    %cst_288 = arith.constant dense<0xFF800000> : vector<2xf32>
    %766 = vector.multi_reduction <maximumf>, %707, %cst_288 [1] : vector<2x32xf32> to vector<2xf32>
    %767 = vector.shape_cast %766 : vector<2xf32> to vector<2x1xf32>
    %768 = vector.broadcast %767 : vector<2x1xf32> to vector<2x32xf32>
    %769 = arith.subf %707, %768 : vector<2x32xf32>
    %770 = math.exp %769 : vector<2x32xf32>
    %cst_289 = arith.constant dense<0.000000e+00> : vector<2x32xf32>
    %771 = tpu.matmul %770, %765, %cst_289 {dimension_numbers = #tpu.dot_dimension_numbers<[1], [0], [0], [1], [0, 0, 1, 1], [], []>} : vector<2x32xf32>, vector<32x32xf32>, vector<2x32xf32> -> vector<2x32xf32>
    %772 = math.log %771 : vector<2x32xf32>
    %773 = arith.subf %769, %772 : vector<2x32xf32>
    %cst_290 = arith.constant dense<0xFF800000> : vector<2xf32>
    %774 = vector.multi_reduction <maximumf>, %724, %cst_290 [1] : vector<2x32xf32> to vector<2xf32>
    %775 = vector.shape_cast %774 : vector<2xf32> to vector<2x1xf32>
    %776 = vector.broadcast %775 : vector<2x1xf32> to vector<2x32xf32>
    %777 = arith.subf %724, %776 : vector<2x32xf32>
    %778 = math.exp %777 : vector<2x32xf32>
    %cst_291 = arith.constant dense<0.000000e+00> : vector<2x32xf32>
    %779 = tpu.matmul %778, %765, %cst_291 {dimension_numbers = #tpu.dot_dimension_numbers<[1], [0], [0], [1], [0, 0, 1, 1], [], []>} : vector<2x32xf32>, vector<32x32xf32>, vector<2x32xf32> -> vector<2x32xf32>
    %780 = math.log %779 : vector<2x32xf32>
    %781 = arith.subf %777, %780 : vector<2x32xf32>
    %782 = math.exp %773 : vector<2x32xf32>
    %783 = arith.subf %773, %781 : vector<2x32xf32>
    %784 = arith.mulf %782, %783 : vector<2x32xf32>
    %cst_292 = arith.constant dense<0.000000e+00> : vector<2xf32>
    %785 = vector.multi_reduction <add>, %784, %cst_292 [1] : vector<2x32xf32> to vector<2xf32>
    %786 = vector.shape_cast %785 : vector<2xf32> to vector<2x1xf32>
    %cst_293 = arith.constant dense<0.000000e+00> : vector<1xf32>
    %787 = vector.multi_reduction <add>, %786, %cst_293 [0] : vector<2x1xf32> to vector<1xf32>
    %788 = vector.shape_cast %787 : vector<1xf32> to vector<1x1xf32>
    %cst_294 = arith.constant 8.000000e+00 : f32
    %789 = vector.broadcast %cst_294 : f32 to vector<1x1xf32>
    %790 = arith.divf %788, %789 : vector<1x1xf32>
    %cst_295 = arith.constant 0.000000e+00 : f32
    %791 = vector.broadcast %cst_295 : f32 to vector<2x1xf32>
    %792 = vector.broadcast %790 : vector<1x1xf32> to vector<2x1xf32>
    %793 = arith.addf %792, %791 : vector<2x1xf32>
    %cst_296 = arith.constant 0.000000e+00 : f32
    %794 = vector.broadcast %cst_296 : f32 to vector<2x5xf32>
    %795 = tpu.concatenate %747, %753, %764, %793, %706, %708, %794 in 1 : vector<2x16xf32>, vector<2x41xf32>, vector<2x1xf32>, vector<2x1xf32>, vector<2x32xf32>, vector<2x32xf32>, vector<2x5xf32> -> vector<2x128xf32>
    %c0_297 = arith.constant 0 : index
    %c0_298 = arith.constant 0 : index
    %796 = vector.load %arg46[%c0_297, %c0_298] : memref<2x128xf32, #tpu.memory_space<vmem>>, vector<2x128xf32>
    tpu.vector_store %arg46[%c0_297, %c0_298], %795 {strides = array<i32>} : memref<2x128xf32, #tpu.memory_space<vmem>>, vector<2x128xf32>,
    return
  }
}

</mosaic_0001>

<bundles_post_ra>
// kernel: storm_forward.1
= control target key start
LH: loop header
LB: loop body
LE: loop exit
PB: predicated region body
PF: predicated region fallthrough
CT: control target
= control target key end

     0   :  { %s7858_s6 = smov 1   ;;  %s7859_s10 = smov 2   ;;  %s9273_s0 = inlined_call_operand.smem [shape: u32[47], index: -1, kind: input, shape index: {}] }
   0x1   :  { %s7936_s5 = sld [smem:[%s9273_s0]]   ;;  %s7860_s14 = smov 3  }
   0x2   :  { %s7941_s9 = sld [smem:[%s9273_s0 + %s7858_s6]]   ;;  %s7861_s18 = smov 4  }
   0x3   :  { %s7946_s13 = sld [smem:[%s9273_s0 + %s7859_s10]]   ;;  %s7862_s22 = smov 5  }
   0x4   :  { %s7951_s17 = sld [smem:[%s9273_s0 + %s7860_s14]]   ;;  %s7863_s26 = smov 6  }
   0x5   :  { %s7956_s21 = sld [smem:[%s9273_s0 + %s7861_s18]]   ;;  %s7864_s30 = smov 7  }
   0x6   :  { %s7961_s25 = sld [smem:[%s9273_s0 + %s7862_s22]]   ;;  %s7865_s4 = smov 8  }
   0x7   :  { %s7966_s29 = sld [smem:[%s9273_s0 + %s7863_s26]]   ;;  %s7866_s10 = smov 9  }
   0x8   :  { %s7971_s3 = sld [smem:[%s9273_s0 + %s7864_s30]]   ;;  %s7867_s15 = smov 10  }
   0x9   :  { %s7976_s8 = sld [smem:[%s9273_s0 + %s7865_s4]]   ;;  %s7868_s20 = smov 11  }
   0xa   :  { %9293 = sst [smem:[#allocation9_spill]] %s7951_s17  ;;  %s7869_s26 = smov 12  }
   0xb   :  { %9294 = sst [smem:[#allocation10_spill]] %s7956_s21  ;;  %s7870_s1 = smov 13  }
   0xc   :  { %9295 = sst [smem:[#allocation11_spill]] %s7961_s25  ;;  %s7871_s7 = smov 14  }
   0xd   :  { %s7981_s14 = sld [smem:[%s9273_s0 + %s7866_s10]]   ;;  %s7873_s22 = smov 16  }
   0xe   :  { %s7986_s19 = sld [smem:[%s9273_s0 + %s7867_s15]]   ;;  %s7872_s15 = smov 15  }
   0xf   :  { %s7991_s24 = sld [smem:[%s9273_s0 + %s7868_s20]]   ;;  %s7874_s28 = smov 17  }
  0x10   :  { %s7996_s30 = sld [smem:[%s9273_s0 + %s7869_s26]]   ;;  %s7903_s10 = smov 46  }
  0x11   :  { %s8001_s6 = sld [smem:[%s9273_s0 + %s7870_s1]]  }
  0x12   :  { %s8006_s12 = sld [smem:[%s9273_s0 + %s7871_s7]]   ;;  %s7875_s7 = smov 18  }
  0x13   :  { %s8011_s20 = sld [smem:[%s9273_s0 + %s7872_s15]]   ;;  %s7876_s15 = smov 19  }
  0x14   :  { %s8016_s27 = sld [smem:[%s9273_s0 + %s7873_s22]]   ;;  %s7877_s22 = smov 20  }
  0x15   :  { %s8021_s4 = sld [smem:[%s9273_s0 + %s7874_s28]]   ;;  %s7878_s28 = smov 21  }
  0x16   :  { %s8026_s21 = sld [smem:[%s9273_s0 + %s7875_s7]]   ;;  %s7879_s7 = smov 22  }
  0x17   :  { %s8031_s25 = sld [smem:[%s9273_s0 + %s7876_s15]]   ;;  %s7880_s15 = smov 23  }
  0x18   :  { %s8036_s17 = sld [smem:[%s9273_s0 + %s7877_s22]]   ;;  %s7881_s22 = smov 24  }
  0x1a   :  { %9296 = sst [smem:[#allocation12_spill]] %s8016_s27 }
  0x1b   :  { %9297 = sst [smem:[#allocation13_spill]] %s8021_s4 }
  0x1c   :  { %9298 = sst [smem:[#allocation14_spill]] %s8026_s21 }
  0x1d   :  { %9299 = sst [smem:[#allocation15_spill]] %s8031_s25 }
  0x1e   :  { %9300 = sst [smem:[#allocation16_spill]] %s8036_s17 }
  0x1f   :  { %s8041_s4 = sld [smem:[%s9273_s0 + %s7878_s28]]   ;;  %s7882_s28 = smov 25  }
  0x20   :  { %s8046_s27 = sld [smem:[%s9273_s0 + %s7879_s7]]   ;;  %s7883_s7 = smov 26  }
  0x21   :  { %s8051_s25 = sld [smem:[%s9273_s0 + %s7880_s15]]   ;;  %s7884_s15 = smov 27  }
  0x22   :  { %s8056_s17 = sld [smem:[%s9273_s0 + %s7881_s22]]   ;;  %s7885_s22 = smov 28  }
  0x25   :  { %9301 = sst [smem:[#allocation17_spill]] %s8041_s4 }
  0x26   :  { %9302 = sst [smem:[#allocation18_spill]] %s8046_s27 }
  0x27   :  { %9303 = sst [smem:[#allocation19_spill]] %s8051_s25 }
  0x28   :  { %9304 = sst [smem:[#allocation20_spill]] %s8056_s17 }
  0x29   :  { %s8061_s4 = sld [smem:[%s9273_s0 + %s7882_s28]]   ;;  %s7886_s28 = smov 29  }
  0x2a   :  { %s8066_s27 = sld [smem:[%s9273_s0 + %s7883_s7]]   ;;  %s7887_s7 = smov 30  }
  0x2b   :  { %s8071_s25 = sld [smem:[%s9273_s0 + %s7884_s15]]   ;;  %s7888_s15 = smov 31  }
  0x2c   :  { %s8076_s17 = sld [smem:[%s9273_s0 + %s7885_s22]]   ;;  %s7889_s22 = smov 32  }
  0x2f   :  { %9305 = sst [smem:[#allocation21_spill]] %s8061_s4 }
  0x30   :  { %9306 = sst [smem:[#allocation22_spill]] %s8066_s27 }
  0x31   :  { %9307 = sst [smem:[#allocation23_spill]] %s8071_s25 }
  0x32   :  { %9308 = sst [smem:[#allocation24_spill]] %s8076_s17 }
  0x33   :  { %s8081_s4 = sld [smem:[%s9273_s0 + %s7886_s28]]   ;;  %s7890_s28 = smov 33  }
  0x34   :  { %s8086_s27 = sld [smem:[%s9273_s0 + %s7887_s7]]   ;;  %s7891_s7 = smov 34  }
  0x35   :  { %s8091_s25 = sld [smem:[%s9273_s0 + %s7888_s15]]   ;;  %s7892_s15 = smov 35  }
  0x36   :  { %s8096_s17 = sld [smem:[%s9273_s0 + %s7889_s22]]   ;;  %s7893_s22 = smov 36  }
  0x39   :  { %9309 = sst [smem:[#allocation25_spill]] %s8081_s4 }
  0x3a   :  { %9310 = sst [smem:[#allocation26_spill]] %s8086_s27 }
  0x3b   :  { %9311 = sst [smem:[#allocation27_spill]] %s8091_s25 }
  0x3c   :  { %9312 = sst [smem:[#allocation28_spill]] %s8096_s17 }
  0x3d   :  { %s8101_s4 = sld [smem:[%s9273_s0 + %s7890_s28]]   ;;  %s7894_s28 = smov 37  }
  0x3e   :  { %s8106_s27 = sld [smem:[%s9273_s0 + %s7891_s7]]   ;;  %s7895_s7 = smov 38  }
  0x3f   :  { %s8111_s25 = sld [smem:[%s9273_s0 + %s7892_s15]]   ;;  %s7896_s15 = smov 39  }
  0x40   :  { %s8116_s17 = sld [smem:[%s9273_s0 + %s7893_s22]]   ;;  %s7897_s22 = smov 40  }
  0x43   :  { %9313 = sst [smem:[#allocation29_spill]] %s8101_s4 }
  0x44   :  { %9314 = sst [smem:[#allocation30_spill]] %s8106_s27 }
  0x45   :  { %9315 = sst [smem:[#allocation31_spill]] %s8111_s25 }
  0x46   :  { %9316 = sst [smem:[#allocation32_spill]] %s8116_s17 }
  0x47   :  { %s8121_s4 = sld [smem:[%s9273_s0 + %s7894_s28]]   ;;  %s7898_s28 = smov 41  }
  0x48   :  { %s8126_s27 = sld [smem:[%s9273_s0 + %s7895_s7]]   ;;  %s7899_s7 = smov 42  }
  0x49   :  { %s8131_s25 = sld [smem:[%s9273_s0 + %s7896_s15]]   ;;  %s7900_s15 = smov 43  }
  0x4a   :  { %s8136_s17 = sld [smem:[%s9273_s0 + %s7897_s22]]   ;;  %s7901_s22 = smov 44  }
  0x4d   :  { %9317 = sst [smem:[#allocation33_spill]] %s8121_s4 }
  0x4e   :  { %9318 = sst [smem:[#allocation34_spill]] %s8126_s27 }
  0x4f   :  { %9319 = sst [smem:[#allocation35_spill]] %s8131_s25 }
  0x50   :  { %9320 = sst [smem:[#allocation36_spill]] %s8136_s17 }
  0x51   :  { %s8141_s4 = sld [smem:[%s9273_s0 + %s7898_s28]]   ;;  %s7902_s28 = smov 45  }
  0x52   :  { %s8146_s27 = sld [smem:[%s9273_s0 + %s7899_s7]]  }
  0x53   :  { %s8151_s25 = sld [smem:[%s9273_s0 + %s7900_s15]]  }
  0x54   :  { %s8156_s17 = sld [smem:[%s9273_s0 + %s7901_s22]]  }
  0x55   :  { %s6405_s21 = sld [smem:[%s9273_s0 + %s7902_s28]]  }
  0x58   :  { %9321 = sst [smem:[#allocation37_spill]] %s8146_s27 }
  0x59   :  { %s8164_s27 = sld [smem:[%s9273_s0 + %s7903_s10]]  }
  0x5b   :  { %v98_v0 = vstv %s6405_s21 }
  0x5c   :  { %99 = vst [vmem:[#allocation2] sm:$0x1] %v98_v0 }
  0x5d   :  { %100 = vsyncpa [#allocation4], 0 }
  0x5e   :  { %101 = vsyncpa [#allocation6], 0  ;;  %s7904_s15 = smov [#allocation3]   ;;  %s7905_s18 = smov [#allocation5]  }
  0x5f   :  { %s190_s16 = sshll.u32 %s7904_s15, 4  ;;  %s202_s22 = sshll.u32 %s7905_s18, 4  ;;  %s191_s16 = int_to_ptr.vmem [resolvable:$true] %s190_s16  ;;  %s203_s22 = int_to_ptr.vmem [resolvable:$true] %s202_s22 }
  0x60   :  { %s7810_s23 = scalar_lea.hbm %s8141_s4, 16 }
  0x61   :  { %p7811_p0 = scmp.ne.s32.totalorder %s8141_s4, %s7810_s23  ;;  %p7814_p1 = scmp.lt.u32.totalorder %s7810_s23, %s8141_s4 }
  0x63   :  { %p7816_p2 = pnand %p7814_p1, %p7811_p0 }
  0x65   :  { %7819 = shalt.err (!%p7816_p2)
}
  0x66   :  { %s7820_s0 = scalar_lea.vmem %s191_s16, 16  ;;  %s7824_s21 = scalar_lea.vmem %s191_s16, 32 }
  0x67   :  { %p7821_p3 = scmp.ne.s32.totalorder %s191_s16, %s7820_s0  ;;  %p7825_p4 = scmp.lt.s32.totalorder %s191_s16, %s191_s16 }
  0x68   :  { %p7826_p5 = scmp.lt.s32.totalorder %s7824_s21, %s7820_s0 }
  0x6a   :  { %p7827_p6 = por %p7826_p5, %p7825_p4 }
  0x6c   :  { %p7828_p7 = pnand %p7827_p6, %p7821_p3 }
  0x6e   :  { %7831 = shalt.err (!%p7828_p7)
}
  0x6f   :  { %193 = dma.hbm_to_vmem [thread:$0]  %s8141_s4, 16, %s191_s16, [#allocation4]  }
  0x70   :  { %s7832_s26 = scalar_lea.hbm %s8151_s25, 16 }
  0x71   :  { %p7833_p8 = scmp.ne.s32.totalorder %s8151_s25, %s7832_s26  ;;  %p7836_p9 = scmp.lt.u32.totalorder %s7832_s26, %s8151_s25 }
  0x73   :  { %p7838_p10 = pnand %p7836_p9, %p7833_p8 }
  0x75   :  { %7841 = shalt.err (!%p7838_p10)
}
  0x76   :  { %s7842_s28 = scalar_lea.vmem %s203_s22, 16  ;;  %s7846_s1 = scalar_lea.vmem %s203_s22, 32 }
  0x77   :  { %p7843_p11 = scmp.ne.s32.totalorder %s203_s22, %s7842_s28  ;;  %p7847_p12 = scmp.lt.s32.totalorder %s203_s22, %s203_s22 }
  0x78   :  { %p7848_p13 = scmp.lt.s32.totalorder %s7846_s1, %s7842_s28 }
  0x7a   :  { %p7849_p0 = por %p7848_p13, %p7847_p12 }
  0x7c   :  { %p7850_p1 = pnand %p7849_p0, %p7843_p11 }
  0x7e   :  { %7853 = shalt.err (!%p7850_p1)
}
  0x7f   :  { %205 = dma.hbm_to_vmem [thread:$0]  %s8151_s25, 16, %s203_s22, [#allocation6]  }
  0x80   :  { %7854 = dma.done.wait [#allocation4], 16  }
  0x81   :  { %7855 = vsyncadd [#allocation4], 4294967280 }
  0x82   :  { %7856 = dma.done.wait [#allocation6], 16  }
  0x83   :  { %7857 = vsyncadd [#allocation6], 4294967280  ;;  %v7906_v1 = vmov 0.0   ;;  %vm7907_vm0 = vmmov 0   ;;  %v7580_v2 = vld [vmem:[%s7966_s29] sm:$0xff]   ;;  %v218_v4 = vld [vmem:[%s7936_s5 + $0x8] sm:$0xff] }
  0x84   :  { %6831 = vmatprep.subr.bf16.mxu1 %v7906_v1  ;;  %6833 = vmatprep.mubr.msk.bf16.mxu1 %vm7907_vm0, %v7906_v1  ;;  %v217_v3 = vld [vmem:[%s7936_s5] sm:$0xff]  ;;  %vm235_vm1 = vcmask 130048   ;;  %v7582_v7 = vld [vmem:[%s7976_s8 + $0x8] sm:$0xff]   ;;  %vm306_vm2 = vcmask 261120   ;;  %vm514_vm3 = vcmask 130112   ;;  %vm501_vm4 = vcmask 64512  }
  0x85   :  { %6845 = vmatprep.subr.bf16.mxu0 %v7906_v1  ;;  %6849 = vmatprep.mubr.msk.bf16.mxu0 %vm7907_vm0, %v7906_v1  ;;  %v221_v5 = vpack.c.bf16 %v218_v4, %v217_v3  ;;  %v7581_v6 = vld [vmem:[%s7976_s8] sm:$0xff]   ;;  %v7584_v19 = vld [vmem:[%s7986_s19 + $0x8] sm:$0xff]   ;;  %vm527_vm5 = vcmask 195712   ;;  %vm540_vm6 = vcmask 261312   ;;  %vm604_vm7 = vcmask 1043456   ;;  %s7908_s5 = smov 32  }
  0x86   :  { %6832 = vmatpush3.bf16.msra.mxu1 %v7580_v2  ;;  %v6407_v8 = vld [vmem:[%s7971_s3] ss:$0 sm:$0xff]  ;;  %v7586_v31 = vld [vmem:[%s7996_s30 + $0x8] sm:$0xff]   ;;  %s9324_s25 = sld [smem:[#allocation13_spill]]  ;;  %s9325_s29 = sld [smem:[#allocation15_spill]] }
  0x87   :  { %6837 = vmatprep.subr.bf16.mxu1 %v7906_v1  ;;  %v7583_v18 = vld [vmem:[%s7986_s19] sm:$0xff]   ;;  %v498_v55 = vld [vmem:[%s7946_s13 + $0x8] sm:$0xff]  ;;  %s9326_s3 = sld [smem:[#allocation18_spill]]  ;;  %s9327_s8 = sld [smem:[#allocation16_spill]] }
  0x88   :  { %6846 = vmatpush3.bf16.msra.mxu0 %v7583_v18  ;;  %v6410_v20 = vld [vmem:[%s7981_s14] ss:$0 sm:$0xff]  ;;  %s9328_s14 = sld [smem:[#allocation17_spill]]  ;;  %s7914_s4 = smov 108  }
  0x89   :  { %6834 = vmatmul.mubr.msk.bf16.vlgmr.msra.gmra.mrb[0].mxu1 %vm235_vm1, %v221_v5  ;;  %6847 = vmatprep.subr.bf16.mxu0 %v7906_v1  ;;  %v7585_v30 = vld [vmem:[%s7996_s30] sm:$0xff]   ;;  %s9329_s19 = sld [smem:[#allocation9_spill]]  ;;  %s7910_s30 = smov 124  }
  0x8a   :  { %6841 = vmatprep.mubr.msk.bf16.mxu1 %vm7907_vm0, %v7906_v1  ;;  %6838 = vmatpush3.bf16.msra.mxu1 %v7581_v6  ;;  %v6414_v32 = vld [vmem:[%s7991_s24] ss:$0 sm:$0xff]  ;;  %s9330_s24 = sld [smem:[#allocation19_spill]]  ;;  %s7915_s2 = smov 104  }
  0x8b   :  { %6839 = vmatprep.subr.bf16.mxu1 %v7906_v1  ;;  %v6418_v44 = vld [vmem:[%s8001_s6] ss:$0 sm:$0xff]  ;;  %s7911_s6 = smov 120   ;;  %s7916_s10 = smov 100  }
  0x8c   :  { %6848 = vmatpush3.bf16.msra.mxu0 %v7584_v19  ;;  %v497_v52 = vld [vmem:[%s7946_s13] sm:$0xff]  ;;  %s9323_s13 = sld [smem:[#allocation12_spill]]  ;;  %s7917_s7 = smov 4  }
  0x8d   :  { %6861 = vmatprep.subr.bf16.mxu0 %v7906_v1  ;;  %v7587_v5 = vld [vmem:[%s8006_s12] sm:$0xff]   ;;  %s7918_s11 = smov 8   ;;  %s7919_s15 = smov 16  }
  0x8e   :  { %6840 = vmatpush3.bf16.msra.mxu1 %v7582_v7  ;;  %v560_v6 = vld [vmem:[%s7941_s9] sm:$0xff]  ;;  %v561_v7 = vld [vmem:[%s7941_s9 + $0x8] sm:$0xff]  ;;  %s9322_s9 = sld [smem:[#allocation14_spill]]  ;;  %s7920_s16 = smov 24  }
  0x8f   :  { %6853 = vmatprep.subr.bf16.mxu1 %v7906_v1  ;;  %s7921_s18 = smov 12   ;;  %s7922_s22 = smov 20  }
  0x90   :  { %s9331_s23 = sld [smem:[#allocation20_spill]]  ;;  %s7923_s0 = smov 28  }
  0x91   :  { %s9332_s21 = sld [smem:[#allocation21_spill]]  ;;  %s9333_s26 = sld [smem:[#allocation24_spill]] }
  0x92   :  { %s9334_s28 = sld [smem:[#allocation26_spill]]  ;;  %s9335_s1 = sld [smem:[#allocation22_spill]] }
 0x15c   :  { %v273_v9 = vpop.f32.mrb[0].mxu1 }
 0x15d   :  { %v274_v10 = vadd.f32 %v6407_v8, %v273_v9  ;;  %v6835_v11 = vpop.f32.mrb[1].mxu1  ;;  %v7505_v9 = vpack.i.bf16 %v561_v7, %v560_v6 }
 0x15e   :  { %v276_v12 = vpop.f32.mrb[2].mxu1 }
 0x15f   :  { %v277_v13 = vadd.f32 %v6407_v8, %v276_v12  ;;  %v6836_v14 = vpop.f32.mrb[3].mxu1  ;;  %v280_v15 = vmax.f32 %v274_v10, 0.0  ;;  %v7588_v8 = vld [vmem:[%s8006_s12 + $0x8] sm:$0xff]   ;;  %v7589_v10 = vld [vmem:[%s8006_s12 + $0x10] ss:$0 sps:$4 sm:$0xff]   ;;  %s7912_s12 = smov 116  }
 0x160   :  { %v606_v11 = vsel %vm604_vm7, %v7589_v10, 0 }
 0x161   :  { %v281_v16 = vmax.f32 %v277_v13, 0.0 }
 0x163   :  { %v286_v17 = vpack.c.bf16 %v281_v16, %v280_v15 }
 0x165   :  { %6842 = vmatmul.mubr.msk.bf16.vlgmr.msra.gmra.mrb[4].mxu1 %vm306_vm2, %v286_v17 }
 0x166   :  { %6857 = vmatprep.mubr.msk.bf16.mxu1 %vm7907_vm0, %v7906_v1  ;;  %6854 = vmatpush3.bf16.msra.mxu1 %v7585_v30 }
 0x167   :  { %6855 = vmatprep.subr.bf16.mxu1 %v7906_v1 }
 0x16a   :  { %6856 = vmatpush3.bf16.msra.mxu1 %v7586_v31 }
 0x16b   :  { %6871 = vmatprep.subr.bf16.mxu1 %v7906_v1 }
 0x238   :  { %v344_v21 = vpop.f32.mrb[4].mxu1 }
 0x239   :  { %v345_v22 = vadd.f32 %v6410_v20, %v344_v21  ;;  %v6843_v23 = vpop.f32.mrb[5].mxu1 }
 0x23a   :  { %v347_v24 = vpop.f32.mrb[6].mxu1 }
 0x23b   :  { %v348_v25 = vadd.f32 %v6410_v20, %v347_v24  ;;  %v6844_v26 = vpop.f32.mrb[7].mxu1  ;;  %v351_v27 = vmax.f32 %v345_v22, 0.0 }
 0x23d   :  { %v352_v28 = vmax.f32 %v348_v25, 0.0 }
 0x23f   :  { %v357_v29 = vpack.c.bf16 %v352_v28, %v351_v27 }
 0x241   :  { %6850 = vmatmul.mubr.msk.bf16.vlgmr.msra.gmra.mrb[0].mxu0 %vm306_vm2, %v357_v29 }
 0x242   :  { %6867 = vmatprep.mubr.msk.bf16.mxu0 %vm7907_vm0, %v7906_v1  ;;  %6862 = vmatpush3.bf16.msra.mxu0 %v7587_v5 }
 0x243   :  { %6863 = vmatprep.subr.bf16.mxu0 %v7906_v1 }
 0x246   :  { %6864 = vmatpush3.bf16.msra.mxu0 %v7588_v8 }
 0x247   :  { %6865 = vmatprep.subr.bf16.mxu0 %v7906_v1 }
 0x24a   :  { %6866 = vmatpush3.bf16.msra.mxu0 %v606_v11 }
 0x314   :  { %v414_v33 = vpop.f32.mrb[0].mxu0 }
 0x315   :  { %v415_v34 = vadd.f32 %v6414_v32, %v414_v33  ;;  %v6851_v35 = vpop.f32.mrb[1].mxu0 }
 0x316   :  { %v417_v36 = vpop.f32.mrb[2].mxu0 }
 0x317   :  { %v421_v37 = vadd.f32 %v415_v34, %v280_v15  ;;  %v418_v38 = vadd.f32 %v6414_v32, %v417_v36  ;;  %v6852_v39 = vpop.f32.mrb[3].mxu0 }
 0x319   :  { %v422_v40 = vadd.f32 %v418_v38, %v281_v16  ;;  %v423_v41 = vmax.f32 %v421_v37, 0.0 }
 0x31b   :  { %v424_v42 = vmax.f32 %v422_v40, 0.0 }
 0x31d   :  { %v429_v43 = vpack.c.bf16 %v424_v42, %v423_v41  ;;  %v6430_v41 = vld [vmem:[%s8011_s20] ss:$0 sm:$0xff]  ;;  %s7913_s20 = smov 112  }
 0x31f   :  { %6858 = vmatmul.mubr.msk.bf16.vlgmr.msra.gmra.mrb[8].mxu1 %vm306_vm2, %v429_v43 }
 0x320   :  { %6875 = vmatprep.mubr.msk.bf16.mxu1 %vm7907_vm0, %v7906_v1 }
 0x3f2   :  { %v486_v45 = vpop.f32.mrb[8].mxu1 }
 0x3f3   :  { %v487_v46 = vadd.f32 %v6418_v44, %v486_v45  ;;  %v6859_v47 = vpop.f32.mrb[9].mxu1 }
 0x3f4   :  { %v489_v48 = vpop.f32.mrb[10].mxu1 }
 0x3f5   :  { %v493_v49 = vmul.f32 0.99, %v487_v46  ;;  %v490_v50 = vadd.f32 %v6418_v44, %v489_v48  ;;  %v6860_v51 = vpop.f32.mrb[11].mxu1 }
 0x3f7   :  { %v8213_v53 = vadd.f32 0.00125, %v493_v49  ;;  %v494_v54 = vmul.f32 0.99, %v490_v50 }
 0x3f9   :  { %v499_v56 = vadd.f32 %v497_v52, %v8213_v53  ;;  %v8217_v57 = vadd.f32 0.00125, %v494_v54 }
 0x3fb   :  { %v8220_v58 = vadd.f32 %v498_v55, %v8217_v57  ;;  %v7418_v59 = vpack.c.bf16 %v8217_v57, %v8213_v53  ;;  %v515_v60 = vsel %vm514_vm3, %v499_v56, -inf  ;;  %v502_v61 = vsel %vm501_vm4, %v499_v56, -inf }
 0x3fc   :  { %516 = vmax.xlane.f32.xlu1 %v515_v60  ;;  %503 = vmax.xlane.f32.xlu0 %v502_v61  ;;  %v528_v62 = vsel %vm527_vm5, %v499_v56, -inf  ;;  %v541_v0 = vsel %vm540_vm6, %v499_v56, -inf }
 0x3fd   :  { %v518_v63 = vsel %vm514_vm3, %v8220_v58, -inf  ;;  %v531_v2 = vsel %vm527_vm5, %v8220_v58, -inf  ;;  %v544_v3 = vsel %vm540_vm6, %v8220_v58, -inf  ;;  %v505_v4 = vsel %vm501_vm4, %v8220_v58, -inf }
 0x3fe   :  { %vm557_vm3 = vcmask 195584   ;;  %vm600_vm5 = vcmask 326656   ;;  %vm963_vm6 = vcmask 31744  }
 0x400   :  { %529 = vmax.xlane.f32.xlu0 %v528_v62  ;;  %519 = vmax.xlane.f32.xlu1 %v518_v63 }
 0x404   :  { %542 = vmax.xlane.f32.xlu0 %v541_v0  ;;  %532 = vmax.xlane.f32.xlu1 %v531_v2  ;;  %v7590_v2 = vld [vmem:[%s9322_s9] sm:$0xff]  }
 0x405   :  { %6872 = vmatpush3.bf16.msra.mxu1 %v7590_v2 }
 0x406   :  { %6873 = vmatprep.subr.bf16.mxu1 %v7906_v1 }
 0x408   :  { %545 = vmax.xlane.f32.xlu1 %v544_v3  ;;  %506 = vmax.xlane.f32.xlu0 %v505_v4  ;;  %v7591_v3 = vld [vmem:[%s9322_s9 + $0x8] sm:$0xff]   ;;  %s9337_s9 = sld [smem:[#allocation25_spill]] }
 0x409   :  { %6874 = vmatpush3.bf16.msra.mxu1 %v7591_v3 }
 0x40a   :  { %6879 = vmatprep.subr.bf16.mxu1 %v7906_v1 }
 0x41e   :  { %7506 = vrot.lane.b32.xlu0 %v7505_v9, %s7908_s5  ;;  %s9336_s5 = sld [smem:[#allocation23_spill]] }
 0x489   :  { %v517_v12 = vpop.xlane.xlu1 %516  ;;  %v504_v13 = vpop.xlane.xlu0 %503 }
 0x48a   :  { %vm521_vm8 = vcmp.eq.f32.partialorder %v499_v56, %v517_v12  ;;  %vm508_vm9 = vcmp.eq.f32.partialorder %v499_v56, %v504_v13  ;;  %v6435_v12 = vld [vmem:[%s9323_s13] ss:$0 sm:$0xff]  ;;  %s9338_s13 = sld [smem:[#allocation27_spill]] }
 0x48b   :  { %v6424_v18 = vsel %vm521_vm8, 1.0, %v7906_v1  ;;  %v6422_v19 = vsel %vm508_vm9, 1.0, %v7906_v1  ;;  %vm2794_vm8 = vcmask 97280   ;;  %vm2799_vm9 = vcmask 162816  }
 0x48c   :  { %v553_v26 = vsel %vm501_vm4, %v6422_v19, %v6424_v18 }
 0x48d   :  { %v530_v14 = vpop.xlane.xlu0 %529  ;;  %v520_v15 = vpop.xlane.xlu1 %519 }
 0x48e   :  { %vm534_vm10 = vcmp.eq.f32.partialorder %v499_v56, %v530_v14  ;;  %vm522_vm11 = vcmp.eq.f32.partialorder %v8220_v58, %v520_v15 }
 0x48f   :  { %v6426_v22 = vsel %vm534_vm10, 1.0, %v7906_v1  ;;  %v6425_v23 = vsel %vm522_vm11, 1.0, %v7906_v1  ;;  %vm2804_vm10 = vcmask 228352   ;;  %vm3031_vm11 = vcmask 523264  }
 0x490   :  { %v555_v29 = vsel %vm235_vm1, %v553_v26, %v6426_v22 }
 0x491   :  { %v543_v16 = vpop.xlane.xlu0 %542  ;;  %v533_v17 = vpop.xlane.xlu1 %532 }
 0x492   :  { %vm547_vm12 = vcmp.eq.f32.partialorder %v499_v56, %v543_v16  ;;  %vm535_vm13 = vcmp.eq.f32.partialorder %v8220_v58, %v533_v17  ;;  %v6436_v16 = vld [vmem:[%s9324_s25] ss:$0 sm:$0xff]  ;;  %s9339_s25 = sld [smem:[#allocation28_spill]] }
 0x493   :  { %v6428_v24 = vsel %vm547_vm12, 1.0, %v7906_v1  ;;  %v6427_v27 = vsel %vm535_vm13, 1.0, %v7906_v1  ;;  %vm6348_vm12 = vcmask 482304   ;;  %vm6350_vm13 = vcmask 744448  }
 0x494   :  { %v8255_v33 = vsel %vm557_vm3, %v555_v29, %v6428_v24 }
 0x495   :  { %v546_v20 = vpop.xlane.xlu1 %545  ;;  %v507_v21 = vpop.xlane.xlu0 %506 }
 0x496   :  { %vm548_vm14 = vcmp.eq.f32.partialorder %v8220_v58, %v546_v20  ;;  %vm509_vm15 = vcmp.eq.f32.partialorder %v8220_v58, %v507_v21  ;;  %v6437_v21 = vld [vmem:[%s9325_s29] ss:$0 sm:$0xff]  ;;  %s9340_s29 = sld [smem:[#allocation29_spill]] }
 0x497   :  { %v6423_v25 = vsel %vm509_vm15, 1.0, %v7906_v1  ;;  %v6429_v30 = vsel %vm548_vm14, 1.0, %v7906_v1  ;;  %vm6352_vm14 = vcmask 1006592  }
 0x498   :  { %v554_v28 = vsel %vm501_vm4, %v6423_v25, %v6425_v23 }
 0x499   :  { %v556_v31 = vsel %vm235_vm1, %v554_v28, %v6427_v27  ;;  %v7507_v32 = vpop.permute.xlu0 %7506 }
 0x49a   :  { %v8258_v34 = vsel %vm557_vm3, %v556_v31, %v6429_v30  ;;  %v7509_v35 = vunpack.i.h.bf16 %v7507_v32  ;;  %v7508_v36 = vunpack.i.l.bf16 %v7507_v32 }
 0x49b   :  { %v7421_v37 = vpack.c.bf16 %v8258_v34, %v8255_v33 }
 0x49c   :  { %v571_v38 = vsel %vm306_vm2, %v8258_v34, %v7509_v35  ;;  %v570_v39 = vsel %vm306_vm2, %v8255_v33, %v7508_v36 }
 0x49d   :  { %v577_v40 = vpack.c.bf16 %v571_v38, %v570_v39 }
 0x49f   :  { %6868 = vmatmul.mubr.msk.bf16.vlgmr.msra.gmra.mrb[4].mxu0 %vm600_vm5, %v577_v40 }
 0x572   :  { %v642_v42 = vpop.f32.mrb[4].mxu0 }
 0x573   :  { %v643_v43 = vadd.f32 %v6430_v41, %v642_v42  ;;  %v6869_v44 = vpop.f32.mrb[5].mxu0 }
 0x574   :  { %v645_v45 = vpop.f32.mrb[6].mxu0  ;;  %v7592_v44 = vld [vmem:[%s9326_s3] ss:$12 sps:$4 sm:$0xff]  }
 0x575   :  { %v649_v46 = vmax.f32 %v643_v43, 0.0  ;;  %v646_v47 = vadd.f32 %v6430_v41, %v645_v45  ;;  %v6870_v48 = vpop.f32.mrb[7].mxu0  ;;  %v7594_v43 = vld [vmem:[%s9326_s3 + $0x4] ss:$12 sps:$4 sm:$0xff]   ;;  %v7595_v45 = vld [vmem:[%s9326_s3 + $0x8] ss:$12 sps:$4 sm:$0xff]  }
 0x576   :  { %873 = vmatprep.subr.bf16.mxu0 %v7594_v43  ;;  %v7599_v48 = vld [vmem:[%s9326_s3 + $0x20] ss:$12 sps:$4 sm:$0xff]  }
 0x577   :  { %v650_v49 = vmax.f32 %v646_v47, 0.0  ;;  %v653_v50 = vsel %vm306_vm2, %v649_v46, 0.0  ;;  %874 = vmatpush1.bf16.msra.mxu0 %v7592_v44  ;;  %v7596_v47 = vld [vmem:[%s9326_s3 + $0x18] ss:$12 sps:$4 sm:$0xff]  }
 0x578   :  { %654 = vadd.xlane.f32.xlu1 %v653_v50 }
 0x579   :  { %v656_v51 = vsel %vm306_vm2, %v650_v49, 0.0 }
 0x57c   :  { %657 = vadd.xlane.f32.xlu1 %v656_v51 }
 0x605   :  { %v655_v52 = vpop.xlane.xlu1 %654 }
 0x606   :  { %v660_v54 = vmul.f32 0.03125, %v655_v52 }
 0x608   :  { %v662_v55 = vsub.f32 %v649_v46, %v660_v54  ;;  %v7598_v46 = vld [vmem:[%s9326_s3 + $0x1c] ss:$12 sps:$4 sm:$0xff]  }
 0x609   :  { %v658_v56 = vpop.xlane.xlu1 %657  ;;  %875 = vmatprep.subr.bf16.mxu0 %v7598_v46 }
 0x60a   :  { %v661_v58 = vmul.f32 0.03125, %v658_v56  ;;  %v664_v60 = vmul.f32 %v662_v55, %v662_v55  ;;  %876 = vmatpush1.bf16.msra.mxu0 %v7596_v47 }
 0x60b   :  { %6887 = vmatprep.subr.bf16.mxu0 %v7906_v1 }
 0x60c   :  { %v663_v61 = vsub.f32 %v650_v49, %v661_v58  ;;  %v666_v62 = vsel %vm306_vm2, %v664_v60, 0.0  ;;  %v7909_v49 = vmov 0   ;;  %v6441_v60 = vld [vmem:[%s9327_s8] ss:$0 sm:$0xff]  ;;  %s9342_s8 = sld [smem:[#allocation11_spill]] }
 0x60d   :  { %667 = vadd.xlane.f32.xlu1 %v666_v62  ;;  %905 = vmatprep.mubr.bf16.mxu0 %v7909_v49 }
 0x60e   :  { %v665_v63 = vmul.f32 %v663_v61, %v663_v61 }
 0x610   :  { %v669_v0 = vsel %vm306_vm2, %v665_v63, 0.0 }
 0x611   :  { %670 = vadd.xlane.f32.xlu1 %v669_v0  ;;  %v6442_v0 = vld [vmem:[%s9328_s14] ss:$0 sm:$0xff]  ;;  %s9343_s14 = sld [smem:[#allocation32_spill]] }
 0x69a   :  { %v668_v4 = vpop.xlane.xlu1 %667 }
 0x69b   :  { %v672_v5 = vmul.f32 0.03125, %v668_v4 }
 0x69d   :  { %v674_v6 = vadd.f32 1e-05, %v672_v5  ;;  %v808_v5 = vld [vmem:[%s9329_s19] sm:$0xff] }
 0x69e   :  { %v671_v7 = vpop.xlane.xlu1 %670 }
 0x69f   :  { %7644 = vrsqrt.f32 %v674_v6  ;;  %v673_v8 = vmul.f32 0.03125, %v671_v7  ;;  %v809_v6 = vld [vmem:[%s9329_s19 + $0x8] sm:$0xff]  ;;  %s9344_s19 = sld [smem:[#allocation31_spill]] }
 0x6a1   :  { %v675_v9 = vadd.f32 1e-05, %v673_v8 }
 0x6a3   :  { %7646 = vrsqrt.f32 %v675_v9 }
 0x6a9   :  { %v7645_v10 = vpop.eup %7644 }
 0x6aa   :  { %v678_v11 = vmul.f32 %v7645_v10, %v662_v55 }
 0x6ac   :  { %v686_v14 = vmul.f32 %v6435_v12, %v678_v11  ;;  %v823_v11 = vlaneseq }
 0x6ad   :  { %v7647_v13 = vpop.eup %7646 }
 0x6ae   :  { %v679_v15 = vmul.f32 %v7647_v13, %v663_v61  ;;  %v694_v18 = vadd.f32 %v6436_v16, %v686_v14  ;;  %v821_v14 = vld [vmem:[%s9330_s24] sm:$0x7] }
 0x6b0   :  { %v687_v17 = vmul.f32 %v6435_v12, %v679_v15  ;;  %v8311_v12 = vshrl.u32 %v823_v11, 7 }
 0x6b2   :  { %v695_v19 = vadd.f32 %v6436_v16, %v687_v17  ;;  %v8314_v13 = vsub.s32 1, %v8311_v12  ;;  %v8318_v15 = vsub.s32 2, %v8311_v12  ;;  %v8322_v17 = vsub.s32 0, %v8311_v12 }
 0x6b4   :  { %v700_v20 = vpack.c.bf16 %v695_v19, %v694_v18  ;;  %v830_v16 = vrot.slane %v821_v14, %v8314_v13 }
 0x6b6   :  { %6876 = vmatmul.mubr.msk.bf16.vlgmr.msra.gmra.mrb[12].mxu1 %vm306_vm2, %v700_v20 }
 0x6b7   :  { %6883 = vmatprep.mubr.msk.bf16.mxu1 %vm7907_vm0, %v7906_v1  ;;  %6880 = vmatpush3.bf16.msra.mxu1 %v7595_v45 }
 0x6b8   :  { %6881 = vmatprep.subr.bf16.mxu1 %v7906_v1 }
 0x6bb   :  { %6882 = vmatpush3.bf16.msra.mxu1 %v7599_v48 }
 0x6bc   :  { %6893 = vmatprep.subr.bf16.mxu1 %v7906_v1 }
 0x789   :  { %v757_v22 = vpop.f32.mrb[12].mxu1 }
 0x78a   :  { %v758_v23 = vadd.f32 %v6437_v21, %v757_v22  ;;  %v6877_v24 = vpop.f32.mrb[13].mxu1  ;;  %v834_v22 = vrot.slane %v821_v14, %v8318_v15 }
 0x78b   :  { %v760_v25 = vpop.f32.mrb[14].mxu1 }
 0x78c   :  { %v761_v26 = vadd.f32 %v6437_v21, %v760_v25  ;;  %v6878_v27 = vpop.f32.mrb[15].mxu1  ;;  %v766_v28 = vsel %vm306_vm2, %v758_v23, 0.0 }
 0x78d   :  { %767 = vadd.xlane.f32.xlu1 %v766_v28  ;;  %v826_v28 = vrot.slane %v821_v14, %v8322_v17 }
 0x78e   :  { %v769_v29 = vsel %vm306_vm2, %v761_v26, 0.0 }
 0x791   :  { %770 = vadd.xlane.f32.xlu1 %v769_v29 }
 0x81a   :  { %v768_v30 = vpop.xlane.xlu1 %767 }
 0x81b   :  { %v772_v31 = vmul.f32 0.03125, %v768_v30 }
 0x81d   :  { %v774_v32 = vsub.f32 %v758_v23, %v772_v31 }
 0x81e   :  { %v771_v35 = vpop.xlane.xlu1 %770 }
 0x81f   :  { %v773_v36 = vmul.f32 0.03125, %v771_v35  ;;  %v776_v38 = vmul.f32 %v774_v32, %v774_v32 }
 0x821   :  { %v775_v39 = vsub.f32 %v761_v26, %v773_v36  ;;  %v778_v40 = vsel %vm306_vm2, %v776_v38, 0.0 }
 0x822   :  { %779 = vadd.xlane.f32.xlu0 %v778_v40 }
 0x823   :  { %v777_v41 = vmul.f32 %v775_v39, %v775_v39 }
 0x825   :  { %v781_v42 = vsel %vm306_vm2, %v777_v41, 0.0 }
 0x826   :  { %782 = vadd.xlane.f32.xlu1 %v781_v42 }
 0x8af   :  { %v780_v50 = vpop.xlane.xlu0 %779 }
 0x8b0   :  { %v784_v51 = vmul.f32 0.03125, %v780_v50 }
 0x8b2   :  { %v786_v52 = vadd.f32 1e-05, %v784_v51 }
 0x8b3   :  { %v783_v54 = vpop.xlane.xlu1 %782 }
 0x8b4   :  { %7648 = vrsqrt.f32 %v786_v52  ;;  %v785_v55 = vmul.f32 0.03125, %v783_v54 }
 0x8b6   :  { %v787_v56 = vadd.f32 1e-05, %v785_v55 }
 0x8b8   :  { %7650 = vrsqrt.f32 %v787_v56 }
 0x8be   :  { %v7649_v58 = vpop.eup %7648 }
 0x8bf   :  { %v790_v61 = vmul.f32 %v7649_v58, %v774_v32 }
 0x8c1   :  { %v798_v62 = vmul.f32 %v6441_v60, %v790_v61 }
 0x8c2   :  { %v7651_v63 = vpop.eup %7650 }
 0x8c3   :  { %v791_v2 = vmul.f32 %v7651_v63, %v775_v39  ;;  %v806_v4 = vadd.f32 %v6442_v0, %v798_v62 }
 0x8c5   :  { %v799_v3 = vmul.f32 %v6441_v60, %v791_v2  ;;  %v8299_v8 = vadd.f32 %v808_v5, %v806_v4 }
 0x8c7   :  { %v807_v7 = vadd.f32 %v6442_v0, %v799_v3 }
 0x8c9   :  { %v8301_v9 = vadd.f32 %v809_v6, %v807_v7 }
 0x8cb   :  { %v820_v10 = vpack.c.bf16 %v8301_v9, %v8299_v8 }
 0x8cd   :  { %6449 = vmatmul.mubr.msk.bf16.vlgmr.msra.gmra.mrb[8].mxu0 %vm306_vm2, %v820_v10  ;;  %6884 = vmatmul.mubr.msk.bf16.vlgmr.msra.gmra.mrb[16].mxu1 %vm306_vm2, %v820_v10 }
 0x8ce   :  { %6889 = vmatprep.mubr.msk.bf16.mxu0 %vm7907_vm0, %v7906_v1  ;;  %6895 = vmatprep.mubr.msk.bf16.mxu1 %vm7907_vm0, %v7906_v1 }
 0x9a0   :  { %v907_v18 = vpop.f32.mrb[8].mxu0  ;;  %v950_v19 = vpop.f32.mrb[16].mxu1 }
 0x9a1   :  { %v909_v20 = vpop.f32.mrb[9].mxu0  ;;  %v6885_v21 = vpop.f32.mrb[17].mxu1  ;;  %v951_v31 = vadd.f32 %v950_v19, %v834_v22  ;;  %v908_v36 = vadd.f32 %v907_v18, %v826_v28 }
 0x9a2   :  { %v910_v23 = vadd.f32 %v909_v20, %v830_v16  ;;  %v911_v24 = vpop.f32.mrb[10].mxu0  ;;  %v953_v25 = vpop.f32.mrb[18].mxu1 }
 0x9a3   :  { %v913_v26 = vpop.f32.mrb[11].mxu0  ;;  %v6886_v27 = vpop.f32.mrb[19].mxu1  ;;  %v954_v38 = vadd.f32 %v953_v25, %v834_v22  ;;  %v8337_v40 = vpack.c.bf16 %v951_v31, %v951_v31  ;;  %v912_v41 = vadd.f32 %v911_v24, %v826_v28  ;;  %v8340_v42 = vpack.c.bf16 %v908_v36, %v908_v36 }
 0x9a4   :  { %v8326_v29 = vpack.c.bf16 %v910_v23, %v910_v23  ;;  %v914_v30 = vadd.f32 %v913_v26, %v830_v16 }
 0x9a5   :  { %v8342_v43 = vpack.c.bf16 %v954_v38, %v954_v38  ;;  %v8344_v44 = vpack.c.bf16 %v912_v41, %v912_v41  ;;  %v1086_v45 = vsel %vm604_vm7, %v8337_v40, 0 }
 0x9a6   :  { %v8328_v32 = vpack.c.bf16 %v914_v30, %v914_v30  ;;  %v968_v35 = vsel %vm963_vm6, %v8326_v29, 0 }
 0x9a7   :  { %6888 = vmatpush3.bf16.xpose.msra.mxu0 %v968_v35  ;;  %v1132_v46 = vsel %vm604_vm7, %v8342_v43, 0 }
 0x9a8   :  { %1230 = vrot.lane.b32.xlu0 %v8328_v32, %s7910_s30  ;;  %v1014_v39 = vsel %vm963_vm6, %v8328_v32, 0  ;;  %6899 = vmatprep.subr.bf16.mxu0 %v7906_v1 }
 0x9a9   :  { %6894 = vmatpush3.bf16.xpose.msra.mxu1 %v1014_v39 }
 0x9aa   :  { %6905 = vmatprep.subr.bf16.mxu1 %v7906_v1 }
 0x9ae   :  { %6890 = vmatmul.mubr.msk.bf16.vlgmr.msra.gmra.mrb[12].mxu0 %vm963_vm6, %v8340_v42 }
 0x9af   :  { %6900 = vmatpush3.bf16.msra.mxu0 %v1086_v45  ;;  %6901 = vmatprep.mubr.msk.bf16.mxu0 %vm7907_vm0, %v7906_v1 }
 0x9b0   :  { %6896 = vmatmul.mubr.msk.bf16.vlgmr.msra.gmra.mrb[20].mxu1 %vm963_vm6, %v8344_v44  ;;  %6911 = vmatprep.subr.bf16.mxu0 %v7906_v1 }
 0x9b1   :  { %6906 = vmatpush3.bf16.msra.mxu1 %v1132_v46  ;;  %6907 = vmatprep.mubr.msk.bf16.mxu1 %vm7907_vm0, %v7906_v1 }
 0x9b2   :  { %6917 = vmatprep.subr.bf16.mxu1 %v7906_v1 }
 0xa1a   :  { %v1231_v25 = vpop.permute.xlu0 %1230 }
 0xa1b   :  { %v1236_v27 = vsel %vm963_vm6, %v1231_v25, 0 }
 0xa81   :  { %v1004_v47 = vpop.f32.mrb[12].mxu0 }
 0xa82   :  { %v1056_v48 = vmul.f32 0.5, %v1004_v47  ;;  %v6891_v50 = vpop.f32.mrb[13].mxu0 }
 0xa83   :  { %v1007_v51 = vpop.f32.mrb[14].mxu0  ;;  %v1050_v52 = vpop.f32.mrb[20].mxu1 }
 0xa84   :  { %v1057_v54 = vmul.f32 0.5, %v1050_v52  ;;  %v6892_v55 = vpop.f32.mrb[15].mxu0  ;;  %v6897_v56 = vpop.f32.mrb[21].mxu1  ;;  %v1058_v58 = vsel %vm501_vm4, %v1056_v48, -inf }
 0xa85   :  { %1059 = vmax.xlane.f32.xlu1 %v1058_v58  ;;  %v1053_v60 = vpop.f32.mrb[22].mxu1 }
 0xa86   :  { %v6898_v61 = vpop.f32.mrb[23].mxu1  ;;  %v1061_v62 = vsel %vm501_vm4, %v1057_v54, -inf }
 0xa89   :  { %1062 = vmax.xlane.f32.xlu1 %v1061_v62 }
 0xa9a   :  { %1178 = vrot.lane.b32.xlu1 %v8326_v29, %s7910_s30 }
 0xb12   :  { %v1060_v63 = vpop.xlane.xlu1 %1059 }
 0xb13   :  { %v1064_v0 = vsub.f32 %v1056_v48, %v1060_v63 }
 0xb15   :  { %v1066_v2 = vmul.f32 1.442695, %v1064_v0 }
 0xb16   :  { %v1063_v3 = vpop.xlane.xlu1 %1062 }
 0xb17   :  { %7652 = vpow2.f32 %v1066_v2  ;;  %v1065_v4 = vsub.f32 %v1057_v54, %v1063_v3 }
 0xb19   :  { %v1068_v5 = vmul.f32 1.442695, %v1065_v4 }
 0xb1a   :  { %v1179_v14 = vpop.permute.xlu1 %1178 }
 0xb1b   :  { %7654 = vpow2.f32 %v1068_v5  ;;  %v1184_v23 = vsel %vm963_vm6, %v1179_v14, 0 }
 0xb21   :  { %v7653_v6 = vpop.eup %7652 }
 0xb22   :  { %v1070_v7 = vsel %vm501_vm4, %v7653_v6, 0.0 }
 0xb23   :  { %1071 = vadd.xlane.f32.xlu1 %v1070_v7 }
 0xb25   :  { %v7655_v10 = vpop.eup %7654 }
 0xb26   :  { %v1073_v11 = vsel %vm501_vm4, %v7655_v10, 0.0 }
 0xb27   :  { %1074 = vadd.xlane.f32.xlu1 %v1073_v11 }
 0xb38   :  { %1175 = vrot.lane.b32.xlu1 %v8340_v42, %s7910_s30 }
 0xb3c   :  { %1227 = vrot.lane.b32.xlu1 %v8344_v44, %s7910_s30 }
 0xbb0   :  { %v1072_v16 = vpop.xlane.xlu1 %1071 }
 0xbb1   :  { %7656 = vrcp.f32 %v1072_v16 }
 0xbb4   :  { %v1075_v18 = vpop.xlane.xlu1 %1074 }
 0xbb5   :  { %7658 = vrcp.f32 %v1075_v18 }
 0xbb8   :  { %v1176_v28 = vpop.permute.xlu1 %1175 }
 0xbbb   :  { %v7657_v19 = vpop.eup %7656 }
 0xbbc   :  { %v1078_v20 = vmul.f32 %v7657_v19, %v7653_v6  ;;  %v1228_v30 = vpop.permute.xlu1 %1227 }
 0xbbe   :  { %v1080_v21 = vpack.c.bf16 %v1078_v20, %v1078_v20 }
 0xbbf   :  { %v7659_v22 = vpop.eup %7658 }
 0xbc0   :  { %6902 = vmatmul.mubr.msk.bf16.vlgmr.msra.gmra.mrb[16].mxu0 %vm501_vm4, %v1080_v21  ;;  %v1079_v24 = vmul.f32 %v7659_v22, %v7655_v10 }
 0xbc1   :  { %6912 = vmatpush3.bf16.xpose.msra.mxu0 %v1184_v23  ;;  %6913 = vmatprep.mubr.msk.bf16.mxu0 %vm7907_vm0, %v7906_v1 }
 0xbc2   :  { %v1081_v26 = vpack.c.bf16 %v1079_v24, %v1079_v24  ;;  %6923 = vmatprep.subr.bf16.mxu0 %v7906_v1 }
 0xbc4   :  { %6908 = vmatmul.mubr.msk.bf16.vlgmr.msra.gmra.mrb[24].mxu1 %vm501_vm4, %v1081_v26 }
 0xbc5   :  { %6918 = vmatpush3.bf16.xpose.msra.mxu1 %v1236_v27  ;;  %6919 = vmatprep.mubr.msk.bf16.mxu1 %vm7907_vm0, %v7906_v1 }
 0xbc6   :  { %6929 = vmatprep.subr.bf16.mxu1 %v7906_v1 }
 0xbc8   :  { %6914 = vmatmul.mubr.msk.bf16.vlgmr.msra.gmra.mrb[20].mxu0 %vm963_vm6, %v1176_v28 }
 0xbc9   :  { %6925 = vmatprep.mubr.msk.bf16.mxu0 %vm7907_vm0, %v7906_v1 }
 0xbcc   :  { %6920 = vmatmul.mubr.msk.bf16.vlgmr.msra.gmra.mrb[28].mxu1 %vm963_vm6, %v1228_v30 }
 0xbcd   :  { %6931 = vmatprep.mubr.msk.bf16.mxu1 %vm7907_vm0, %v7906_v1 }
 0xc93   :  { %v8386_v31 = vpop.f32.mrb[16].mxu0 }
 0xc94   :  { %v6903_v35 = vpop.f32.mrb[17].mxu0 }
 0xc95   :  { %v1125_v36 = vpop.f32.mrb[18].mxu0 }
 0xc96   :  { %v6904_v38 = vpop.f32.mrb[19].mxu0 }
 0xc97   :  { %v8388_v39 = vpop.f32.mrb[24].mxu1 }
 0xc98   :  { %v6909_v41 = vpop.f32.mrb[25].mxu1 }
 0xc99   :  { %v1171_v45 = vpop.f32.mrb[26].mxu1 }
 0xc9a   :  { %v6910_v46 = vpop.f32.mrb[27].mxu1 }
 0xc9b   :  { %v1220_v47 = vpop.f32.mrb[20].mxu0 }
 0xc9c   :  { %v1278_v48 = vmul.f32 0.5, %v1220_v47  ;;  %v6915_v50 = vpop.f32.mrb[21].mxu0 }
 0xc9d   :  { %v1223_v51 = vpop.f32.mrb[22].mxu0 }
 0xc9e   :  { %v6916_v52 = vpop.f32.mrb[23].mxu0  ;;  %v1280_v54 = vsel %vm501_vm4, %v1278_v48, -inf }
 0xc9f   :  { %1281 = vmax.xlane.f32.xlu1 %v1280_v54  ;;  %v1272_v55 = vpop.f32.mrb[28].mxu1 }
 0xca0   :  { %v1279_v56 = vmul.f32 0.5, %v1272_v55  ;;  %v6921_v58 = vpop.f32.mrb[29].mxu1 }
 0xca1   :  { %v1275_v60 = vpop.f32.mrb[30].mxu1 }
 0xca2   :  { %v6922_v61 = vpop.f32.mrb[31].mxu1  ;;  %v1283_v62 = vsel %vm501_vm4, %v1279_v56, -inf }
 0xca3   :  { %1284 = vmax.xlane.f32.xlu0 %v1283_v62 }
 0xcb0   :  { %1305 = vrot.lane.b32.xlu1 %v8337_v40, %s7910_s30 }
 0xd2c   :  { %v1282_v63 = vpop.xlane.xlu1 %1281 }
 0xd2d   :  { %v1286_v0 = vsub.f32 %v1278_v48, %v1282_v63 }
 0xd2f   :  { %v1288_v2 = vmul.f32 1.442695, %v1286_v0 }
 0xd30   :  { %v1306_v3 = vpop.permute.xlu1 %1305  ;;  %v1285_v4 = vpop.xlane.xlu0 %1284 }
 0xd31   :  { %7660 = vpow2.f32 %v1288_v2  ;;  %v1311_v5 = vsel %vm604_vm7, %v1306_v3, 0  ;;  %v1287_v6 = vsub.f32 %v1279_v56, %v1285_v4 }
 0xd32   :  { %6924 = vmatpush3.bf16.msra.mxu0 %v1311_v5 }
 0xd33   :  { %v1290_v7 = vmul.f32 1.442695, %v1287_v6  ;;  %6935 = vmatprep.subr.bf16.mxu0 %v7906_v1 }
 0xd35   :  { %7662 = vpow2.f32 %v1290_v7 }
 0xd3b   :  { %v7661_v10 = vpop.eup %7660 }
 0xd3c   :  { %v1292_v11 = vsel %vm501_vm4, %v7661_v10, 0.0 }
 0xd3d   :  { %1293 = vadd.xlane.f32.xlu1 %v1292_v11 }
 0xd3f   :  { %v7663_v14 = vpop.eup %7662 }
 0xd40   :  { %v1295_v16 = vsel %vm501_vm4, %v7663_v14, 0.0 }
 0xd41   :  { %1296 = vadd.xlane.f32.xlu0 %v1295_v16 }
 0xd4e   :  { %1404 = vrot.lane.b32.xlu1 %v8326_v29, %s7911_s6 }
 0xd52   :  { %1454 = vrot.lane.b32.xlu1 %v8328_v32, %s7911_s6 }
 0xd56   :  { %1452 = vrot.lane.b32.xlu1 %v8344_v44, %s7911_s6 }
 0xd57   :  { %1354 = vrot.lane.b32.xlu0 %v8342_v43, %s7910_s30 }
 0xd5b   :  { %1402 = vrot.lane.b32.xlu0 %v8340_v42, %s7911_s6 }
 0xdca   :  { %v1294_v18 = vpop.xlane.xlu1 %1293 }
 0xdcb   :  { %7664 = vrcp.f32 %v1294_v18 }
 0xdce   :  { %v1297_v19 = vpop.xlane.xlu0 %1296  ;;  %v1405_v23 = vpop.permute.xlu1 %1404 }
 0xdcf   :  { %7666 = vrcp.f32 %v1297_v19  ;;  %v1410_v27 = vsel %vm963_vm6, %v1405_v23, 0 }
 0xdd2   :  { %v1355_v20 = vpop.permute.xlu0 %1354  ;;  %v1455_v30 = vpop.permute.xlu1 %1454 }
 0xdd3   :  { %v1360_v21 = vsel %vm604_vm7, %v1355_v20, 0  ;;  %v1460_v36 = vsel %vm963_vm6, %v1455_v30, 0 }
 0xdd4   :  { %6930 = vmatpush3.bf16.msra.mxu1 %v1360_v21 }
 0xdd5   :  { %v7665_v22 = vpop.eup %7664  ;;  %6941 = vmatprep.subr.bf16.mxu1 %v7906_v1 }
 0xdd6   :  { %v1300_v24 = vmul.f32 %v7665_v22, %v7661_v10  ;;  %v1403_v38 = vpop.permute.xlu0 %1402  ;;  %v1453_v41 = vpop.permute.xlu1 %1452 }
 0xdd8   :  { %v1302_v25 = vpack.c.bf16 %v1300_v24, %v1300_v24 }
 0xdd9   :  { %v7667_v26 = vpop.eup %7666 }
 0xdda   :  { %6926 = vmatmul.mubr.msk.bf16.vlgmr.msra.gmra.mrb[24].mxu0 %vm501_vm4, %v1302_v25  ;;  %v1301_v28 = vmul.f32 %v7667_v26, %v7663_v14 }
 0xddb   :  { %6936 = vmatpush3.bf16.xpose.msra.mxu0 %v1410_v27  ;;  %6937 = vmatprep.mubr.msk.bf16.mxu0 %vm7907_vm0, %v7906_v1 }
 0xddc   :  { %v1303_v35 = vpack.c.bf16 %v1301_v28, %v1301_v28  ;;  %6947 = vmatprep.subr.bf16.mxu0 %v7906_v1 }
 0xdde   :  { %6932 = vmatmul.mubr.msk.bf16.vlgmr.msra.gmra.mrb[32].mxu1 %vm501_vm4, %v1303_v35 }
 0xddf   :  { %6942 = vmatpush3.bf16.xpose.msra.mxu1 %v1460_v36  ;;  %6943 = vmatprep.mubr.msk.bf16.mxu1 %vm7907_vm0, %v7906_v1 }
 0xde0   :  { %6953 = vmatprep.subr.bf16.mxu1 %v7906_v1 }
 0xde2   :  { %6938 = vmatmul.mubr.msk.bf16.vlgmr.msra.gmra.mrb[28].mxu0 %vm963_vm6, %v1403_v38 }
 0xde3   :  { %6949 = vmatprep.mubr.msk.bf16.mxu0 %vm7907_vm0, %v7906_v1 }
 0xde6   :  { %6944 = vmatmul.mubr.msk.bf16.vlgmr.msra.gmra.mrb[36].mxu1 %vm963_vm6, %v1453_v41 }
 0xde7   :  { %6955 = vmatprep.mubr.msk.bf16.mxu1 %vm7907_vm0, %v7906_v1 }
 0xead   :  { %v8426_v45 = vpop.f32.mrb[24].mxu0 }
 0xeae   :  { %v6927_v46 = vpop.f32.mrb[25].mxu0 }
 0xeaf   :  { %v1350_v47 = vpop.f32.mrb[26].mxu0 }
 0xeb0   :  { %v6928_v48 = vpop.f32.mrb[27].mxu0 }
 0xeb1   :  { %v8428_v50 = vpop.f32.mrb[32].mxu1 }
 0xeb2   :  { %v7510_v51 = vpack.i.bf16 %v8428_v50, %v8426_v45  ;;  %v6933_v52 = vpop.f32.mrb[33].mxu1 }
 0xeb3   :  { %v1399_v54 = vpop.f32.mrb[34].mxu1 }
 0xeb4   :  { %v6934_v55 = vpop.f32.mrb[35].mxu1 }
 0xeb5   :  { %v1446_v56 = vpop.f32.mrb[28].mxu0 }
 0xeb6   :  { %v1502_v58 = vmul.f32 0.5, %v1446_v56  ;;  %v6939_v60 = vpop.f32.mrb[29].mxu0 }
 0xeb7   :  { %v1449_v61 = vpop.f32.mrb[30].mxu0 }
 0xeb8   :  { %v6940_v62 = vpop.f32.mrb[31].mxu0  ;;  %v1504_v63 = vsel %vm501_vm4, %v1502_v58, -inf }
 0xeb9   :  { %1505 = vmax.xlane.f32.xlu0 %v1504_v63  ;;  %v1496_v0 = vpop.f32.mrb[36].mxu1 }
 0xeba   :  { %v1503_v2 = vmul.f32 0.5, %v1496_v0  ;;  %v6945_v3 = vpop.f32.mrb[37].mxu1 }
 0xebb   :  { %v1499_v4 = vpop.f32.mrb[38].mxu1 }
 0xebc   :  { %v6946_v5 = vpop.f32.mrb[39].mxu1  ;;  %v1507_v6 = vsel %vm501_vm4, %v1503_v2, -inf }
 0xebd   :  { %1508 = vmax.xlane.f32.xlu1 %v1507_v6 }
 0xece   :  { %1528 = vrot.lane.b32.xlu1 %v8337_v40, %s7911_s6 }
 0xed2   :  { %1626 = vrot.lane.b32.xlu1 %v8326_v29, %s7912_s12 }
 0xed6   :  { %1676 = vrot.lane.b32.xlu1 %v8328_v32, %s7912_s12 }
 0xeda   :  { %1674 = vrot.lane.b32.xlu1 %v8344_v44, %s7912_s12 }
 0xf46   :  { %v1506_v7 = vpop.xlane.xlu0 %1505 }
 0xf47   :  { %v1510_v10 = vsub.f32 %v1502_v58, %v1506_v7 }
 0xf49   :  { %v1512_v11 = vmul.f32 1.442695, %v1510_v10 }
 0xf4a   :  { %v1509_v14 = vpop.xlane.xlu1 %1508 }
 0xf4b   :  { %7668 = vpow2.f32 %v1512_v11  ;;  %v1511_v16 = vsub.f32 %v1503_v2, %v1509_v14 }
 0xf4d   :  { %v1514_v18 = vmul.f32 1.442695, %v1511_v16 }
 0xf4e   :  { %v1529_v19 = vpop.permute.xlu1 %1528 }
 0xf4f   :  { %7670 = vpow2.f32 %v1514_v18  ;;  %v1534_v20 = vsel %vm604_vm7, %v1529_v19, 0 }
 0xf50   :  { %6948 = vmatpush3.bf16.msra.mxu0 %v1534_v20 }
 0xf51   :  { %6959 = vmatprep.subr.bf16.mxu0 %v7906_v1 }
 0xf52   :  { %v1627_v35 = vpop.permute.xlu1 %1626 }
 0xf53   :  { %v1632_v46 = vsel %vm963_vm6, %v1627_v35, 0 }
 0xf55   :  { %v7669_v21 = vpop.eup %7668 }
 0xf56   :  { %v1516_v22 = vsel %vm501_vm4, %v7669_v21, 0.0  ;;  %v1677_v48 = vpop.permute.xlu1 %1676 }
 0xf57   :  { %1517 = vadd.xlane.f32.xlu0 %v1516_v22  ;;  %v1682_v54 = vsel %vm963_vm6, %v1677_v48, 0 }
 0xf59   :  { %v7671_v23 = vpop.eup %7670 }
 0xf5a   :  { %v1519_v24 = vsel %vm501_vm4, %v7671_v23, 0.0  ;;  %v1675_v56 = vpop.permute.xlu1 %1674 }
 0xf5b   :  { %1520 = vadd.xlane.f32.xlu0 %v1519_v24 }
 0xf71   :  { %1576 = vrot.lane.b32.xlu0 %v8342_v43, %s7911_s6 }
 0xf75   :  { %1624 = vrot.lane.b32.xlu0 %v8340_v42, %s7912_s12 }
 0xfe4   :  { %v1518_v25 = vpop.xlane.xlu0 %1517 }
 0xfe5   :  { %7672 = vrcp.f32 %v1518_v25 }
 0xfe8   :  { %v1521_v26 = vpop.xlane.xlu0 %1520 }
 0xfe9   :  { %7674 = vrcp.f32 %v1521_v26 }
 0xfec   :  { %v1577_v27 = vpop.permute.xlu0 %1576 }
 0xfed   :  { %v1582_v28 = vsel %vm604_vm7, %v1577_v27, 0 }
 0xfee   :  { %6954 = vmatpush3.bf16.msra.mxu1 %v1582_v28 }
 0xfef   :  { %v7673_v30 = vpop.eup %7672  ;;  %6965 = vmatprep.subr.bf16.mxu1 %v7906_v1 }
 0xff0   :  { %v1524_v36 = vmul.f32 %v7673_v30, %v7669_v21  ;;  %v1625_v55 = vpop.permute.xlu0 %1624 }
 0xff2   :  { %v1526_v38 = vpack.c.bf16 %v1524_v36, %v1524_v36 }
 0xff3   :  { %v7675_v41 = vpop.eup %7674 }
 0xff4   :  { %6950 = vmatmul.mubr.msk.bf16.vlgmr.msra.gmra.mrb[32].mxu0 %vm501_vm4, %v1526_v38  ;;  %v1525_v47 = vmul.f32 %v7675_v41, %v7671_v23 }
 0xff5   :  { %6960 = vmatpush3.bf16.xpose.msra.mxu0 %v1632_v46  ;;  %6961 = vmatprep.mubr.msk.bf16.mxu0 %vm7907_vm0, %v7906_v1 }
 0xff6   :  { %v1527_v52 = vpack.c.bf16 %v1525_v47, %v1525_v47  ;;  %6971 = vmatprep.subr.bf16.mxu0 %v7906_v1 }
 0xff8   :  { %6956 = vmatmul.mubr.msk.bf16.vlgmr.msra.gmra.mrb[40].mxu1 %vm501_vm4, %v1527_v52 }
 0xff9   :  { %6966 = vmatpush3.bf16.xpose.msra.mxu1 %v1682_v54  ;;  %6967 = vmatprep.mubr.msk.bf16.mxu1 %vm7907_vm0, %v7906_v1 }
 0xffa   :  { %6977 = vmatprep.subr.bf16.mxu1 %v7906_v1 }
 0xffc   :  { %6962 = vmatmul.mubr.msk.bf16.vlgmr.msra.gmra.mrb[36].mxu0 %vm963_vm6, %v1625_v55 }
 0xffd   :  { %6973 = vmatprep.mubr.msk.bf16.mxu0 %vm7907_vm0, %v7906_v1 }
0x1000   :  { %6968 = vmatmul.mubr.msk.bf16.vlgmr.msra.gmra.mrb[44].mxu1 %vm963_vm6, %v1675_v56 }
0x1001   :  { %6979 = vmatprep.mubr.msk.bf16.mxu1 %vm7907_vm0, %v7906_v1 }
0x10c7   :  { %v8468_v58 = vpop.f32.mrb[32].mxu0 }
0x10c8   :  { %v6951_v60 = vpop.f32.mrb[33].mxu0 }
0x10c9   :  { %v1573_v61 = vpop.f32.mrb[34].mxu0 }
0x10ca   :  { %v6952_v62 = vpop.f32.mrb[35].mxu0 }
0x10cb   :  { %v8470_v63 = vpop.f32.mrb[40].mxu1 }
0x10cc   :  { %v7515_v0 = vpack.i.bf16 %v8470_v63, %v8468_v58  ;;  %v6957_v2 = vpop.f32.mrb[41].mxu1 }
0x10cd   :  { %v1621_v3 = vpop.f32.mrb[42].mxu1 }
0x10ce   :  { %v6958_v4 = vpop.f32.mrb[43].mxu1 }
0x10cf   :  { %v1668_v5 = vpop.f32.mrb[36].mxu0 }
0x10d0   :  { %v1724_v6 = vmul.f32 0.5, %v1668_v5  ;;  %v6963_v7 = vpop.f32.mrb[37].mxu0 }
0x10d1   :  { %v1671_v10 = vpop.f32.mrb[38].mxu0 }
0x10d2   :  { %v6964_v11 = vpop.f32.mrb[39].mxu0  ;;  %v1726_v14 = vsel %vm501_vm4, %v1724_v6, -inf }
0x10d3   :  { %1727 = vmax.xlane.f32.xlu0 %v1726_v14  ;;  %v1718_v16 = vpop.f32.mrb[44].mxu1 }
0x10d4   :  { %v1725_v18 = vmul.f32 0.5, %v1718_v16  ;;  %v6969_v19 = vpop.f32.mrb[45].mxu1 }
0x10d5   :  { %v1721_v20 = vpop.f32.mrb[46].mxu1 }
0x10d6   :  { %v6970_v21 = vpop.f32.mrb[47].mxu1  ;;  %v1729_v22 = vsel %vm501_vm4, %v1725_v18, -inf }
0x10d7   :  { %1730 = vmax.xlane.f32.xlu1 %v1729_v22 }
0x10e8   :  { %1750 = vrot.lane.b32.xlu1 %v8337_v40, %s7912_s12 }
0x10ec   :  { %1848 = vrot.lane.b32.xlu1 %v8326_v29, %s7913_s20 }
0x10f0   :  { %1898 = vrot.lane.b32.xlu1 %v8328_v32, %s7913_s20 }
0x10f4   :  { %1896 = vrot.lane.b32.xlu1 %v8344_v44, %s7913_s20 }
0x1160   :  { %v1728_v23 = vpop.xlane.xlu0 %1727 }
0x1161   :  { %v1732_v24 = vsub.f32 %v1724_v6, %v1728_v23 }
0x1163   :  { %v1734_v25 = vmul.f32 1.442695, %v1732_v24 }
0x1164   :  { %v1731_v26 = vpop.xlane.xlu1 %1730 }
0x1165   :  { %7676 = vpow2.f32 %v1734_v25  ;;  %v1733_v27 = vsub.f32 %v1725_v18, %v1731_v26 }
0x1167   :  { %v1736_v28 = vmul.f32 1.442695, %v1733_v27 }
0x1168   :  { %v1751_v30 = vpop.permute.xlu1 %1750 }
0x1169   :  { %7678 = vpow2.f32 %v1736_v28  ;;  %v1756_v35 = vsel %vm604_vm7, %v1751_v30, 0 }
0x116a   :  { %6972 = vmatpush3.bf16.msra.mxu0 %v1756_v35 }
0x116b   :  { %6983 = vmatprep.subr.bf16.mxu0 %v7906_v1 }
0x116c   :  { %v1849_v56 = vpop.permute.xlu1 %1848 }
0x116d   :  { %v1854_v2 = vsel %vm963_vm6, %v1849_v56, 0 }
0x116f   :  { %v7677_v36 = vpop.eup %7676 }
0x1170   :  { %v1738_v38 = vsel %vm501_vm4, %v7677_v36, 0.0  ;;  %v1899_v4 = vpop.permute.xlu1 %1898 }
0x1171   :  { %1739 = vadd.xlane.f32.xlu0 %v1738_v38  ;;  %v1904_v6 = vsel %vm963_vm6, %v1899_v4, 0 }
0x1173   :  { %v7679_v41 = vpop.eup %7678 }
0x1174   :  { %v1741_v46 = vsel %vm501_vm4, %v7679_v41, 0.0  ;;  %v1897_v10 = vpop.permute.xlu1 %1896 }
0x1175   :  { %1742 = vadd.xlane.f32.xlu0 %v1741_v46 }
0x118b   :  { %1798 = vrot.lane.b32.xlu0 %v8342_v43, %s7912_s12 }
0x118f   :  { %1846 = vrot.lane.b32.xlu0 %v8340_v42, %s7913_s20 }
0x11fe   :  { %v1740_v47 = vpop.xlane.xlu0 %1739 }
0x11ff   :  { %7680 = vrcp.f32 %v1740_v47 }
0x1202   :  { %v1743_v48 = vpop.xlane.xlu0 %1742 }
0x1203   :  { %7682 = vrcp.f32 %v1743_v48 }
0x1206   :  { %v1799_v52 = vpop.permute.xlu0 %1798 }
0x1207   :  { %v1804_v54 = vsel %vm604_vm7, %v1799_v52, 0 }
0x1208   :  { %6978 = vmatpush3.bf16.msra.mxu1 %v1804_v54 }
0x1209   :  { %v7681_v55 = vpop.eup %7680  ;;  %6989 = vmatprep.subr.bf16.mxu1 %v7906_v1 }
0x120a   :  { %v1746_v60 = vmul.f32 %v7681_v55, %v7677_v36  ;;  %v1847_v7 = vpop.permute.xlu0 %1846 }
0x120c   :  { %v1748_v61 = vpack.c.bf16 %v1746_v60, %v1746_v60 }
0x120d   :  { %v7683_v62 = vpop.eup %7682 }
0x120e   :  { %6974 = vmatmul.mubr.msk.bf16.vlgmr.msra.gmra.mrb[40].mxu0 %vm501_vm4, %v1748_v61  ;;  %v1747_v3 = vmul.f32 %v7683_v62, %v7679_v41 }
0x120f   :  { %6984 = vmatpush3.bf16.xpose.msra.mxu0 %v1854_v2  ;;  %6985 = vmatprep.mubr.msk.bf16.mxu0 %vm7907_vm0, %v7906_v1 }
0x1210   :  { %v1749_v5 = vpack.c.bf16 %v1747_v3, %v1747_v3  ;;  %6995 = vmatprep.subr.bf16.mxu0 %v7906_v1 }
0x1212   :  { %6980 = vmatmul.mubr.msk.bf16.vlgmr.msra.gmra.mrb[48].mxu1 %vm501_vm4, %v1749_v5 }
0x1213   :  { %6990 = vmatpush3.bf16.xpose.msra.mxu1 %v1904_v6  ;;  %6991 = vmatprep.mubr.msk.bf16.mxu1 %vm7907_vm0, %v7906_v1 }
0x1214   :  { %7001 = vmatprep.subr.bf16.mxu1 %v7906_v1 }
0x1216   :  { %6986 = vmatmul.mubr.msk.bf16.vlgmr.msra.gmra.mrb[44].mxu0 %vm963_vm6, %v1847_v7 }
0x1217   :  { %6997 = vmatprep.mubr.msk.bf16.mxu0 %vm7907_vm0, %v7906_v1 }
0x121a   :  { %6992 = vmatmul.mubr.msk.bf16.vlgmr.msra.gmra.mrb[52].mxu1 %vm963_vm6, %v1897_v10 }
0x121b   :  { %7003 = vmatprep.mubr.msk.bf16.mxu1 %vm7907_vm0, %v7906_v1 }
0x12e1   :  { %v8510_v11 = vpop.f32.mrb[40].mxu0 }
0x12e2   :  { %v6975_v14 = vpop.f32.mrb[41].mxu0 }
0x12e3   :  { %v1795_v16 = vpop.f32.mrb[42].mxu0 }
0x12e4   :  { %v6976_v18 = vpop.f32.mrb[43].mxu0 }
0x12e5   :  { %v8512_v19 = vpop.f32.mrb[48].mxu1 }
0x12e6   :  { %v7520_v20 = vpack.i.bf16 %v8512_v19, %v8510_v11  ;;  %v6981_v21 = vpop.f32.mrb[49].mxu1 }
0x12e7   :  { %v1843_v22 = vpop.f32.mrb[50].mxu1 }
0x12e8   :  { %v6982_v23 = vpop.f32.mrb[51].mxu1 }
0x12e9   :  { %v1890_v24 = vpop.f32.mrb[44].mxu0 }
0x12ea   :  { %v1946_v25 = vmul.f32 0.5, %v1890_v24  ;;  %v6987_v26 = vpop.f32.mrb[45].mxu0 }
0x12eb   :  { %v1893_v27 = vpop.f32.mrb[46].mxu0 }
0x12ec   :  { %v6988_v28 = vpop.f32.mrb[47].mxu0  ;;  %v1948_v30 = vsel %vm501_vm4, %v1946_v25, -inf }
0x12ed   :  { %1949 = vmax.xlane.f32.xlu0 %v1948_v30  ;;  %v1940_v35 = vpop.f32.mrb[52].mxu1 }
0x12ee   :  { %v1947_v36 = vmul.f32 0.5, %v1940_v35  ;;  %v6993_v38 = vpop.f32.mrb[53].mxu1 }
0x12ef   :  { %v1943_v41 = vpop.f32.mrb[54].mxu1 }
0x12f0   :  { %v6994_v46 = vpop.f32.mrb[55].mxu1  ;;  %v1951_v47 = vsel %vm501_vm4, %v1947_v36, -inf }
0x12f1   :  { %1952 = vmax.xlane.f32.xlu1 %v1951_v47 }
0x1302   :  { %1972 = vrot.lane.b32.xlu1 %v8337_v40, %s7913_s20 }
0x1306   :  { %2070 = vrot.lane.b32.xlu1 %v8326_v29, %s7914_s4 }
0x130a   :  { %2120 = vrot.lane.b32.xlu1 %v8328_v32, %s7914_s4 }
0x130e   :  { %2118 = vrot.lane.b32.xlu1 %v8344_v44, %s7914_s4 }
0x137a   :  { %v1950_v48 = vpop.xlane.xlu0 %1949 }
0x137b   :  { %v1954_v52 = vsub.f32 %v1946_v25, %v1950_v48 }
0x137d   :  { %v1956_v54 = vmul.f32 1.442695, %v1954_v52 }
0x137e   :  { %v1953_v55 = vpop.xlane.xlu1 %1952 }
0x137f   :  { %7684 = vpow2.f32 %v1956_v54  ;;  %v1955_v56 = vsub.f32 %v1947_v36, %v1953_v55 }
0x1381   :  { %v1958_v60 = vmul.f32 1.442695, %v1955_v56 }
0x1382   :  { %v1973_v61 = vpop.permute.xlu1 %1972 }
0x1383   :  { %7686 = vpow2.f32 %v1958_v60  ;;  %v1978_v62 = vsel %vm604_vm7, %v1973_v61, 0 }
0x1384   :  { %6996 = vmatpush3.bf16.msra.mxu0 %v1978_v62 }
0x1385   :  { %7007 = vmatprep.subr.bf16.mxu0 %v7906_v1 }
0x1386   :  { %v2071_v18 = vpop.permute.xlu1 %2070 }
0x1387   :  { %v2076_v24 = vsel %vm963_vm6, %v2071_v18, 0 }
0x1389   :  { %v7685_v2 = vpop.eup %7684 }
0x138a   :  { %v1960_v3 = vsel %vm501_vm4, %v7685_v2, 0.0  ;;  %v2121_v26 = vpop.permute.xlu1 %2120 }
0x138b   :  { %1961 = vadd.xlane.f32.xlu0 %v1960_v3  ;;  %v2126_v28 = vsel %vm963_vm6, %v2121_v26, 0 }
0x138d   :  { %v7687_v4 = vpop.eup %7686 }
0x138e   :  { %v1963_v5 = vsel %vm501_vm4, %v7687_v4, 0.0  ;;  %v2119_v35 = vpop.permute.xlu1 %2118 }
0x138f   :  { %1964 = vadd.xlane.f32.xlu0 %v1963_v5 }
0x13a5   :  { %2020 = vrot.lane.b32.xlu0 %v8342_v43, %s7913_s20 }
0x13a9   :  { %2068 = vrot.lane.b32.xlu0 %v8340_v42, %s7914_s4 }
0x1418   :  { %v1962_v6 = vpop.xlane.xlu0 %1961 }
0x1419   :  { %7688 = vrcp.f32 %v1962_v6 }
0x141c   :  { %v1965_v7 = vpop.xlane.xlu0 %1964 }
0x141d   :  { %7690 = vrcp.f32 %v1965_v7 }
0x1420   :  { %v2021_v10 = vpop.permute.xlu0 %2020 }
0x1421   :  { %v2026_v14 = vsel %vm604_vm7, %v2021_v10, 0 }
0x1422   :  { %7002 = vmatpush3.bf16.msra.mxu1 %v2026_v14 }
0x1423   :  { %v7689_v16 = vpop.eup %7688  ;;  %7013 = vmatprep.subr.bf16.mxu1 %v7906_v1 }
0x1424   :  { %v1968_v21 = vmul.f32 %v7689_v16, %v7685_v2  ;;  %v2069_v30 = vpop.permute.xlu0 %2068 }
0x1426   :  { %v1970_v22 = vpack.c.bf16 %v1968_v21, %v1968_v21 }
0x1427   :  { %v7691_v23 = vpop.eup %7690 }
0x1428   :  { %6998 = vmatmul.mubr.msk.bf16.vlgmr.msra.gmra.mrb[48].mxu0 %vm501_vm4, %v1970_v22  ;;  %v1969_v25 = vmul.f32 %v7691_v23, %v7687_v4 }
0x1429   :  { %7008 = vmatpush3.bf16.xpose.msra.mxu0 %v2076_v24  ;;  %7009 = vmatprep.mubr.msk.bf16.mxu0 %vm7907_vm0, %v7906_v1 }
0x142a   :  { %v1971_v27 = vpack.c.bf16 %v1969_v25, %v1969_v25  ;;  %7019 = vmatprep.subr.bf16.mxu0 %v7906_v1 }
0x142c   :  { %7004 = vmatmul.mubr.msk.bf16.vlgmr.msra.gmra.mrb[56].mxu1 %vm501_vm4, %v1971_v27 }
0x142d   :  { %7014 = vmatpush3.bf16.xpose.msra.mxu1 %v2126_v28  ;;  %7015 = vmatprep.mubr.msk.bf16.mxu1 %vm7907_vm0, %v7906_v1 }
0x142e   :  { %7025 = vmatprep.subr.bf16.mxu1 %v7906_v1 }
0x1430   :  { %7010 = vmatmul.mubr.msk.bf16.vlgmr.msra.gmra.mrb[52].mxu0 %vm963_vm6, %v2069_v30 }
0x1431   :  { %7021 = vmatprep.mubr.msk.bf16.mxu0 %vm7907_vm0, %v7906_v1 }
0x1434   :  { %7016 = vmatmul.mubr.msk.bf16.vlgmr.msra.gmra.mrb[60].mxu1 %vm963_vm6, %v2119_v35 }
0x1435   :  { %7027 = vmatprep.mubr.msk.bf16.mxu1 %vm7907_vm0, %v7906_v1 }
0x14fb   :  { %v8552_v36 = vpop.f32.mrb[48].mxu0 }
0x14fc   :  { %v6999_v38 = vpop.f32.mrb[49].mxu0 }
0x14fd   :  { %v2017_v41 = vpop.f32.mrb[50].mxu0 }
0x14fe   :  { %v7000_v46 = vpop.f32.mrb[51].mxu0 }
0x14ff   :  { %v8554_v47 = vpop.f32.mrb[56].mxu1 }
0x1500   :  { %v7525_v48 = vpack.i.bf16 %v8554_v47, %v8552_v36  ;;  %v7005_v52 = vpop.f32.mrb[57].mxu1 }
0x1501   :  { %v2065_v54 = vpop.f32.mrb[58].mxu1 }
0x1502   :  { %v7006_v55 = vpop.f32.mrb[59].mxu1 }
0x1503   :  { %v2112_v56 = vpop.f32.mrb[52].mxu0 }
0x1504   :  { %v2168_v60 = vmul.f32 0.5, %v2112_v56  ;;  %v7011_v61 = vpop.f32.mrb[53].mxu0 }
0x1505   :  { %v2115_v62 = vpop.f32.mrb[54].mxu0 }
0x1506   :  { %v7012_v2 = vpop.f32.mrb[55].mxu0  ;;  %v2170_v3 = vsel %vm501_vm4, %v2168_v60, -inf }
0x1507   :  { %2171 = vmax.xlane.f32.xlu0 %v2170_v3  ;;  %v2162_v4 = vpop.f32.mrb[60].mxu1 }
0x1508   :  { %v2169_v5 = vmul.f32 0.5, %v2162_v4  ;;  %v7017_v6 = vpop.f32.mrb[61].mxu1 }
0x1509   :  { %v2165_v7 = vpop.f32.mrb[62].mxu1 }
0x150a   :  { %v7018_v10 = vpop.f32.mrb[63].mxu1  ;;  %v2173_v14 = vsel %vm501_vm4, %v2169_v5, -inf }
0x150b   :  { %2174 = vmax.xlane.f32.xlu1 %v2173_v14 }
0x151c   :  { %2194 = vrot.lane.b32.xlu1 %v8337_v40, %s7914_s4 }
0x1520   :  { %2292 = vrot.lane.b32.xlu1 %v8326_v29, %s7915_s2 }
0x1524   :  { %2342 = vrot.lane.b32.xlu1 %v8328_v32, %s7915_s2 }
0x1528   :  { %2340 = vrot.lane.b32.xlu1 %v8344_v44, %s7915_s2 }
0x1594   :  { %v2172_v16 = vpop.xlane.xlu0 %2171 }
0x1595   :  { %v2176_v18 = vsub.f32 %v2168_v60, %v2172_v16 }
0x1597   :  { %v2178_v21 = vmul.f32 1.442695, %v2176_v18 }
0x1598   :  { %v2175_v22 = vpop.xlane.xlu1 %2174 }
0x1599   :  { %7692 = vpow2.f32 %v2178_v21  ;;  %v2177_v23 = vsub.f32 %v2169_v5, %v2175_v22 }
0x159b   :  { %v2180_v24 = vmul.f32 1.442695, %v2177_v23 }
0x159c   :  { %v2195_v25 = vpop.permute.xlu1 %2194 }
0x159d   :  { %7694 = vpow2.f32 %v2180_v24  ;;  %v2200_v26 = vsel %vm604_vm7, %v2195_v25, 0 }
0x159e   :  { %7020 = vmatpush3.bf16.msra.mxu0 %v2200_v26 }
0x159f   :  { %7031 = vmatprep.subr.bf16.mxu0 %v7906_v1 }
0x15a0   :  { %v2293_v55 = vpop.permute.xlu1 %2292 }
0x15a1   :  { %v2298_v62 = vsel %vm963_vm6, %v2293_v55, 0 }
0x15a3   :  { %v7693_v27 = vpop.eup %7692 }
0x15a4   :  { %v2182_v28 = vsel %vm501_vm4, %v7693_v27, 0.0  ;;  %v2343_v3 = vpop.permute.xlu1 %2342 }
0x15a5   :  { %2183 = vadd.xlane.f32.xlu0 %v2182_v28  ;;  %v2348_v5 = vsel %vm963_vm6, %v2343_v3, 0 }
0x15a7   :  { %v7695_v30 = vpop.eup %7694 }
0x15a8   :  { %v2185_v35 = vsel %vm501_vm4, %v7695_v30, 0.0  ;;  %v2341_v7 = vpop.permute.xlu1 %2340 }
0x15a9   :  { %2186 = vadd.xlane.f32.xlu0 %v2185_v35 }
0x15bf   :  { %2242 = vrot.lane.b32.xlu0 %v8342_v43, %s7914_s4 }
0x15c3   :  { %2290 = vrot.lane.b32.xlu0 %v8340_v42, %s7915_s2 }
0x1632   :  { %v2184_v38 = vpop.xlane.xlu0 %2183 }
0x1633   :  { %7696 = vrcp.f32 %v2184_v38 }
0x1636   :  { %v2187_v41 = vpop.xlane.xlu0 %2186 }
0x1637   :  { %7698 = vrcp.f32 %v2187_v41 }
0x163a   :  { %v2243_v46 = vpop.permute.xlu0 %2242 }
0x163b   :  { %v2248_v52 = vsel %vm604_vm7, %v2243_v46, 0 }
0x163c   :  { %7026 = vmatpush3.bf16.msra.mxu1 %v2248_v52 }
0x163d   :  { %v7697_v54 = vpop.eup %7696  ;;  %7037 = vmatprep.subr.bf16.mxu1 %v7906_v1 }
0x163e   :  { %v2190_v56 = vmul.f32 %v7697_v54, %v7693_v27  ;;  %v2291_v6 = vpop.permute.xlu0 %2290 }
0x1640   :  { %v2192_v60 = vpack.c.bf16 %v2190_v56, %v2190_v56 }
0x1641   :  { %v7699_v61 = vpop.eup %7698 }
0x1642   :  { %7022 = vmatmul.mubr.msk.bf16.vlgmr.msra.gmra.mrb[56].mxu0 %vm501_vm4, %v2192_v60  ;;  %v2191_v2 = vmul.f32 %v7699_v61, %v7695_v30 }
0x1643   :  { %7032 = vmatpush3.bf16.xpose.msra.mxu0 %v2298_v62  ;;  %7033 = vmatprep.mubr.msk.bf16.mxu0 %vm7907_vm0, %v7906_v1 }
0x1644   :  { %v2193_v4 = vpack.c.bf16 %v2191_v2, %v2191_v2  ;;  %7043 = vmatprep.subr.bf16.mxu0 %v7906_v1 }
0x1646   :  { %7028 = vmatmul.mubr.msk.bf16.vlgmr.msra.gmra.mrb[64].mxu1 %vm501_vm4, %v2193_v4 }
0x1647   :  { %7038 = vmatpush3.bf16.xpose.msra.mxu1 %v2348_v5  ;;  %7039 = vmatprep.mubr.msk.bf16.mxu1 %vm7907_vm0, %v7906_v1 }
0x1648   :  { %7049 = vmatprep.subr.bf16.mxu1 %v7906_v1 }
0x164a   :  { %7034 = vmatmul.mubr.msk.bf16.vlgmr.msra.gmra.mrb[60].mxu0 %vm963_vm6, %v2291_v6 }
0x164b   :  { %7045 = vmatprep.mubr.msk.bf16.mxu0 %vm7907_vm0, %v7906_v1 }
0x164e   :  { %7040 = vmatmul.mubr.msk.bf16.vlgmr.msra.gmra.mrb[68].mxu1 %vm963_vm6, %v2341_v7 }
0x164f   :  { %7051 = vmatprep.mubr.msk.bf16.mxu1 %vm7907_vm0, %v7906_v1 }
0x1715   :  { %v8594_v10 = vpop.f32.mrb[56].mxu0 }
0x1716   :  { %v7023_v14 = vpop.f32.mrb[57].mxu0 }
0x1717   :  { %v2239_v16 = vpop.f32.mrb[58].mxu0 }
0x1718   :  { %v7024_v18 = vpop.f32.mrb[59].mxu0 }
0x1719   :  { %v8596_v21 = vpop.f32.mrb[64].mxu1 }
0x171a   :  { %v7530_v22 = vpack.i.bf16 %v8596_v21, %v8594_v10  ;;  %v7029_v23 = vpop.f32.mrb[65].mxu1 }
0x171b   :  { %v2287_v24 = vpop.f32.mrb[66].mxu1 }
0x171c   :  { %v7030_v25 = vpop.f32.mrb[67].mxu1 }
0x171d   :  { %v2334_v26 = vpop.f32.mrb[60].mxu0 }
0x171e   :  { %v2390_v27 = vmul.f32 0.5, %v2334_v26  ;;  %v7035_v28 = vpop.f32.mrb[61].mxu0 }
0x171f   :  { %v2337_v30 = vpop.f32.mrb[62].mxu0 }
0x1720   :  { %v7036_v35 = vpop.f32.mrb[63].mxu0  ;;  %v2392_v38 = vsel %vm501_vm4, %v2390_v27, -inf }
0x1721   :  { %2393 = vmax.xlane.f32.xlu0 %v2392_v38  ;;  %v2384_v41 = vpop.f32.mrb[68].mxu1 }
0x1722   :  { %v2391_v46 = vmul.f32 0.5, %v2384_v41  ;;  %v7041_v52 = vpop.f32.mrb[69].mxu1 }
0x1723   :  { %v2387_v54 = vpop.f32.mrb[70].mxu1 }
0x1724   :  { %v7042_v55 = vpop.f32.mrb[71].mxu1  ;;  %v2395_v56 = vsel %vm501_vm4, %v2391_v46, -inf }
0x1725   :  { %2396 = vmax.xlane.f32.xlu1 %v2395_v56 }
0x1736   :  { %2416 = vrot.lane.b32.xlu1 %v8337_v40, %s7915_s2 }
0x173a   :  { %2514 = vrot.lane.b32.xlu1 %v8326_v29, %s7916_s10 }
0x173e   :  { %2564 = vrot.lane.b32.xlu1 %v8328_v32, %s7916_s10 }
0x1742   :  { %2562 = vrot.lane.b32.xlu1 %v8344_v44, %s7916_s10 }
0x17ae   :  { %v2394_v60 = vpop.xlane.xlu0 %2393 }
0x17af   :  { %v2398_v61 = vsub.f32 %v2390_v27, %v2394_v60 }
0x17b1   :  { %v2400_v62 = vmul.f32 1.442695, %v2398_v61 }
0x17b2   :  { %v2397_v2 = vpop.xlane.xlu1 %2396 }
0x17b3   :  { %7700 = vpow2.f32 %v2400_v62  ;;  %v2399_v3 = vsub.f32 %v2391_v46, %v2397_v2 }
0x17b5   :  { %v2402_v4 = vmul.f32 1.442695, %v2399_v3 }
0x17b6   :  { %v2417_v5 = vpop.permute.xlu1 %2416 }
0x17b7   :  { %7702 = vpow2.f32 %v2402_v4  ;;  %v2422_v6 = vsel %vm604_vm7, %v2417_v5, 0 }
0x17b8   :  { %7044 = vmatpush3.bf16.msra.mxu0 %v2422_v6 }
0x17b9   :  { %7055 = vmatprep.subr.bf16.mxu0 %v7906_v1 }
0x17ba   :  { %v2515_v25 = vpop.permute.xlu1 %2514 }
0x17bb   :  { %v2520_v30 = vsel %vm963_vm6, %v2515_v25, 0 }
0x17bd   :  { %v7701_v29 = vpop.eup %7700 }
0x17be   :  { %v2404_v32 = vsel %vm501_vm4, %v7701_v29, 0.0  ;;  %v2565_v35 = vpop.permute.xlu1 %2564 }
0x17bf   :  { %2405 = vadd.xlane.f32.xlu0 %v2404_v32  ;;  %v2570_v41 = vsel %vm963_vm6, %v2565_v35, 0 }
0x17c1   :  { %v7703_v7 = vpop.eup %7702 }
0x17c2   :  { %v2407_v44 = vsel %vm501_vm4, %v7703_v7, 0.0  ;;  %v2563_v52 = vpop.permute.xlu1 %2562 }
0x17c3   :  { %2408 = vadd.xlane.f32.xlu0 %v2407_v44 }
0x17d9   :  { %2464 = vrot.lane.b32.xlu0 %v8342_v43, %s7915_s2 }
0x17dd   :  { %2512 = vrot.lane.b32.xlu0 %v8340_v42, %s7916_s10 }
0x184c   :  { %v2406_v14 = vpop.xlane.xlu0 %2405 }
0x184d   :  { %7704 = vrcp.f32 %v2406_v14 }
0x1850   :  { %v2409_v16 = vpop.xlane.xlu0 %2408 }
0x1851   :  { %7706 = vrcp.f32 %v2409_v16 }
0x1854   :  { %v2465_v18 = vpop.permute.xlu0 %2464 }
0x1855   :  { %v2470_v23 = vsel %vm604_vm7, %v2465_v18, 0 }
0x1856   :  { %7050 = vmatpush3.bf16.msra.mxu1 %v2470_v23 }
0x1857   :  { %v7705_v24 = vpop.eup %7704  ;;  %7061 = vmatprep.subr.bf16.mxu1 %v7906_v1 }
0x1858   :  { %v2412_v26 = vmul.f32 %v7705_v24, %v7701_v29  ;;  %v2513_v46 = vpop.permute.xlu0 %2512 }
0x185a   :  { %v2414_v27 = vpack.c.bf16 %v2412_v26, %v2412_v26 }
0x185b   :  { %v7707_v28 = vpop.eup %7706 }
0x185c   :  { %7046 = vmatmul.mubr.msk.bf16.vlgmr.msra.gmra.mrb[64].mxu0 %vm501_vm4, %v2414_v27  ;;  %v2413_v42 = vmul.f32 %v7707_v28, %v7703_v7 }
0x185d   :  { %7056 = vmatpush3.bf16.xpose.msra.mxu0 %v2520_v30  ;;  %7057 = vmatprep.mubr.msk.bf16.mxu0 %vm7907_vm0, %v7906_v1 }
0x185e   :  { %v2415_v38 = vpack.c.bf16 %v2413_v42, %v2413_v42  ;;  %7067 = vmatprep.subr.bf16.mxu0 %v7906_v1 }
0x1860   :  { %7052 = vmatmul.mubr.msk.bf16.vlgmr.msra.gmra.mrb[72].mxu1 %vm501_vm4, %v2415_v38  ;;  %v7601_v38 = vld [vmem:[%s9331_s23 + $0x8] sm:$0xff]  }
0x1861   :  { %7062 = vmatpush3.bf16.xpose.msra.mxu1 %v2570_v41  ;;  %7063 = vmatprep.mubr.msk.bf16.mxu1 %vm7907_vm0, %v7906_v1 }
0x1862   :  { %7073 = vmatprep.subr.bf16.mxu1 %v7906_v1 }
0x1864   :  { %7058 = vmatmul.mubr.msk.bf16.vlgmr.msra.gmra.mrb[68].mxu0 %vm963_vm6, %v2513_v46 }
0x1865   :  { %7069 = vmatprep.mubr.msk.bf16.mxu0 %vm7907_vm0, %v7906_v1 }
0x1868   :  { %7064 = vmatmul.mubr.msk.bf16.vlgmr.msra.gmra.mrb[76].mxu1 %vm963_vm6, %v2563_v52 }
0x1869   :  { %7075 = vmatprep.mubr.msk.bf16.mxu1 %vm7907_vm0, %v7906_v1 }
0x192f   :  { %v2458_v54 = vpop.f32.mrb[64].mxu0 }
0x1930   :  { %v7047_v55 = vpop.f32.mrb[65].mxu0 }
0x1931   :  { %v2461_v56 = vpop.f32.mrb[66].mxu0 }
0x1932   :  { %v7048_v60 = vpop.f32.mrb[67].mxu0 }
0x1933   :  { %v2506_v61 = vpop.f32.mrb[72].mxu1 }
0x1934   :  { %v7535_v62 = vpack.i.bf16 %v2506_v61, %v2458_v54  ;;  %v7053_v2 = vpop.f32.mrb[73].mxu1 }
0x1935   :  { %v2509_v3 = vpop.f32.mrb[74].mxu1 }
0x1936   :  { %v7054_v4 = vpop.f32.mrb[75].mxu1 }
0x1937   :  { %v2556_v5 = vpop.f32.mrb[68].mxu0 }
0x1938   :  { %v2612_v6 = vmul.f32 0.5, %v2556_v5  ;;  %v7059_v29 = vpop.f32.mrb[69].mxu0 }
0x1939   :  { %v2559_v32 = vpop.f32.mrb[70].mxu0 }
0x193a   :  { %v7060_v7 = vpop.f32.mrb[71].mxu0  ;;  %v2614_v44 = vsel %vm501_vm4, %v2612_v6, -inf }
0x193b   :  { %2615 = vmax.xlane.f32.xlu0 %v2614_v44  ;;  %v2606_v14 = vpop.f32.mrb[76].mxu1 }
0x193c   :  { %v2613_v16 = vmul.f32 0.5, %v2606_v14  ;;  %v7065_v18 = vpop.f32.mrb[77].mxu1 }
0x193d   :  { %v2609_v23 = vpop.f32.mrb[78].mxu1 }
0x193e   :  { %v7066_v24 = vpop.f32.mrb[79].mxu1  ;;  %v2617_v25 = vsel %vm501_vm4, %v2613_v16, -inf }
0x193f   :  { %2618 = vmax.xlane.f32.xlu1 %v2617_v25 }
0x1950   :  { %2638 = vrot.lane.b32.xlu1 %v8337_v40, %s7916_s10 }
0x1954   :  { %7511 = vrot.lane.b32.xlu1 %v7510_v51, %s7917_s7 }
0x1958   :  { %7516 = vrot.lane.b32.xlu1 %v7515_v0, %s7918_s11 }
0x195c   :  { %7526 = vrot.lane.b32.xlu1 %v7525_v48, %s7919_s15 }
0x1960   :  { %7536 = vrot.lane.b32.xlu1 %v7535_v62, %s7920_s16 }
0x19c8   :  { %v2616_v40 = vpop.xlane.xlu0 %2615 }
0x19c9   :  { %v2620_v26 = vsub.f32 %v2612_v6, %v2616_v40 }
0x19cb   :  { %v2622_v27 = vmul.f32 1.442695, %v2620_v26 }
0x19cc   :  { %v2619_v45 = vpop.xlane.xlu1 %2618 }
0x19cd   :  { %7708 = vpow2.f32 %v2622_v27  ;;  %v2621_v50 = vsub.f32 %v2613_v16, %v2619_v45 }
0x19cf   :  { %v2624_v51 = vmul.f32 1.442695, %v2621_v50 }
0x19d0   :  { %v2639_v28 = vpop.permute.xlu1 %2638 }
0x19d1   :  { %7710 = vpow2.f32 %v2624_v51  ;;  %v2644_v58 = vsel %vm604_vm7, %v2639_v28, 0 }
0x19d2   :  { %7068 = vmatpush3.bf16.msra.mxu0 %v2644_v58 }
0x19d3   :  { %7079 = vmatprep.subr.bf16.mxu0 %v7906_v1 }
0x19d4   :  { %v7512_v2 = vpop.permute.xlu1 %7511 }
0x19d5   :  { %v7514_v5 = vunpack.i.h.bf16 %v7512_v2  ;;  %v7513_v6 = vunpack.i.l.bf16 %v7512_v2 }
0x19d7   :  { %v7709_v63 = vpop.eup %7708  ;;  %v2791_v18 = vsel %vm963_vm6, %v8388_v39, %v7514_v5  ;;  %v2790_v23 = vsel %vm963_vm6, %v8386_v31, %v7513_v6 }
0x19d8   :  { %v2626_v0 = vsel %vm501_vm4, %v7709_v63, 0.0  ;;  %v7517_v3 = vpop.permute.xlu1 %7516 }
0x19d9   :  { %2627 = vadd.xlane.f32.xlu0 %v2626_v0  ;;  %v7519_v29 = vunpack.i.h.bf16 %v7517_v3  ;;  %v7518_v32 = vunpack.i.l.bf16 %v7517_v3 }
0x19db   :  { %v7711_v36 = vpop.eup %7710  ;;  %v2792_v24 = vsel %vm501_vm4, %v2790_v23, %v7518_v32  ;;  %v2793_v25 = vsel %vm501_vm4, %v2791_v18, %v7519_v29  ;;  %v7602_v29 = vld [vmem:[%s9333_s26] sm:$0xff]   ;;  %v7603_v32 = vld [vmem:[%s9333_s26 + $0x8] sm:$0xff]  }
0x19dc   :  { %v2629_v47 = vsel %vm501_vm4, %v7711_v36, 0.0  ;;  %v7527_v7 = vpop.permute.xlu1 %7526 }
0x19dd   :  { %2630 = vadd.xlane.f32.xlu0 %v2629_v47  ;;  %v7529_v50 = vunpack.i.h.bf16 %v7527_v7  ;;  %v7528_v51 = vunpack.i.l.bf16 %v7527_v7  ;;  %v7604_v7 = vld [vmem:[%s9334_s28] sm:$0xff]  }
0x19e0   :  { %v7537_v28 = vpop.permute.xlu1 %7536 }
0x19e1   :  { %v7539_v0 = vunpack.i.h.bf16 %v7537_v28 }
0x19f3   :  { %2686 = vrot.lane.b32.xlu0 %v8342_v43, %s7916_s10 }
0x19f7   :  { %7521 = vrot.lane.b32.xlu0 %v7520_v20, %s7921_s18 }
0x19fb   :  { %7531 = vrot.lane.b32.xlu0 %v7530_v22, %s7922_s22  ;;  %v7600_v22 = vld [vmem:[%s9331_s23] sm:$0xff]  }
0x1a66   :  { %v2628_v48 = vpop.xlane.xlu0 %2627 }
0x1a67   :  { %7712 = vrcp.f32 %v2628_v48 }
0x1a6a   :  { %v2631_v30 = vpop.xlane.xlu0 %2630 }
0x1a6b   :  { %7714 = vrcp.f32 %v2631_v30 }
0x1a6e   :  { %v2687_v42 = vpop.permute.xlu0 %2686 }
0x1a6f   :  { %v2692_v43 = vsel %vm604_vm7, %v2687_v42, 0 }
0x1a70   :  { %7074 = vmatpush3.bf16.msra.mxu1 %v2692_v43 }
0x1a71   :  { %v7713_v35 = vpop.eup %7712  ;;  %7087 = vmatprep.subr.bf16.mxu1 %v7906_v1 }
0x1a72   :  { %v2634_v11 = vmul.f32 %v7713_v35, %v7709_v63  ;;  %v7522_v4 = vpop.permute.xlu0 %7521 }
0x1a73   :  { %v7524_v44 = vunpack.i.h.bf16 %v7522_v4  ;;  %v7523_v14 = vunpack.i.l.bf16 %v7522_v4 }
0x1a74   :  { %v2636_v19 = vpack.c.bf16 %v2634_v11, %v2634_v11 }
0x1a75   :  { %v7715_v20 = vpop.eup %7714  ;;  %v2795_v40 = vsel %vm2794_vm8, %v2792_v24, %v7523_v14  ;;  %v2796_v26 = vsel %vm2794_vm8, %v2793_v25, %v7524_v44  ;;  %v7605_v44 = vld [vmem:[%s9334_s28 + $0x8] sm:$0xff]  }
0x1a76   :  { %7070 = vmatmul.mubr.msk.bf16.vlgmr.msra.gmra.mrb[72].mxu0 %vm501_vm4, %v2636_v19  ;;  %v2635_v10 = vmul.f32 %v7715_v20, %v7711_v36  ;;  %v7532_v16 = vpop.permute.xlu0 %7531  ;;  %v2797_v58 = vsel %vm235_vm1, %v2795_v40, %v7528_v51  ;;  %v2798_v39 = vsel %vm235_vm1, %v2796_v26, %v7529_v50  ;;  %v7538_v36 = vunpack.i.l.bf16 %v7537_v28  ;;  %v6483_v20 = vld [vmem:[%s9332_s21] ss:$0 sm:$0xff] }
0x1a77   :  { %7083 = vmatprep.mubr.msk.bf16.mxu0 %vm7907_vm0, %v7906_v1  ;;  %7080 = vmatpush3.bf16.msra.mxu0 %v7600_v22  ;;  %v7534_v27 = vunpack.i.h.bf16 %v7532_v16  ;;  %v7533_v45 = vunpack.i.l.bf16 %v7532_v16  ;;  %v6487_v26 = vld [vmem:[%s9335_s1] ss:$0 sm:$0xff] }
0x1a78   :  { %v2637_v21 = vpack.c.bf16 %v2635_v10, %v2635_v10  ;;  %7081 = vmatprep.subr.bf16.mxu0 %v7906_v1  ;;  %v6488_v28 = vld [vmem:[%s9336_s5] ss:$0 sm:$0xff] }
0x1a79   :  { %v2800_v31 = vsel %vm2799_vm9, %v2797_v58, %v7533_v45  ;;  %v2801_v63 = vsel %vm2799_vm9, %v2798_v39, %v7534_v27 }
0x1a7a   :  { %7076 = vmatmul.mubr.msk.bf16.vlgmr.msra.gmra.mrb[80].mxu1 %vm501_vm4, %v2637_v21  ;;  %v2802_v42 = vsel %vm557_vm3, %v2800_v31, %v7538_v36  ;;  %v2803_v43 = vsel %vm557_vm3, %v2801_v63, %v7539_v0  ;;  %v7606_v0 = vld [vmem:[%s9334_s28 + $0x10] sm:$0xff]   ;;  %v7607_v36 = vld [vmem:[%s9334_s28 + $0x18] sm:$0xff]  }
0x1a7b   :  { %7091 = vmatprep.mubr.msk.bf16.mxu1 %vm7907_vm0, %v7906_v1  ;;  %7082 = vmatpush3.bf16.msra.mxu0 %v7601_v38 }
0x1a7c   :  { %7095 = vmatprep.subr.bf16.mxu0 %v7906_v1  ;;  %7088 = vmatpush3.bf16.msra.mxu1 %v7602_v29 }
0x1a7d   :  { %7089 = vmatprep.subr.bf16.mxu1 %v7906_v1 }
0x1a80   :  { %7090 = vmatpush3.bf16.msra.mxu1 %v7603_v32 }
0x1b49   :  { %v2680_v41 = vpop.f32.mrb[72].mxu0 }
0x1b4a   :  { %v7071_v46 = vpop.f32.mrb[73].mxu0 }
0x1b4b   :  { %v2683_v52 = vpop.f32.mrb[74].mxu0 }
0x1b4c   :  { %v7072_v54 = vpop.f32.mrb[75].mxu0 }
0x1b4d   :  { %v2728_v55 = vpop.f32.mrb[80].mxu1 }
0x1b4e   :  { %v7540_v56 = vpack.i.bf16 %v2728_v55, %v2680_v41  ;;  %v7077_v60 = vpop.f32.mrb[81].mxu1 }
0x1b4f   :  { %v2731_v61 = vpop.f32.mrb[82].mxu1 }
0x1b50   :  { %7541 = vrot.lane.b32.xlu0 %v7540_v56, %s7923_s0  ;;  %v7078_v62 = vpop.f32.mrb[83].mxu1 }
0x1bc2   :  { %v7542_v47 = vpop.permute.xlu0 %7541 }
0x1bc3   :  { %v7544_v48 = vunpack.i.h.bf16 %v7542_v47  ;;  %v7543_v30 = vunpack.i.l.bf16 %v7542_v47  ;;  %v6489_v47 = vld [vmem:[%s9337_s9] ss:$0 sm:$0xff] }
0x1bc5   :  { %v2806_v35 = vsel %vm2804_vm10, %v2803_v43, %v7544_v48  ;;  %v2805_v11 = vsel %vm2804_vm10, %v2802_v42, %v7543_v30 }
0x1bc6   :  { %v2811_v19 = vpack.c.bf16 %v2806_v35, %v2805_v11 }
0x1bc8   :  { %7084 = vmatmul.mubr.msk.bf16.vlgmr.msra.gmra.mrb[76].mxu0 %vm306_vm2, %v2811_v19 }
0x1bc9   :  { %7103 = vmatprep.mubr.msk.bf16.mxu0 %vm7907_vm0, %v7906_v1  ;;  %7096 = vmatpush3.bf16.msra.mxu0 %v7604_v7  ;;  %v7610_v7 = vld [vmem:[%s9326_s3 + $0x34] ss:$12 sps:$4 sm:$0xff]  }
0x1bca   :  { %7097 = vmatprep.subr.bf16.mxu0 %v7906_v1  ;;  %3185 = vmatprep.subr.bf16.mxu1 %v7610_v7 }
0x1bcd   :  { %7098 = vmatpush3.bf16.msra.mxu0 %v7605_v44  ;;  %v7608_v44 = vld [vmem:[%s9326_s3 + $0x30] ss:$12 sps:$4 sm:$0xff]  }
0x1bce   :  { %7099 = vmatprep.subr.bf16.mxu0 %v7906_v1 }
0x1bd1   :  { %7100 = vmatpush3.bf16.msra.mxu0 %v7606_v0 }
0x1bd2   :  { %7101 = vmatprep.subr.bf16.mxu0 %v7906_v1 }
0x1bd5   :  { %7102 = vmatpush3.bf16.msra.mxu0 %v7607_v36  ;;  %v7614_v36 = vld [vmem:[%s9326_s3 + $0x38] ss:$12 sps:$4 sm:$0xff]  }
0x1bd6   :  { %7115 = vmatprep.subr.bf16.mxu0 %v7906_v1 }
0x1c9b   :  { %v2868_v10 = vpop.f32.mrb[76].mxu0 }
0x1c9c   :  { %v2869_v21 = vadd.f32 %v6483_v20, %v2868_v10  ;;  %v7085_v22 = vpop.f32.mrb[77].mxu0 }
0x1c9d   :  { %v2871_v38 = vpop.f32.mrb[78].mxu0 }
0x1c9e   :  { %v2875_v41 = vadd.f32 %v2869_v21, %v8299_v8  ;;  %v2872_v46 = vadd.f32 %v6483_v20, %v2871_v38  ;;  %v7086_v52 = vpop.f32.mrb[79].mxu0  ;;  %v6493_v21 = vld [vmem:[%s9338_s13] ss:$0 sm:$0xff] }
0x1ca0   :  { %v2879_v54 = vsel %vm306_vm2, %v2875_v41, 0.0  ;;  %v2876_v55 = vadd.f32 %v2872_v46, %v8301_v9 }
0x1ca1   :  { %2880 = vadd.xlane.f32.xlu1 %v2879_v54 }
0x1ca2   :  { %v2882_v56 = vsel %vm306_vm2, %v2876_v55, 0.0 }
0x1ca3   :  { %2883 = vadd.xlane.f32.xlu0 %v2882_v56 }
0x1d2e   :  { %v2881_v60 = vpop.xlane.xlu1 %2880 }
0x1d2f   :  { %v2885_v61 = vmul.f32 0.03125, %v2881_v60 }
0x1d30   :  { %v2884_v62 = vpop.xlane.xlu0 %2883 }
0x1d31   :  { %v2887_v2 = vsub.f32 %v2875_v41, %v2885_v61  ;;  %v2886_v3 = vmul.f32 0.03125, %v2884_v62 }
0x1d33   :  { %v2888_v8 = vsub.f32 %v2876_v55, %v2886_v3  ;;  %v2889_v4 = vmul.f32 %v2887_v2, %v2887_v2 }
0x1d35   :  { %v2891_v5 = vsel %vm306_vm2, %v2889_v4, 0.0  ;;  %v2890_v6 = vmul.f32 %v2888_v8, %v2888_v8 }
0x1d36   :  { %2892 = vadd.xlane.f32.xlu0 %v2891_v5 }
0x1d37   :  { %v2894_v9 = vsel %vm306_vm2, %v2890_v6, 0.0 }
0x1d38   :  { %2895 = vadd.xlane.f32.xlu1 %v2894_v9 }
0x1dc3   :  { %v2893_v14 = vpop.xlane.xlu0 %2892 }
0x1dc4   :  { %v2897_v16 = vmul.f32 0.03125, %v2893_v14  ;;  %v7611_v14 = vld [vmem:[%s9326_s3 + $0x48] ss:$12 sps:$4 sm:$0xff]  }
0x1dc5   :  { %v2896_v18 = vpop.xlane.xlu1 %2895 }
0x1dc6   :  { %v2899_v23 = vadd.f32 1e-05, %v2897_v16  ;;  %v2898_v24 = vmul.f32 0.03125, %v2896_v18  ;;  %v7613_v16 = vld [vmem:[%s9326_s3 + $0x4c] ss:$12 sps:$4 sm:$0xff]  }
0x1dc8   :  { %7716 = vrsqrt.f32 %v2899_v23  ;;  %v2900_v25 = vadd.f32 1e-05, %v2898_v24 }
0x1dca   :  { %7718 = vrsqrt.f32 %v2900_v25 }
0x1dd2   :  { %v7717_v40 = vpop.eup %7716 }
0x1dd3   :  { %v2903_v27 = vmul.f32 %v7717_v40, %v2887_v2 }
0x1dd4   :  { %v7719_v45 = vpop.eup %7718 }
0x1dd5   :  { %v2911_v50 = vmul.f32 %v6487_v26, %v2903_v27  ;;  %v2904_v51 = vmul.f32 %v7719_v45, %v2888_v8  ;;  %v6499_v45 = vld [vmem:[%s9339_s25] ss:$0 sm:$0xff] }
0x1dd7   :  { %v2912_v58 = vmul.f32 %v6487_v26, %v2904_v51  ;;  %v2919_v39 = vadd.f32 %v6488_v28, %v2911_v50 }
0x1dd9   :  { %v2920_v31 = vadd.f32 %v6488_v28, %v2912_v58 }
0x1ddb   :  { %v2925_v63 = vpack.c.bf16 %v2920_v31, %v2919_v39 }
0x1ddd   :  { %7092 = vmatmul.mubr.msk.bf16.vlgmr.msra.gmra.mrb[84].mxu1 %vm306_vm2, %v2925_v63 }
0x1dde   :  { %3217 = vmatprep.mubr.bf16.mxu1 %v7909_v49  ;;  %3186 = vmatpush1.bf16.msra.mxu1 %v7608_v44 }
0x1ddf   :  { %3187 = vmatprep.subr.bf16.mxu1 %v7613_v16 }
0x1de2   :  { %3188 = vmatpush1.bf16.msra.mxu1 %v7611_v14 }
0x1de3   :  { %7107 = vmatprep.subr.bf16.mxu1 %v7906_v1 }
0x1eb0   :  { %v2982_v48 = vpop.f32.mrb[84].mxu1 }
0x1eb1   :  { %v2983_v30 = vadd.f32 %v6489_v47, %v2982_v48  ;;  %v7093_v42 = vpop.f32.mrb[85].mxu1  ;;  %v7615_v48 = vld [vmem:[%s9326_s3 + $0x50] ss:$12 sps:$4 sm:$0xff]   ;;  %s9341_s3 = sld [smem:[#allocation30_spill]] }
0x1eb2   :  { %v2985_v43 = vpop.f32.mrb[86].mxu1 }
0x1eb3   :  { %v2986_v35 = vadd.f32 %v6489_v47, %v2985_v43  ;;  %v7094_v11 = vpop.f32.mrb[87].mxu1  ;;  %v2989_v19 = vmax.f32 %v2983_v30, 0.0  ;;  %v6509_v30 = vld [vmem:[%s9330_s24 + $0x3] sm:$0x7]  ;;  %s9345_s24 = sld [smem:[#allocation34_spill]] }
0x1eb4   :  { %v3142_v42 = vrot.slane %v6509_v30, %v8314_v13 }
0x1eb5   :  { %v2990_v20 = vmax.f32 %v2986_v35, 0.0 }
0x1eb7   :  { %v2999_v10 = vpack.c.bf16 %v2990_v20, %v2989_v19  ;;  %v7633_v53 = vld [vmem:[%s9341_s3 + $0x28] ss:$16 sps:$4 sm:$0xff]  }
0x1eb9   :  { %7104 = vmatmul.mubr.msk.bf16.vlgmr.msra.gmra.mrb[80].mxu0 %vm3031_vm11, %v2999_v10  ;;  %v3138_v10 = vrot.slane %v6509_v30, %v8322_v17 }
0x1eba   :  { %7117 = vmatprep.mubr.msk.bf16.mxu0 %vm7907_vm0, %v7906_v1 }
0x1f8c   :  { %v3069_v22 = vpop.f32.mrb[80].mxu0 }
0x1f8d   :  { %v3070_v38 = vadd.f32 %v6493_v21, %v3069_v22  ;;  %v7105_v41 = vpop.f32.mrb[81].mxu0 }
0x1f8e   :  { %v3072_v46 = vpop.f32.mrb[82].mxu0 }
0x1f8f   :  { %v3073_v52 = vadd.f32 %v6493_v21, %v3072_v46  ;;  %v7106_v54 = vpop.f32.mrb[83].mxu0  ;;  %v3076_v55 = vadd.f32 %v3070_v38, %v2919_v39  ;;  %v6500_v39 = vld [vmem:[%s9340_s29] ss:$0 sm:$0xff]  ;;  %v3146_v38 = vrot.slane %v6509_v30, %v8318_v15 }
0x1f91   :  { %v3077_v56 = vadd.f32 %v3073_v52, %v2920_v31  ;;  %v3080_v60 = vsel %vm306_vm2, %v3076_v55, 0.0 }
0x1f92   :  { %3081 = vadd.xlane.f32.xlu0 %v3080_v60 }
0x1f93   :  { %v3083_v61 = vsel %vm306_vm2, %v3077_v56, 0.0 }
0x1f94   :  { %3084 = vadd.xlane.f32.xlu1 %v3083_v61 }
0x201f   :  { %v3082_v62 = vpop.xlane.xlu0 %3081 }
0x2020   :  { %v3086_v2 = vmul.f32 0.03125, %v3082_v62 }
0x2021   :  { %v3085_v3 = vpop.xlane.xlu1 %3084 }
0x2022   :  { %v3088_v8 = vsub.f32 %v3076_v55, %v3086_v2  ;;  %v3087_v4 = vmul.f32 0.03125, %v3085_v3 }
0x2024   :  { %v3089_v5 = vsub.f32 %v3077_v56, %v3087_v4  ;;  %v3090_v6 = vmul.f32 %v3088_v8, %v3088_v8 }
0x2026   :  { %v3092_v9 = vsel %vm306_vm2, %v3090_v6, 0.0  ;;  %v3091_v29 = vmul.f32 %v3089_v5, %v3089_v5 }
0x2027   :  { %3093 = vadd.xlane.f32.xlu0 %v3092_v9 }
0x2028   :  { %v3095_v32 = vsel %vm306_vm2, %v3091_v29, 0.0 }
0x2029   :  { %3096 = vadd.xlane.f32.xlu1 %v3095_v32 }
0x20b4   :  { %v3094_v18 = vpop.xlane.xlu0 %3093 }
0x20b5   :  { %v3098_v23 = vmul.f32 0.03125, %v3094_v18 }
0x20b6   :  { %v3097_v24 = vpop.xlane.xlu1 %3096 }
0x20b7   :  { %v3100_v25 = vadd.f32 1e-05, %v3098_v23  ;;  %v3099_v40 = vmul.f32 0.03125, %v3097_v24 }
0x20b9   :  { %7720 = vrsqrt.f32 %v3100_v25  ;;  %v3101_v26 = vadd.f32 1e-05, %v3099_v40 }
0x20bb   :  { %7722 = vrsqrt.f32 %v3101_v26 }
0x20c3   :  { %v7721_v27 = vpop.eup %7720 }
0x20c4   :  { %v3104_v50 = vmul.f32 %v7721_v27, %v3088_v8 }
0x20c5   :  { %v7723_v51 = vpop.eup %7722 }
0x20c6   :  { %v3112_v28 = vmul.f32 %v6499_v45, %v3104_v50  ;;  %v3105_v58 = vmul.f32 %v7723_v51, %v3089_v5 }
0x20c8   :  { %v3113_v31 = vmul.f32 %v6499_v45, %v3105_v58  ;;  %v8737_v63 = vadd.f32 %v6500_v39, %v3112_v28 }
0x20ca   :  { %v8739_v0 = vadd.f32 %v6500_v39, %v3113_v31 }
0x20cc   :  { %v3131_v47 = vpack.c.bf16 %v8739_v0, %v8737_v63 }
0x20ce   :  { %6516 = vmatmul.mubr.msk.bf16.vlgmr.msra.gmra.mrb[88].mxu1 %vm306_vm2, %v3131_v47 }
0x20cf   :  { %7108 = vmatpush3.bf16.msra.mxu1 %v7614_v36  ;;  %7111 = vmatprep.mubr.msk.bf16.mxu1 %vm7907_vm0, %v7906_v1 }
0x20d0   :  { %7109 = vmatprep.subr.bf16.mxu1 %v7906_v1 }
0x20d3   :  { %7110 = vmatpush3.bf16.msra.mxu1 %v7615_v48 }
0x20d4   :  { %7121 = vmatprep.subr.bf16.mxu1 %v7906_v1 }
0x20d6   :  { %7112 = vmatmul.mubr.msk.bf16.vlgmr.msra.gmra.mrb[92].mxu1 %vm306_vm2, %v3131_v47 }
0x20d7   :  { %7123 = vmatprep.mubr.msk.bf16.mxu1 %vm7907_vm0, %v7906_v1 }
0x21a1   :  { %v3219_v43 = vpop.f32.mrb[88].mxu1 }
0x21a2   :  { %v3221_v35 = vpop.f32.mrb[89].mxu1  ;;  %v3220_v52 = vadd.f32 %v3219_v43, %v3138_v10 }
0x21a3   :  { %v3222_v11 = vadd.f32 %v3221_v35, %v3142_v42  ;;  %v3223_v19 = vpop.f32.mrb[90].mxu1 }
0x21a4   :  { %v3225_v20 = vpop.f32.mrb[91].mxu1  ;;  %v3224_v61 = vadd.f32 %v3223_v19, %v3138_v10  ;;  %v8769_v4 = vpack.c.bf16 %v3220_v52, %v3220_v52 }
0x21a5   :  { %v8756_v21 = vpack.c.bf16 %v3222_v11, %v3222_v11  ;;  %v3226_v22 = vadd.f32 %v3225_v20, %v3142_v42 }
0x21a6   :  { %v8775_v9 = vpack.c.bf16 %v3224_v61, %v3224_v61 }
0x21a7   :  { %v8759_v41 = vpack.c.bf16 %v3226_v22, %v3226_v22  ;;  %v3279_v46 = vsel %vm963_vm6, %v8756_v21, 0 }
0x21a8   :  { %7116 = vmatpush3.bf16.xpose.msra.mxu0 %v3279_v46 }
0x21a9   :  { %v3262_v54 = vpop.f32.mrb[92].mxu1  ;;  %v3325_v55 = vsel %vm963_vm6, %v8759_v41, 0  ;;  %7127 = vmatprep.subr.bf16.mxu0 %v7906_v1 }
0x21aa   :  { %v3263_v56 = vadd.f32 %v3262_v54, %v3146_v38  ;;  %v7113_v60 = vpop.f32.mrb[93].mxu1  ;;  %7122 = vmatpush3.bf16.xpose.msra.mxu1 %v3325_v55 }
0x21ab   :  { %v3265_v62 = vpop.f32.mrb[94].mxu1  ;;  %7133 = vmatprep.subr.bf16.mxu1 %v7906_v1 }
0x21ac   :  { %v8767_v2 = vpack.c.bf16 %v3263_v56, %v3263_v56  ;;  %v3266_v3 = vadd.f32 %v3265_v62, %v3146_v38  ;;  %v7114_v8 = vpop.f32.mrb[95].mxu1 }
0x21ae   :  { %v8771_v5 = vpack.c.bf16 %v3266_v3, %v3266_v3  ;;  %v3397_v6 = vsel %vm604_vm7, %v8767_v2, 0 }
0x21af   :  { %7118 = vmatmul.mubr.msk.bf16.vlgmr.msra.gmra.mrb[84].mxu0 %vm963_vm6, %v8769_v4 }
0x21b0   :  { %7128 = vmatpush3.bf16.msra.mxu0 %v3397_v6  ;;  %v3443_v29 = vsel %vm604_vm7, %v8771_v5, 0  ;;  %7129 = vmatprep.mubr.msk.bf16.mxu0 %vm7907_vm0, %v7906_v1 }
0x21b1   :  { %7124 = vmatmul.mubr.msk.bf16.vlgmr.msra.gmra.mrb[96].mxu1 %vm963_vm6, %v8775_v9  ;;  %7139 = vmatprep.subr.bf16.mxu0 %v7906_v1 }
0x21b2   :  { %7134 = vmatpush3.bf16.msra.mxu1 %v3443_v29  ;;  %7135 = vmatprep.mubr.msk.bf16.mxu1 %vm7907_vm0, %v7906_v1 }
0x21b3   :  { %7145 = vmatprep.subr.bf16.mxu1 %v7906_v1 }
0x2282   :  { %v3315_v32 = vpop.f32.mrb[84].mxu0 }
0x2283   :  { %v3367_v7 = vmul.f32 0.5, %v3315_v32  ;;  %v7119_v44 = vpop.f32.mrb[85].mxu0 }
0x2284   :  { %v3318_v14 = vpop.f32.mrb[86].mxu0  ;;  %v3361_v16 = vpop.f32.mrb[96].mxu1 }
0x2285   :  { %v3368_v18 = vmul.f32 0.5, %v3361_v16  ;;  %v7120_v23 = vpop.f32.mrb[87].mxu0  ;;  %v7125_v24 = vpop.f32.mrb[97].mxu1  ;;  %v3369_v25 = vsel %vm501_vm4, %v3367_v7, -inf }
0x2286   :  { %v3364_v40 = vpop.f32.mrb[98].mxu1  ;;  %3370 = vmax.xlane.f32.xlu0 %v3369_v25 }
0x2287   :  { %v7126_v26 = vpop.f32.mrb[99].mxu1  ;;  %v3372_v27 = vsel %vm501_vm4, %v3368_v18, -inf }
0x2288   :  { %3373 = vmax.xlane.f32.xlu1 %v3372_v27 }
0x2313   :  { %v3371_v45 = vpop.xlane.xlu0 %3370 }
0x2314   :  { %v3375_v50 = vsub.f32 %v3367_v7, %v3371_v45 }
0x2315   :  { %v3374_v51 = vpop.xlane.xlu1 %3373 }
0x2316   :  { %v3377_v28 = vmul.f32 1.442695, %v3375_v50  ;;  %v3376_v58 = vsub.f32 %v3368_v18, %v3374_v51 }
0x2318   :  { %7724 = vpow2.f32 %v3377_v28  ;;  %v3379_v39 = vmul.f32 1.442695, %v3376_v58 }
0x231a   :  { %7726 = vpow2.f32 %v3379_v39 }
0x2322   :  { %v7725_v31 = vpop.eup %7724 }
0x2323   :  { %v3381_v36 = vsel %vm501_vm4, %v7725_v31, 0.0 }
0x2324   :  { %v7727_v47 = vpop.eup %7726  ;;  %3382 = vadd.xlane.f32.xlu0 %v3381_v36 }
0x2325   :  { %v3384_v48 = vsel %vm501_vm4, %v7727_v47, 0.0 }
0x2326   :  { %3385 = vadd.xlane.f32.xlu1 %v3384_v48 }
0x2337   :  { %3541 = vrot.lane.b32.xlu1 %v8759_v41, %s7910_s30 }
0x233a   :  { %3489 = vrot.lane.b32.xlu0 %v8756_v21, %s7910_s30 }
0x233b   :  { %3486 = vrot.lane.b32.xlu1 %v8769_v4, %s7910_s30 }
0x233e   :  { %3538 = vrot.lane.b32.xlu0 %v8775_v9, %s7910_s30 }
0x23b1   :  { %v3383_v30 = vpop.xlane.xlu0 %3382 }
0x23b2   :  { %7728 = vrcp.f32 %v3383_v30 }
0x23b3   :  { %v3386_v42 = vpop.xlane.xlu1 %3385 }
0x23b4   :  { %7730 = vrcp.f32 %v3386_v42 }
0x23b5   :  { %v3490_v19 = vpop.permute.xlu0 %3489 }
0x23b6   :  { %v3495_v38 = vsel %vm963_vm6, %v3490_v19, 0 }
0x23b7   :  { %v3542_v22 = vpop.permute.xlu1 %3541 }
0x23b8   :  { %v3547_v52 = vsel %vm963_vm6, %v3542_v22, 0 }
0x23b9   :  { %v3539_v55 = vpop.permute.xlu0 %3538 }
0x23bb   :  { %v3487_v54 = vpop.permute.xlu1 %3486 }
0x23bc   :  { %v7729_v43 = vpop.eup %7728 }
0x23bd   :  { %v3389_v35 = vmul.f32 %v7729_v43, %v7725_v31 }
0x23be   :  { %v7731_v11 = vpop.eup %7730 }
0x23bf   :  { %v3390_v20 = vmul.f32 %v7731_v11, %v7727_v47  ;;  %v3391_v10 = vpack.c.bf16 %v3389_v35, %v3389_v35 }
0x23c1   :  { %7130 = vmatmul.mubr.msk.bf16.vlgmr.msra.gmra.mrb[88].mxu0 %vm501_vm4, %v3391_v10  ;;  %v3392_v46 = vpack.c.bf16 %v3390_v20, %v3390_v20 }
0x23c2   :  { %7140 = vmatpush3.bf16.xpose.msra.mxu0 %v3495_v38  ;;  %7141 = vmatprep.mubr.msk.bf16.mxu0 %vm7907_vm0, %v7906_v1 }
0x23c3   :  { %7136 = vmatmul.mubr.msk.bf16.vlgmr.msra.gmra.mrb[100].mxu1 %vm501_vm4, %v3392_v46  ;;  %7151 = vmatprep.subr.bf16.mxu0 %v7906_v1 }
0x23c4   :  { %7146 = vmatpush3.bf16.xpose.msra.mxu1 %v3547_v52  ;;  %7147 = vmatprep.mubr.msk.bf16.mxu1 %vm7907_vm0, %v7906_v1 }
0x23c5   :  { %7157 = vmatprep.subr.bf16.mxu1 %v7906_v1 }
0x23c9   :  { %7142 = vmatmul.mubr.msk.bf16.vlgmr.msra.gmra.mrb[92].mxu0 %vm963_vm6, %v3487_v54 }
0x23ca   :  { %7153 = vmatprep.mubr.msk.bf16.mxu0 %vm7907_vm0, %v7906_v1 }
0x23cb   :  { %7148 = vmatmul.mubr.msk.bf16.vlgmr.msra.gmra.mrb[104].mxu1 %vm963_vm6, %v3539_v55 }
0x23cc   :  { %7159 = vmatprep.mubr.msk.bf16.mxu1 %vm7907_vm0, %v7906_v1 }
0x2494   :  { %v8817_v56 = vpop.f32.mrb[88].mxu0 }
0x2495   :  { %v7131_v60 = vpop.f32.mrb[89].mxu0 }
0x2496   :  { %v3436_v61 = vpop.f32.mrb[90].mxu0  ;;  %v8819_v62 = vpop.f32.mrb[100].mxu1 }
0x2497   :  { %v7132_v3 = vpop.f32.mrb[91].mxu0  ;;  %v7137_v8 = vpop.f32.mrb[101].mxu1 }
0x2498   :  { %v3482_v6 = vpop.f32.mrb[102].mxu1 }
0x2499   :  { %v7138_v29 = vpop.f32.mrb[103].mxu1 }
0x249c   :  { %v3531_v32 = vpop.f32.mrb[92].mxu0 }
0x249d   :  { %v3589_v7 = vmul.f32 0.5, %v3531_v32  ;;  %v7143_v44 = vpop.f32.mrb[93].mxu0 }
0x249e   :  { %v3534_v14 = vpop.f32.mrb[94].mxu0  ;;  %v3583_v16 = vpop.f32.mrb[104].mxu1 }
0x249f   :  { %v3590_v18 = vmul.f32 0.5, %v3583_v16  ;;  %v7144_v23 = vpop.f32.mrb[95].mxu0  ;;  %v7149_v24 = vpop.f32.mrb[105].mxu1  ;;  %v3591_v25 = vsel %vm501_vm4, %v3589_v7, -inf }
0x24a0   :  { %v3586_v40 = vpop.f32.mrb[106].mxu1  ;;  %3592 = vmax.xlane.f32.xlu1 %v3591_v25 }
0x24a1   :  { %v7150_v26 = vpop.f32.mrb[107].mxu1  ;;  %v3594_v27 = vsel %vm501_vm4, %v3590_v18, -inf }
0x24a2   :  { %3595 = vmax.xlane.f32.xlu0 %v3594_v27 }
0x24b1   :  { %3665 = vrot.lane.b32.xlu1 %v8771_v5, %s7910_s30 }
0x24b8   :  { %3616 = vrot.lane.b32.xlu0 %v8767_v2, %s7910_s30  ;;  %s9346_s30 = sld [smem:[#allocation33_spill]] }
0x252d   :  { %v3593_v45 = vpop.xlane.xlu1 %3592 }
0x252e   :  { %v3597_v50 = vsub.f32 %v3589_v7, %v3593_v45 }
0x252f   :  { %v3596_v51 = vpop.xlane.xlu0 %3595 }
0x2530   :  { %v3599_v28 = vmul.f32 1.442695, %v3597_v50  ;;  %v3598_v58 = vsub.f32 %v3590_v18, %v3596_v51 }
0x2531   :  { %v3666_v39 = vpop.permute.xlu1 %3665 }
0x2532   :  { %7732 = vpow2.f32 %v3599_v28  ;;  %v3601_v31 = vmul.f32 1.442695, %v3598_v58  ;;  %v3671_v36 = vsel %vm604_vm7, %v3666_v39, 0 }
0x2533   :  { %v3617_v47 = vpop.permute.xlu0 %3616  ;;  %7158 = vmatpush3.bf16.msra.mxu1 %v3671_v36 }
0x2534   :  { %7734 = vpow2.f32 %v3601_v31  ;;  %v3622_v48 = vsel %vm604_vm7, %v3617_v47, 0  ;;  %7169 = vmatprep.subr.bf16.mxu1 %v7906_v1 }
0x2535   :  { %7152 = vmatpush3.bf16.msra.mxu0 %v3622_v48 }
0x2536   :  { %7163 = vmatprep.subr.bf16.mxu0 %v7906_v1 }
0x253c   :  { %v7733_v30 = vpop.eup %7732 }
0x253d   :  { %v3603_v42 = vsel %vm501_vm4, %v7733_v30, 0.0 }
0x253e   :  { %v7735_v43 = vpop.eup %7734  ;;  %3604 = vadd.xlane.f32.xlu0 %v3603_v42 }
0x253f   :  { %v3606_v35 = vsel %vm501_vm4, %v7735_v43, 0.0 }
0x2540   :  { %3607 = vadd.xlane.f32.xlu1 %v3606_v35 }
0x2551   :  { %3715 = vrot.lane.b32.xlu1 %v8756_v21, %s7911_s6 }
0x2554   :  { %3765 = vrot.lane.b32.xlu0 %v8759_v41, %s7911_s6 }
0x2555   :  { %3713 = vrot.lane.b32.xlu1 %v8769_v4, %s7911_s6 }
0x2558   :  { %3763 = vrot.lane.b32.xlu0 %v8775_v9, %s7911_s6 }
0x25cb   :  { %v3605_v11 = vpop.xlane.xlu0 %3604 }
0x25cc   :  { %7736 = vrcp.f32 %v3605_v11 }
0x25cd   :  { %v3608_v19 = vpop.xlane.xlu1 %3607 }
0x25ce   :  { %7738 = vrcp.f32 %v3608_v19 }
0x25cf   :  { %v3766_v54 = vpop.permute.xlu0 %3765 }
0x25d0   :  { %v3771_v61 = vsel %vm963_vm6, %v3766_v54, 0 }
0x25d1   :  { %v3716_v38 = vpop.permute.xlu1 %3715 }
0x25d2   :  { %v3721_v55 = vsel %vm963_vm6, %v3716_v38, 0 }
0x25d3   :  { %v3764_v8 = vpop.permute.xlu0 %3763 }
0x25d5   :  { %v3714_v3 = vpop.permute.xlu1 %3713 }
0x25d6   :  { %v7737_v20 = vpop.eup %7736 }
0x25d7   :  { %v3611_v10 = vmul.f32 %v7737_v20, %v7733_v30 }
0x25d8   :  { %v7739_v22 = vpop.eup %7738 }
0x25d9   :  { %v3612_v46 = vmul.f32 %v7739_v22, %v7735_v43  ;;  %v3613_v52 = vpack.c.bf16 %v3611_v10, %v3611_v10 }
0x25db   :  { %7154 = vmatmul.mubr.msk.bf16.vlgmr.msra.gmra.mrb[96].mxu0 %vm501_vm4, %v3613_v52  ;;  %v3614_v60 = vpack.c.bf16 %v3612_v46, %v3612_v46 }
0x25dc   :  { %7164 = vmatpush3.bf16.xpose.msra.mxu0 %v3721_v55  ;;  %7165 = vmatprep.mubr.msk.bf16.mxu0 %vm7907_vm0, %v7906_v1 }
0x25dd   :  { %7160 = vmatmul.mubr.msk.bf16.vlgmr.msra.gmra.mrb[108].mxu1 %vm501_vm4, %v3614_v60  ;;  %7175 = vmatprep.subr.bf16.mxu0 %v7906_v1 }
0x25de   :  { %7170 = vmatpush3.bf16.xpose.msra.mxu1 %v3771_v61  ;;  %7171 = vmatprep.mubr.msk.bf16.mxu1 %vm7907_vm0, %v7906_v1 }
0x25df   :  { %7181 = vmatprep.subr.bf16.mxu1 %v7906_v1 }
0x25e3   :  { %7166 = vmatmul.mubr.msk.bf16.vlgmr.msra.gmra.mrb[100].mxu0 %vm963_vm6, %v3714_v3 }
0x25e4   :  { %7177 = vmatprep.mubr.msk.bf16.mxu0 %vm7907_vm0, %v7906_v1 }
0x25e5   :  { %7172 = vmatmul.mubr.msk.bf16.vlgmr.msra.gmra.mrb[112].mxu1 %vm963_vm6, %v3764_v8 }
0x25e6   :  { %7183 = vmatprep.mubr.msk.bf16.mxu1 %vm7907_vm0, %v7906_v1 }
0x26ae   :  { %v8857_v6 = vpop.f32.mrb[96].mxu0 }
0x26af   :  { %v7155_v29 = vpop.f32.mrb[97].mxu0 }
0x26b0   :  { %v3661_v32 = vpop.f32.mrb[98].mxu0  ;;  %v8859_v7 = vpop.f32.mrb[108].mxu1 }
0x26b1   :  { %v7545_v44 = vpack.i.bf16 %v8859_v7, %v8857_v6  ;;  %v7156_v14 = vpop.f32.mrb[99].mxu0  ;;  %v7161_v16 = vpop.f32.mrb[109].mxu1 }
0x26b2   :  { %v3710_v18 = vpop.f32.mrb[110].mxu1 }
0x26b3   :  { %v7162_v23 = vpop.f32.mrb[111].mxu1 }
0x26b6   :  { %v3757_v24 = vpop.f32.mrb[100].mxu0 }
0x26b7   :  { %v3813_v25 = vmul.f32 0.5, %v3757_v24  ;;  %v7167_v40 = vpop.f32.mrb[101].mxu0 }
0x26b8   :  { %v3760_v26 = vpop.f32.mrb[102].mxu0  ;;  %v3807_v27 = vpop.f32.mrb[112].mxu1 }
0x26b9   :  { %v3814_v45 = vmul.f32 0.5, %v3807_v27  ;;  %v7168_v50 = vpop.f32.mrb[103].mxu0  ;;  %v7173_v51 = vpop.f32.mrb[113].mxu1  ;;  %v3815_v28 = vsel %vm501_vm4, %v3813_v25, -inf }
0x26ba   :  { %v3810_v58 = vpop.f32.mrb[114].mxu1  ;;  %3816 = vmax.xlane.f32.xlu1 %v3815_v28 }
0x26bb   :  { %v7174_v39 = vpop.f32.mrb[115].mxu1  ;;  %v3818_v31 = vsel %vm501_vm4, %v3814_v45, -inf }
0x26bc   :  { %3819 = vmax.xlane.f32.xlu0 %v3818_v31 }
0x26cb   :  { %3887 = vrot.lane.b32.xlu1 %v8771_v5, %s7911_s6 }
0x26d2   :  { %3839 = vrot.lane.b32.xlu0 %v8767_v2, %s7911_s6  ;;  %s9347_s6 = sld [smem:[#allocation37_spill]] }
0x2747   :  { %v3817_v36 = vpop.xlane.xlu1 %3816 }
0x2748   :  { %v3821_v47 = vsub.f32 %v3813_v25, %v3817_v36 }
0x2749   :  { %v3820_v48 = vpop.xlane.xlu0 %3819 }
0x274a   :  { %v3823_v30 = vmul.f32 1.442695, %v3821_v47  ;;  %v3822_v42 = vsub.f32 %v3814_v45, %v3820_v48 }
0x274b   :  { %v3888_v43 = vpop.permute.xlu1 %3887 }
0x274c   :  { %7740 = vpow2.f32 %v3823_v30  ;;  %v3825_v35 = vmul.f32 1.442695, %v3822_v42  ;;  %v3893_v11 = vsel %vm604_vm7, %v3888_v43, 0 }
0x274d   :  { %v3840_v19 = vpop.permute.xlu0 %3839  ;;  %7182 = vmatpush3.bf16.msra.mxu1 %v3893_v11 }
0x274e   :  { %7742 = vpow2.f32 %v3825_v35  ;;  %v3845_v20 = vsel %vm604_vm7, %v3840_v19, 0  ;;  %7193 = vmatprep.subr.bf16.mxu1 %v7906_v1 }
0x274f   :  { %7176 = vmatpush3.bf16.msra.mxu0 %v3845_v20 }
0x2750   :  { %7187 = vmatprep.subr.bf16.mxu0 %v7906_v1 }
0x2756   :  { %v7741_v10 = vpop.eup %7740 }
0x2757   :  { %v3827_v22 = vsel %vm501_vm4, %v7741_v10, 0.0 }
0x2758   :  { %v7743_v38 = vpop.eup %7742  ;;  %3828 = vadd.xlane.f32.xlu0 %v3827_v22 }
0x2759   :  { %v3830_v46 = vsel %vm501_vm4, %v7743_v38, 0.0 }
0x275a   :  { %3831 = vadd.xlane.f32.xlu1 %v3830_v46 }
0x276b   :  { %3937 = vrot.lane.b32.xlu1 %v8756_v21, %s7912_s12 }
0x276e   :  { %3987 = vrot.lane.b32.xlu0 %v8759_v41, %s7912_s12 }
0x276f   :  { %3935 = vrot.lane.b32.xlu1 %v8769_v4, %s7912_s12 }
0x2772   :  { %3985 = vrot.lane.b32.xlu0 %v8775_v9, %s7912_s12 }
0x27e5   :  { %v3829_v52 = vpop.xlane.xlu0 %3828 }
0x27e6   :  { %7744 = vrcp.f32 %v3829_v52 }
0x27e7   :  { %v3832_v54 = vpop.xlane.xlu1 %3831 }
0x27e8   :  { %7746 = vrcp.f32 %v3832_v54 }
0x27e9   :  { %v3988_v32 = vpop.permute.xlu0 %3987 }
0x27ea   :  { %v3993_v18 = vsel %vm963_vm6, %v3988_v32, 0 }
0x27eb   :  { %v3938_v3 = vpop.permute.xlu1 %3937 }
0x27ec   :  { %v3943_v14 = vsel %vm963_vm6, %v3938_v3, 0 }
0x27ed   :  { %v3986_v24 = vpop.permute.xlu0 %3985 }
0x27ef   :  { %v3936_v23 = vpop.permute.xlu1 %3935 }
0x27f0   :  { %v7745_v55 = vpop.eup %7744 }
0x27f1   :  { %v3835_v60 = vmul.f32 %v7745_v55, %v7741_v10 }
0x27f2   :  { %v7747_v61 = vpop.eup %7746 }
0x27f3   :  { %v3836_v8 = vmul.f32 %v7747_v61, %v7743_v38  ;;  %v3837_v29 = vpack.c.bf16 %v3835_v60, %v3835_v60 }
0x27f5   :  { %7178 = vmatmul.mubr.msk.bf16.vlgmr.msra.gmra.mrb[104].mxu0 %vm501_vm4, %v3837_v29  ;;  %v3838_v16 = vpack.c.bf16 %v3836_v8, %v3836_v8 }
0x27f6   :  { %7188 = vmatpush3.bf16.xpose.msra.mxu0 %v3943_v14  ;;  %7189 = vmatprep.mubr.msk.bf16.mxu0 %vm7907_vm0, %v7906_v1 }
0x27f7   :  { %7184 = vmatmul.mubr.msk.bf16.vlgmr.msra.gmra.mrb[116].mxu1 %vm501_vm4, %v3838_v16  ;;  %7199 = vmatprep.subr.bf16.mxu0 %v7906_v1 }
0x27f8   :  { %7194 = vmatpush3.bf16.xpose.msra.mxu1 %v3993_v18  ;;  %7195 = vmatprep.mubr.msk.bf16.mxu1 %vm7907_vm0, %v7906_v1 }
0x27f9   :  { %7205 = vmatprep.subr.bf16.mxu1 %v7906_v1 }
0x27fd   :  { %7190 = vmatmul.mubr.msk.bf16.vlgmr.msra.gmra.mrb[108].mxu0 %vm963_vm6, %v3936_v23 }
0x27fe   :  { %7201 = vmatprep.mubr.msk.bf16.mxu0 %vm7907_vm0, %v7906_v1 }
0x27ff   :  { %7196 = vmatmul.mubr.msk.bf16.vlgmr.msra.gmra.mrb[120].mxu1 %vm963_vm6, %v3986_v24 }
0x2800   :  { %7207 = vmatprep.mubr.msk.bf16.mxu1 %vm7907_vm0, %v7906_v1 }
0x28c8   :  { %v8899_v25 = vpop.f32.mrb[104].mxu0 }
0x28c9   :  { %v7179_v40 = vpop.f32.mrb[105].mxu0 }
0x28ca   :  { %v3884_v26 = vpop.f32.mrb[106].mxu0  ;;  %v8901_v27 = vpop.f32.mrb[116].mxu1 }
0x28cb   :  { %v7550_v45 = vpack.i.bf16 %v8901_v27, %v8899_v25  ;;  %v7180_v50 = vpop.f32.mrb[107].mxu0  ;;  %v7185_v51 = vpop.f32.mrb[117].mxu1 }
0x28cc   :  { %v3932_v28 = vpop.f32.mrb[118].mxu1 }
0x28cd   :  { %v7186_v58 = vpop.f32.mrb[119].mxu1 }
0x28d0   :  { %v3979_v39 = vpop.f32.mrb[108].mxu0 }
0x28d1   :  { %v4035_v31 = vmul.f32 0.5, %v3979_v39  ;;  %v7191_v36 = vpop.f32.mrb[109].mxu0 }
0x28d2   :  { %v3982_v47 = vpop.f32.mrb[110].mxu0  ;;  %v4029_v48 = vpop.f32.mrb[120].mxu1 }
0x28d3   :  { %v4036_v30 = vmul.f32 0.5, %v4029_v48  ;;  %v7192_v42 = vpop.f32.mrb[111].mxu0  ;;  %v7197_v43 = vpop.f32.mrb[121].mxu1  ;;  %v4037_v35 = vsel %vm501_vm4, %v4035_v31, -inf }
0x28d4   :  { %v4032_v11 = vpop.f32.mrb[122].mxu1  ;;  %4038 = vmax.xlane.f32.xlu1 %v4037_v35 }
0x28d5   :  { %v7198_v19 = vpop.f32.mrb[123].mxu1  ;;  %v4040_v20 = vsel %vm501_vm4, %v4036_v30, -inf }
0x28d6   :  { %4041 = vmax.xlane.f32.xlu0 %v4040_v20 }
0x28e5   :  { %4109 = vrot.lane.b32.xlu1 %v8771_v5, %s7912_s12 }
0x28ec   :  { %4061 = vrot.lane.b32.xlu0 %v8767_v2, %s7912_s12  ;;  %s9348_s12 = sld [smem:[#allocation10_spill]] }
0x2961   :  { %v4039_v10 = vpop.xlane.xlu1 %4038 }
0x2962   :  { %v4043_v22 = vsub.f32 %v4035_v31, %v4039_v10 }
0x2963   :  { %v4042_v38 = vpop.xlane.xlu0 %4041 }
0x2964   :  { %v4045_v46 = vmul.f32 1.442695, %v4043_v22  ;;  %v4044_v52 = vsub.f32 %v4036_v30, %v4042_v38 }
0x2965   :  { %v4110_v54 = vpop.permute.xlu1 %4109 }
0x2966   :  { %7748 = vpow2.f32 %v4045_v46  ;;  %v4047_v55 = vmul.f32 1.442695, %v4044_v52  ;;  %v4115_v60 = vsel %vm604_vm7, %v4110_v54, 0 }
0x2967   :  { %v4062_v61 = vpop.permute.xlu0 %4061  ;;  %7206 = vmatpush3.bf16.msra.mxu1 %v4115_v60 }
0x2968   :  { %7750 = vpow2.f32 %v4047_v55  ;;  %v4067_v3 = vsel %vm604_vm7, %v4062_v61, 0  ;;  %7217 = vmatprep.subr.bf16.mxu1 %v7906_v1 }
0x2969   :  { %7200 = vmatpush3.bf16.msra.mxu0 %v4067_v3 }
0x296a   :  { %7211 = vmatprep.subr.bf16.mxu0 %v7906_v1 }
0x2970   :  { %v7749_v8 = vpop.eup %7748 }
0x2971   :  { %v4049_v29 = vsel %vm501_vm4, %v7749_v8, 0.0 }
0x2972   :  { %v7751_v32 = vpop.eup %7750  ;;  %4050 = vadd.xlane.f32.xlu0 %v4049_v29 }
0x2973   :  { %v4052_v14 = vsel %vm501_vm4, %v7751_v32, 0.0 }
0x2974   :  { %4053 = vadd.xlane.f32.xlu1 %v4052_v14 }
0x2985   :  { %4159 = vrot.lane.b32.xlu1 %v8756_v21, %s7913_s20 }
0x2988   :  { %4209 = vrot.lane.b32.xlu0 %v8759_v41, %s7913_s20 }
0x2989   :  { %4157 = vrot.lane.b32.xlu1 %v8769_v4, %s7913_s20 }
0x298c   :  { %4207 = vrot.lane.b32.xlu0 %v8775_v9, %s7913_s20 }
0x29ff   :  { %v4051_v16 = vpop.xlane.xlu0 %4050 }
0x2a00   :  { %7752 = vrcp.f32 %v4051_v16 }
0x2a01   :  { %v4054_v18 = vpop.xlane.xlu1 %4053 }
0x2a02   :  { %7754 = vrcp.f32 %v4054_v18 }
0x2a03   :  { %v4210_v28 = vpop.permute.xlu0 %4209 }
0x2a04   :  { %v4215_v31 = vsel %vm963_vm6, %v4210_v28, 0 }
0x2a05   :  { %v4160_v26 = vpop.permute.xlu1 %4159 }
0x2a06   :  { %v4165_v58 = vsel %vm963_vm6, %v4160_v26, 0 }
0x2a07   :  { %v4208_v47 = vpop.permute.xlu0 %4207 }
0x2a09   :  { %v4158_v36 = vpop.permute.xlu1 %4157 }
0x2a0a   :  { %v7753_v23 = vpop.eup %7752 }
0x2a0b   :  { %v4057_v24 = vmul.f32 %v7753_v23, %v7749_v8 }
0x2a0c   :  { %v7755_v40 = vpop.eup %7754 }
0x2a0d   :  { %v4058_v50 = vmul.f32 %v7755_v40, %v7751_v32  ;;  %v4059_v51 = vpack.c.bf16 %v4057_v24, %v4057_v24 }
0x2a0f   :  { %7202 = vmatmul.mubr.msk.bf16.vlgmr.msra.gmra.mrb[112].mxu0 %vm501_vm4, %v4059_v51  ;;  %v4060_v39 = vpack.c.bf16 %v4058_v50, %v4058_v50 }
0x2a10   :  { %7212 = vmatpush3.bf16.xpose.msra.mxu0 %v4165_v58  ;;  %7213 = vmatprep.mubr.msk.bf16.mxu0 %vm7907_vm0, %v7906_v1 }
0x2a11   :  { %7208 = vmatmul.mubr.msk.bf16.vlgmr.msra.gmra.mrb[124].mxu1 %vm501_vm4, %v4060_v39  ;;  %7223 = vmatprep.subr.bf16.mxu0 %v7906_v1 }
0x2a12   :  { %7218 = vmatpush3.bf16.xpose.msra.mxu1 %v4215_v31  ;;  %7219 = vmatprep.mubr.msk.bf16.mxu1 %vm7907_vm0, %v7906_v1 }
0x2a13   :  { %7229 = vmatprep.subr.bf16.mxu1 %v7906_v1 }
0x2a17   :  { %7214 = vmatmul.mubr.msk.bf16.vlgmr.msra.gmra.mrb[116].mxu0 %vm963_vm6, %v4158_v36 }
0x2a18   :  { %7225 = vmatprep.mubr.msk.bf16.mxu0 %vm7907_vm0, %v7906_v1 }
0x2a19   :  { %7220 = vmatmul.mubr.msk.bf16.vlgmr.msra.gmra.mrb[128].mxu1 %vm963_vm6, %v4208_v47 }
0x2a1a   :  { %7231 = vmatprep.mubr.msk.bf16.mxu1 %vm7907_vm0, %v7906_v1 }
0x2ae2   :  { %v8941_v48 = vpop.f32.mrb[112].mxu0 }
0x2ae3   :  { %v7203_v30 = vpop.f32.mrb[113].mxu0 }
0x2ae4   :  { %v4106_v42 = vpop.f32.mrb[114].mxu0  ;;  %v8943_v43 = vpop.f32.mrb[124].mxu1 }
0x2ae5   :  { %v7555_v35 = vpack.i.bf16 %v8943_v43, %v8941_v48  ;;  %v7204_v11 = vpop.f32.mrb[115].mxu0  ;;  %v7209_v19 = vpop.f32.mrb[125].mxu1 }
0x2ae6   :  { %v4154_v20 = vpop.f32.mrb[126].mxu1 }
0x2ae7   :  { %v7210_v10 = vpop.f32.mrb[127].mxu1 }
0x2aea   :  { %v4201_v22 = vpop.f32.mrb[116].mxu0 }
0x2aeb   :  { %v4257_v38 = vmul.f32 0.5, %v4201_v22  ;;  %v7215_v46 = vpop.f32.mrb[117].mxu0 }
0x2aec   :  { %v4204_v52 = vpop.f32.mrb[118].mxu0  ;;  %v4251_v54 = vpop.f32.mrb[128].mxu1 }
0x2aed   :  { %v4258_v55 = vmul.f32 0.5, %v4251_v54  ;;  %v7216_v60 = vpop.f32.mrb[119].mxu0  ;;  %v7221_v61 = vpop.f32.mrb[129].mxu1  ;;  %v4259_v3 = vsel %vm501_vm4, %v4257_v38, -inf }
0x2aee   :  { %v4254_v8 = vpop.f32.mrb[130].mxu1  ;;  %4260 = vmax.xlane.f32.xlu1 %v4259_v3 }
0x2aef   :  { %v7222_v29 = vpop.f32.mrb[131].mxu1  ;;  %v4262_v32 = vsel %vm501_vm4, %v4258_v55, -inf }
0x2af0   :  { %4263 = vmax.xlane.f32.xlu0 %v4262_v32 }
0x2aff   :  { %4331 = vrot.lane.b32.xlu1 %v8771_v5, %s7913_s20 }
0x2b06   :  { %4283 = vrot.lane.b32.xlu0 %v8767_v2, %s7913_s20  ;;  %s9349_s20 = sld [smem:[#allocation36_spill]] }
0x2b7b   :  { %v4261_v14 = vpop.xlane.xlu1 %4260 }
0x2b7c   :  { %v4265_v16 = vsub.f32 %v4257_v38, %v4261_v14 }
0x2b7d   :  { %v4264_v18 = vpop.xlane.xlu0 %4263 }
0x2b7e   :  { %v4267_v23 = vmul.f32 1.442695, %v4265_v16  ;;  %v4266_v24 = vsub.f32 %v4258_v55, %v4264_v18 }
0x2b7f   :  { %v4332_v40 = vpop.permute.xlu1 %4331 }
0x2b80   :  { %7756 = vpow2.f32 %v4267_v23  ;;  %v4269_v26 = vmul.f32 1.442695, %v4266_v24  ;;  %v4337_v50 = vsel %vm604_vm7, %v4332_v40, 0 }
0x2b81   :  { %v4284_v51 = vpop.permute.xlu0 %4283  ;;  %7230 = vmatpush3.bf16.msra.mxu1 %v4337_v50 }
0x2b82   :  { %7758 = vpow2.f32 %v4269_v26  ;;  %v4289_v28 = vsel %vm604_vm7, %v4284_v51, 0  ;;  %7241 = vmatprep.subr.bf16.mxu1 %v7906_v1 }
0x2b83   :  { %7224 = vmatpush3.bf16.msra.mxu0 %v4289_v28 }
0x2b84   :  { %7235 = vmatprep.subr.bf16.mxu0 %v7906_v1 }
0x2b8a   :  { %v7757_v58 = vpop.eup %7756 }
0x2b8b   :  { %v4271_v39 = vsel %vm501_vm4, %v7757_v58, 0.0 }
0x2b8c   :  { %v7759_v31 = vpop.eup %7758  ;;  %4272 = vadd.xlane.f32.xlu0 %v4271_v39 }
0x2b8d   :  { %v4274_v36 = vsel %vm501_vm4, %v7759_v31, 0.0 }
0x2b8e   :  { %4275 = vadd.xlane.f32.xlu1 %v4274_v36 }
0x2b9f   :  { %4381 = vrot.lane.b32.xlu1 %v8756_v21, %s7914_s4 }
0x2ba2   :  { %4431 = vrot.lane.b32.xlu0 %v8759_v41, %s7914_s4 }
0x2ba3   :  { %4379 = vrot.lane.b32.xlu1 %v8769_v4, %s7914_s4 }
0x2ba6   :  { %4429 = vrot.lane.b32.xlu0 %v8775_v9, %s7914_s4 }
0x2c19   :  { %v4273_v47 = vpop.xlane.xlu0 %4272 }
0x2c1a   :  { %7760 = vrcp.f32 %v4273_v47 }
0x2c1b   :  { %v4276_v30 = vpop.xlane.xlu1 %4275 }
0x2c1c   :  { %7762 = vrcp.f32 %v4276_v30 }
0x2c1d   :  { %v4432_v38 = vpop.permute.xlu0 %4431 }
0x2c1e   :  { %v4437_v54 = vsel %vm963_vm6, %v4432_v38, 0 }
0x2c1f   :  { %v4382_v20 = vpop.permute.xlu1 %4381 }
0x2c20   :  { %v4387_v46 = vsel %vm963_vm6, %v4382_v20, 0 }
0x2c21   :  { %v4430_v60 = vpop.permute.xlu0 %4429 }
0x2c23   :  { %v4380_v55 = vpop.permute.xlu1 %4379 }
0x2c24   :  { %v7761_v42 = vpop.eup %7760 }
0x2c25   :  { %v4279_v11 = vmul.f32 %v7761_v42, %v7757_v58 }
0x2c26   :  { %v7763_v19 = vpop.eup %7762 }
0x2c27   :  { %v4280_v10 = vmul.f32 %v7763_v19, %v7759_v31  ;;  %v4281_v22 = vpack.c.bf16 %v4279_v11, %v4279_v11 }
0x2c29   :  { %7226 = vmatmul.mubr.msk.bf16.vlgmr.msra.gmra.mrb[120].mxu0 %vm501_vm4, %v4281_v22  ;;  %v4282_v52 = vpack.c.bf16 %v4280_v10, %v4280_v10 }
0x2c2a   :  { %7236 = vmatpush3.bf16.xpose.msra.mxu0 %v4387_v46  ;;  %7237 = vmatprep.mubr.msk.bf16.mxu0 %vm7907_vm0, %v7906_v1 }
0x2c2b   :  { %7232 = vmatmul.mubr.msk.bf16.vlgmr.msra.gmra.mrb[132].mxu1 %vm501_vm4, %v4282_v52  ;;  %7247 = vmatprep.subr.bf16.mxu0 %v7906_v1 }
0x2c2c   :  { %7242 = vmatpush3.bf16.xpose.msra.mxu1 %v4437_v54  ;;  %7243 = vmatprep.mubr.msk.bf16.mxu1 %vm7907_vm0, %v7906_v1 }
0x2c2d   :  { %7253 = vmatprep.subr.bf16.mxu1 %v7906_v1 }
0x2c31   :  { %7238 = vmatmul.mubr.msk.bf16.vlgmr.msra.gmra.mrb[124].mxu0 %vm963_vm6, %v4380_v55 }
0x2c32   :  { %7249 = vmatprep.mubr.msk.bf16.mxu0 %vm7907_vm0, %v7906_v1 }
0x2c33   :  { %7244 = vmatmul.mubr.msk.bf16.vlgmr.msra.gmra.mrb[136].mxu1 %vm963_vm6, %v4430_v60 }
0x2c34   :  { %7255 = vmatprep.mubr.msk.bf16.mxu1 %vm7907_vm0, %v7906_v1 }
0x2cfc   :  { %v8983_v61 = vpop.f32.mrb[120].mxu0 }
0x2cfd   :  { %v7227_v3 = vpop.f32.mrb[121].mxu0 }
0x2cfe   :  { %v4328_v8 = vpop.f32.mrb[122].mxu0  ;;  %v8985_v29 = vpop.f32.mrb[132].mxu1 }
0x2cff   :  { %v7560_v32 = vpack.i.bf16 %v8985_v29, %v8983_v61  ;;  %v7228_v14 = vpop.f32.mrb[123].mxu0  ;;  %v7233_v16 = vpop.f32.mrb[133].mxu1  ;;  %v7616_v29 = vld [vmem:[%s9331_s23 + $0x10] sm:$0xff]  }
0x2d00   :  { %v4376_v18 = vpop.f32.mrb[134].mxu1 }
0x2d01   :  { %v7234_v23 = vpop.f32.mrb[135].mxu1 }
0x2d04   :  { %v4423_v24 = vpop.f32.mrb[124].mxu0 }
0x2d05   :  { %v4479_v40 = vmul.f32 0.5, %v4423_v24  ;;  %v7239_v26 = vpop.f32.mrb[125].mxu0 }
0x2d06   :  { %v4426_v50 = vpop.f32.mrb[126].mxu0  ;;  %v4473_v51 = vpop.f32.mrb[136].mxu1 }
0x2d07   :  { %v4480_v28 = vmul.f32 0.5, %v4473_v51  ;;  %v7240_v58 = vpop.f32.mrb[127].mxu0  ;;  %v7245_v39 = vpop.f32.mrb[137].mxu1  ;;  %v4481_v31 = vsel %vm501_vm4, %v4479_v40, -inf }
0x2d08   :  { %v4476_v36 = vpop.f32.mrb[138].mxu1  ;;  %4482 = vmax.xlane.f32.xlu1 %v4481_v31 }
0x2d09   :  { %v7246_v47 = vpop.f32.mrb[139].mxu1  ;;  %v4484_v30 = vsel %vm501_vm4, %v4480_v28, -inf }
0x2d0a   :  { %4485 = vmax.xlane.f32.xlu0 %v4484_v30 }
0x2d19   :  { %4553 = vrot.lane.b32.xlu1 %v8771_v5, %s7914_s4 }
0x2d20   :  { %4505 = vrot.lane.b32.xlu0 %v8767_v2, %s7914_s4  ;;  %s9350_s4 = sld [smem:[#allocation35_spill]] }
0x2d95   :  { %v4483_v42 = vpop.xlane.xlu1 %4482 }
0x2d96   :  { %v4487_v11 = vsub.f32 %v4479_v40, %v4483_v42 }
0x2d97   :  { %v4486_v19 = vpop.xlane.xlu0 %4485 }
0x2d98   :  { %v4489_v20 = vmul.f32 1.442695, %v4487_v11  ;;  %v4488_v10 = vsub.f32 %v4480_v28, %v4486_v19 }
0x2d99   :  { %v4554_v22 = vpop.permute.xlu1 %4553 }
0x2d9a   :  { %7764 = vpow2.f32 %v4489_v20  ;;  %v4491_v38 = vmul.f32 1.442695, %v4488_v10  ;;  %v4559_v46 = vsel %vm604_vm7, %v4554_v22, 0 }
0x2d9b   :  { %v4506_v52 = vpop.permute.xlu0 %4505  ;;  %7254 = vmatpush3.bf16.msra.mxu1 %v4559_v46 }
0x2d9c   :  { %7766 = vpow2.f32 %v4491_v38  ;;  %v4511_v54 = vsel %vm604_vm7, %v4506_v52, 0  ;;  %7265 = vmatprep.subr.bf16.mxu1 %v7906_v1 }
0x2d9d   :  { %7248 = vmatpush3.bf16.msra.mxu0 %v4511_v54 }
0x2d9e   :  { %7259 = vmatprep.subr.bf16.mxu0 %v7906_v1 }
0x2da4   :  { %v7765_v55 = vpop.eup %7764 }
0x2da5   :  { %v4493_v60 = vsel %vm501_vm4, %v7765_v55, 0.0 }
0x2da6   :  { %v7767_v3 = vpop.eup %7766  ;;  %4494 = vadd.xlane.f32.xlu0 %v4493_v60 }
0x2da7   :  { %v4496_v8 = vsel %vm501_vm4, %v7767_v3, 0.0 }
0x2da8   :  { %4497 = vadd.xlane.f32.xlu1 %v4496_v8 }
0x2db9   :  { %4603 = vrot.lane.b32.xlu1 %v8756_v21, %s7915_s2 }
0x2dbc   :  { %4653 = vrot.lane.b32.xlu0 %v8759_v41, %s7915_s2 }
0x2dbd   :  { %4601 = vrot.lane.b32.xlu1 %v8769_v4, %s7915_s2 }
0x2dc0   :  { %4651 = vrot.lane.b32.xlu0 %v8775_v9, %s7915_s2 }
0x2e33   :  { %v4495_v14 = vpop.xlane.xlu0 %4494 }
0x2e34   :  { %7768 = vrcp.f32 %v4495_v14 }
0x2e35   :  { %v4498_v16 = vpop.xlane.xlu1 %4497 }
0x2e36   :  { %7770 = vrcp.f32 %v4498_v16 }
0x2e37   :  { %v4654_v51 = vpop.permute.xlu0 %4653 }
0x2e38   :  { %v4659_v39 = vsel %vm963_vm6, %v4654_v51, 0 }
0x2e39   :  { %v4604_v40 = vpop.permute.xlu1 %4603 }
0x2e3a   :  { %v4609_v28 = vsel %vm963_vm6, %v4604_v40, 0 }
0x2e3b   :  { %v4652_v36 = vpop.permute.xlu0 %4651 }
0x2e3d   :  { %v4602_v31 = vpop.permute.xlu1 %4601 }
0x2e3e   :  { %v7769_v18 = vpop.eup %7768 }
0x2e3f   :  { %v4501_v23 = vmul.f32 %v7769_v18, %v7765_v55 }
0x2e40   :  { %v7771_v24 = vpop.eup %7770 }
0x2e41   :  { %v4502_v26 = vmul.f32 %v7771_v24, %v7767_v3  ;;  %v4503_v50 = vpack.c.bf16 %v4501_v23, %v4501_v23 }
0x2e43   :  { %7250 = vmatmul.mubr.msk.bf16.vlgmr.msra.gmra.mrb[128].mxu0 %vm501_vm4, %v4503_v50  ;;  %v4504_v58 = vpack.c.bf16 %v4502_v26, %v4502_v26 }
0x2e44   :  { %7260 = vmatpush3.bf16.xpose.msra.mxu0 %v4609_v28  ;;  %7261 = vmatprep.mubr.msk.bf16.mxu0 %vm7907_vm0, %v7906_v1 }
0x2e45   :  { %7256 = vmatmul.mubr.msk.bf16.vlgmr.msra.gmra.mrb[140].mxu1 %vm501_vm4, %v4504_v58  ;;  %7271 = vmatprep.subr.bf16.mxu0 %v7906_v1 }
0x2e46   :  { %7266 = vmatpush3.bf16.xpose.msra.mxu1 %v4659_v39  ;;  %7267 = vmatprep.mubr.msk.bf16.mxu1 %vm7907_vm0, %v7906_v1 }
0x2e47   :  { %7277 = vmatprep.subr.bf16.mxu1 %v7906_v1 }
0x2e4b   :  { %7262 = vmatmul.mubr.msk.bf16.vlgmr.msra.gmra.mrb[132].mxu0 %vm963_vm6, %v4602_v31 }
0x2e4c   :  { %7273 = vmatprep.mubr.msk.bf16.mxu0 %vm7907_vm0, %v7906_v1 }
0x2e4d   :  { %7268 = vmatmul.mubr.msk.bf16.vlgmr.msra.gmra.mrb[144].mxu1 %vm963_vm6, %v4652_v36 }
0x2e4e   :  { %7279 = vmatprep.mubr.msk.bf16.mxu1 %vm7907_vm0, %v7906_v1 }
0x2f16   :  { %v9025_v47 = vpop.f32.mrb[128].mxu0 }
0x2f17   :  { %v7251_v30 = vpop.f32.mrb[129].mxu0 }
0x2f18   :  { %v4550_v42 = vpop.f32.mrb[130].mxu0  ;;  %v9027_v11 = vpop.f32.mrb[140].mxu1 }
0x2f19   :  { %v7565_v19 = vpack.i.bf16 %v9027_v11, %v9025_v47  ;;  %v7252_v20 = vpop.f32.mrb[131].mxu0  ;;  %v7257_v10 = vpop.f32.mrb[141].mxu1 }
0x2f1a   :  { %v4598_v22 = vpop.f32.mrb[142].mxu1 }
0x2f1b   :  { %v7258_v38 = vpop.f32.mrb[143].mxu1 }
0x2f1e   :  { %v4645_v46 = vpop.f32.mrb[132].mxu0 }
0x2f1f   :  { %v4701_v52 = vmul.f32 0.5, %v4645_v46  ;;  %v7263_v54 = vpop.f32.mrb[133].mxu0 }
0x2f20   :  { %v4648_v55 = vpop.f32.mrb[134].mxu0  ;;  %v4695_v60 = vpop.f32.mrb[144].mxu1 }
0x2f21   :  { %v4702_v3 = vmul.f32 0.5, %v4695_v60  ;;  %v7264_v8 = vpop.f32.mrb[135].mxu0  ;;  %v7269_v14 = vpop.f32.mrb[145].mxu1  ;;  %v4703_v16 = vsel %vm501_vm4, %v4701_v52, -inf }
0x2f22   :  { %v4698_v18 = vpop.f32.mrb[146].mxu1  ;;  %4704 = vmax.xlane.f32.xlu1 %v4703_v16 }
0x2f23   :  { %v7270_v23 = vpop.f32.mrb[147].mxu1  ;;  %v4706_v24 = vsel %vm501_vm4, %v4702_v3, -inf }
0x2f24   :  { %4707 = vmax.xlane.f32.xlu0 %v4706_v24 }
0x2f33   :  { %4775 = vrot.lane.b32.xlu1 %v8771_v5, %s7915_s2 }
0x2f3a   :  { %4727 = vrot.lane.b32.xlu0 %v8767_v2, %s7915_s2  ;;  %s7926_s2 = smov 57  }
0x2faf   :  { %v4705_v40 = vpop.xlane.xlu1 %4704 }
0x2fb0   :  { %v4709_v26 = vsub.f32 %v4701_v52, %v4705_v40 }
0x2fb1   :  { %v4708_v50 = vpop.xlane.xlu0 %4707 }
0x2fb2   :  { %v4711_v51 = vmul.f32 1.442695, %v4709_v26  ;;  %v4710_v28 = vsub.f32 %v4702_v3, %v4708_v50 }
0x2fb3   :  { %v4776_v58 = vpop.permute.xlu1 %4775 }
0x2fb4   :  { %7772 = vpow2.f32 %v4711_v51  ;;  %v4713_v39 = vmul.f32 1.442695, %v4710_v28  ;;  %v4781_v31 = vsel %vm604_vm7, %v4776_v58, 0 }
0x2fb5   :  { %v4728_v36 = vpop.permute.xlu0 %4727  ;;  %7278 = vmatpush3.bf16.msra.mxu1 %v4781_v31 }
0x2fb6   :  { %7774 = vpow2.f32 %v4713_v39  ;;  %v4733_v30 = vsel %vm604_vm7, %v4728_v36, 0  ;;  %7289 = vmatprep.subr.bf16.mxu1 %v7906_v1 }
0x2fb7   :  { %7272 = vmatpush3.bf16.msra.mxu0 %v4733_v30 }
0x2fb8   :  { %7283 = vmatprep.subr.bf16.mxu0 %v7906_v1 }
0x2fbe   :  { %v7773_v42 = vpop.eup %7772 }
0x2fbf   :  { %v4715_v20 = vsel %vm501_vm4, %v7773_v42, 0.0 }
0x2fc0   :  { %v7775_v10 = vpop.eup %7774  ;;  %4716 = vadd.xlane.f32.xlu0 %v4715_v20 }
0x2fc1   :  { %v4718_v22 = vsel %vm501_vm4, %v7775_v10, 0.0 }
0x2fc2   :  { %4719 = vadd.xlane.f32.xlu1 %v4718_v22 }
0x2fd3   :  { %4825 = vrot.lane.b32.xlu1 %v8756_v21, %s7916_s10 }
0x2fd6   :  { %4875 = vrot.lane.b32.xlu0 %v8759_v41, %s7916_s10 }
0x2fd7   :  { %4823 = vrot.lane.b32.xlu1 %v8769_v4, %s7916_s10 }
0x2fda   :  { %4873 = vrot.lane.b32.xlu0 %v8775_v9, %s7916_s10 }
0x304d   :  { %v4717_v38 = vpop.xlane.xlu0 %4716 }
0x304e   :  { %7776 = vrcp.f32 %v4717_v38 }
0x304f   :  { %v4720_v46 = vpop.xlane.xlu1 %4719 }
0x3050   :  { %7778 = vrcp.f32 %v4720_v46 }
0x3051   :  { %v4876_v21 = vpop.permute.xlu0 %4875 }
0x3052   :  { %v4881_v4 = vsel %vm963_vm6, %v4876_v21, 0 }
0x3053   :  { %v4826_v60 = vpop.permute.xlu1 %4825 }
0x3054   :  { %v4831_v14 = vsel %vm963_vm6, %v4826_v60, 0 }
0x3055   :  { %v4874_v16 = vpop.permute.xlu0 %4873 }
0x3057   :  { %v4824_v9 = vpop.permute.xlu1 %4823 }
0x3058   :  { %v7777_v52 = vpop.eup %7776 }
0x3059   :  { %v4723_v54 = vmul.f32 %v7777_v52, %v7773_v42 }
0x305a   :  { %v7779_v55 = vpop.eup %7778 }
0x305b   :  { %v4724_v3 = vmul.f32 %v7779_v55, %v7775_v10  ;;  %v4725_v8 = vpack.c.bf16 %v4723_v54, %v4723_v54 }
0x305d   :  { %7274 = vmatmul.mubr.msk.bf16.vlgmr.msra.gmra.mrb[136].mxu0 %vm501_vm4, %v4725_v8  ;;  %v4726_v41 = vpack.c.bf16 %v4724_v3, %v4724_v3 }
0x305e   :  { %7284 = vmatpush3.bf16.xpose.msra.mxu0 %v4831_v14  ;;  %7285 = vmatprep.mubr.msk.bf16.mxu0 %vm7907_vm0, %v7906_v1 }
0x305f   :  { %7280 = vmatmul.mubr.msk.bf16.vlgmr.msra.gmra.mrb[148].mxu1 %vm501_vm4, %v4726_v41  ;;  %7295 = vmatprep.subr.bf16.mxu0 %v7906_v1 }
0x3060   :  { %7290 = vmatpush3.bf16.xpose.msra.mxu1 %v4881_v4  ;;  %7291 = vmatprep.mubr.msk.bf16.mxu1 %vm7907_vm0, %v7906_v1 }
0x3061   :  { %7301 = vmatprep.subr.bf16.mxu1 %v7906_v1 }
0x3065   :  { %7286 = vmatmul.mubr.msk.bf16.vlgmr.msra.gmra.mrb[140].mxu0 %vm963_vm6, %v4824_v9 }
0x3066   :  { %7297 = vmatprep.mubr.msk.bf16.mxu0 %vm7907_vm0, %v7906_v1 }
0x3067   :  { %7292 = vmatmul.mubr.msk.bf16.vlgmr.msra.gmra.mrb[152].mxu1 %vm963_vm6, %v4874_v16 }
0x3068   :  { %7303 = vmatprep.mubr.msk.bf16.mxu1 %vm7907_vm0, %v7906_v1 }
0x3130   :  { %v4769_v18 = vpop.f32.mrb[136].mxu0 }
0x3131   :  { %v7275_v23 = vpop.f32.mrb[137].mxu0 }
0x3132   :  { %v4772_v24 = vpop.f32.mrb[138].mxu0  ;;  %v4817_v40 = vpop.f32.mrb[148].mxu1 }
0x3133   :  { %v7570_v26 = vpack.i.bf16 %v4817_v40, %v4769_v18  ;;  %v7276_v50 = vpop.f32.mrb[139].mxu0  ;;  %v7281_v51 = vpop.f32.mrb[149].mxu1 }
0x3134   :  { %v4820_v28 = vpop.f32.mrb[150].mxu1 }
0x3135   :  { %v7282_v58 = vpop.f32.mrb[151].mxu1 }
0x3138   :  { %v4867_v39 = vpop.f32.mrb[140].mxu0 }
0x3139   :  { %v4923_v31 = vmul.f32 0.5, %v4867_v39  ;;  %v7287_v36 = vpop.f32.mrb[141].mxu0 }
0x313a   :  { %v4870_v30 = vpop.f32.mrb[142].mxu0  ;;  %v4917_v42 = vpop.f32.mrb[152].mxu1 }
0x313b   :  { %v4924_v20 = vmul.f32 0.5, %v4917_v42  ;;  %v7288_v10 = vpop.f32.mrb[143].mxu0  ;;  %v7293_v22 = vpop.f32.mrb[153].mxu1  ;;  %v4925_v38 = vsel %vm501_vm4, %v4923_v31, -inf }
0x313c   :  { %v4920_v46 = vpop.f32.mrb[154].mxu1  ;;  %4926 = vmax.xlane.f32.xlu1 %v4925_v38 }
0x313d   :  { %v7294_v52 = vpop.f32.mrb[155].mxu1  ;;  %v4928_v54 = vsel %vm501_vm4, %v4924_v20, -inf }
0x313e   :  { %4929 = vmax.xlane.f32.xlu0 %v4928_v54 }
0x31c9   :  { %v4927_v55 = vpop.xlane.xlu1 %4926 }
0x31ca   :  { %v4931_v60 = vsub.f32 %v4923_v31, %v4927_v55 }
0x31cb   :  { %v4930_v3 = vpop.xlane.xlu0 %4929 }
0x31cc   :  { %v4933_v8 = vmul.f32 1.442695, %v4931_v60  ;;  %v4932_v21 = vsub.f32 %v4924_v20, %v4930_v3 }
0x31ce   :  { %7780 = vpow2.f32 %v4933_v8  ;;  %v4935_v14 = vmul.f32 1.442695, %v4932_v21 }
0x31d0   :  { %7782 = vpow2.f32 %v4935_v14 }
0x31d8   :  { %v7781_v41 = vpop.eup %7780 }
0x31d9   :  { %v4937_v4 = vsel %vm501_vm4, %v7781_v41, 0.0 }
0x31da   :  { %v7783_v9 = vpop.eup %7782  ;;  %4938 = vadd.xlane.f32.xlu0 %v4937_v4 }
0x31db   :  { %v4940_v16 = vsel %vm501_vm4, %v7783_v9, 0.0 }
0x31dc   :  { %4941 = vadd.xlane.f32.xlu1 %v4940_v16 }
0x31ed   :  { %4997 = vrot.lane.b32.xlu1 %v8771_v5, %s7916_s10 }
0x31f0   :  { %4949 = vrot.lane.b32.xlu0 %v8767_v2, %s7916_s10  ;;  %s7927_s10 = smov 59  }
0x31f1   :  { %7546 = vrot.lane.b32.xlu1 %v7545_v44, %s7917_s7 }
0x31f4   :  { %7551 = vrot.lane.b32.xlu0 %v7550_v45, %s7918_s11 }
0x31f5   :  { %7556 = vrot.lane.b32.xlu1 %v7555_v35, %s7921_s18 }
0x31f8   :  { %7561 = vrot.lane.b32.xlu0 %v7560_v32, %s7919_s15  ;;  %v7617_v32 = vld [vmem:[%s9331_s23 + $0x18] sm:$0xff]  }
0x31f9   :  { %7566 = vrot.lane.b32.xlu1 %v7565_v19, %s7922_s22 }
0x31fc   :  { %7571 = vrot.lane.b32.xlu0 %v7570_v26, %s7920_s16 }
0x3267   :  { %v4939_v2 = vpop.xlane.xlu0 %4938 }
0x3268   :  { %7784 = vrcp.f32 %v4939_v2 }
0x3269   :  { %v4942_v5 = vpop.xlane.xlu1 %4941 }
0x326a   :  { %7786 = vrcp.f32 %v4942_v5 }
0x326b   :  { %v4950_v6 = vpop.permute.xlu0 %4949 }
0x326c   :  { %v4955_v7 = vsel %vm604_vm7, %v4950_v6, 0 }
0x326d   :  { %7296 = vmatpush3.bf16.msra.mxu0 %v4955_v7  ;;  %v4998_v44 = vpop.permute.xlu1 %4997 }
0x326e   :  { %v5003_v25 = vsel %vm604_vm7, %v4998_v44, 0  ;;  %7307 = vmatprep.subr.bf16.mxu0 %v7906_v1  ;;  %vm6346_vm7 = vcmask 474112  }
0x326f   :  { %7302 = vmatpush3.bf16.msra.mxu1 %v5003_v25  ;;  %v7552_v28 = vpop.permute.xlu0 %7551 }
0x3270   :  { %7315 = vmatprep.subr.bf16.mxu1 %v7906_v1  ;;  %v7554_v22 = vunpack.i.h.bf16 %v7552_v28  ;;  %v7553_v38 = vunpack.i.l.bf16 %v7552_v28 }
0x3271   :  { %v7547_v51 = vpop.permute.xlu1 %7546 }
0x3272   :  { %v7785_v27 = vpop.eup %7784  ;;  %v7549_v39 = vunpack.i.h.bf16 %v7547_v51  ;;  %v7548_v31 = vunpack.i.l.bf16 %v7547_v51 }
0x3273   :  { %v4945_v45 = vmul.f32 %v7785_v27, %v7781_v41  ;;  %v7562_v42 = vpop.permute.xlu0 %7561 }
0x3274   :  { %v7787_v48 = vpop.eup %7786  ;;  %v5102_v36 = vsel %vm963_vm6, %v8819_v62, %v7549_v39  ;;  %v5101_v30 = vsel %vm963_vm6, %v8817_v56, %v7548_v31  ;;  %v7564_v62 = vunpack.i.h.bf16 %v7562_v42  ;;  %v7563_v21 = vunpack.i.l.bf16 %v7562_v42  ;;  %v7620_v42 = vld [vmem:[%s9334_s28 + $0x20] sm:$0xff]  }
0x3275   :  { %v4946_v43 = vmul.f32 %v7787_v48, %v7783_v9  ;;  %v4947_v35 = vpack.c.bf16 %v4945_v45, %v4945_v45  ;;  %v7557_v58 = vpop.permute.xlu1 %7556  ;;  %v5103_v52 = vsel %vm501_vm4, %v5101_v30, %v7553_v38  ;;  %v5104_v54 = vsel %vm501_vm4, %v5102_v36, %v7554_v22  ;;  %v7618_v36 = vld [vmem:[%s9333_s26 + $0x10] sm:$0xff]   ;;  %v7619_v30 = vld [vmem:[%s9333_s26 + $0x18] sm:$0xff]  }
0x3276   :  { %v7559_v20 = vunpack.i.h.bf16 %v7557_v58  ;;  %v7558_v10 = vunpack.i.l.bf16 %v7557_v58 }
0x3277   :  { %7298 = vmatmul.mubr.msk.bf16.vlgmr.msra.gmra.mrb[144].mxu0 %vm501_vm4, %v4947_v35  ;;  %v4948_v61 = vpack.c.bf16 %v4946_v43, %v4946_v43  ;;  %v7572_v14 = vpop.permute.xlu0 %7571  ;;  %v6555_v43 = vld [vmem:[%s9332_s21 + $0x1] ss:$0 sm:$0xff] }
0x3278   :  { %7311 = vmatprep.mubr.msk.bf16.mxu0 %vm7907_vm0, %v7906_v1  ;;  %7308 = vmatpush3.bf16.msra.mxu0 %v7616_v29  ;;  %v5105_v55 = vsel %vm2794_vm8, %v5103_v52, %v7558_v10  ;;  %v5106_v60 = vsel %vm2794_vm8, %v5104_v54, %v7559_v20  ;;  %v7574_v16 = vunpack.i.h.bf16 %v7572_v14  ;;  %v7573_v2 = vunpack.i.l.bf16 %v7572_v14  ;;  %v7621_v20 = vld [vmem:[%s9334_s28 + $0x28] sm:$0xff]   ;;  %v6562_v14 = vld [vmem:[%s9336_s5 + $0x1] ss:$0 sm:$0xff] }
0x3279   :  { %7304 = vmatmul.mubr.msk.bf16.vlgmr.msra.gmra.mrb[156].mxu1 %vm501_vm4, %v4948_v61  ;;  %7309 = vmatprep.subr.bf16.mxu0 %v7906_v1  ;;  %v7567_v46 = vpop.permute.xlu1 %7566  ;;  %v5107_v56 = vsel %vm235_vm1, %v5105_v55, %v7563_v21  ;;  %v5108_v41 = vsel %vm235_vm1, %v5106_v60, %v7564_v62  ;;  %vm6144_vm4 = vcmask 254976  }
0x327a   :  { %7319 = vmatprep.mubr.msk.bf16.mxu1 %vm7907_vm0, %v7906_v1  ;;  %v7569_v3 = vunpack.i.h.bf16 %v7567_v46  ;;  %v7568_v8 = vunpack.i.l.bf16 %v7567_v46  ;;  %7316 = vmatpush3.bf16.msra.mxu1 %v7618_v36 }
0x327b   :  { %7317 = vmatprep.subr.bf16.mxu1 %v7906_v1 }
0x327c   :  { %7310 = vmatpush3.bf16.msra.mxu0 %v7617_v32  ;;  %v5109_v4 = vsel %vm2799_vm9, %v5107_v56, %v7568_v8  ;;  %v5110_v9 = vsel %vm2799_vm9, %v5108_v41, %v7569_v3  ;;  %v6561_v3 = vld [vmem:[%s9335_s1 + $0x1] ss:$0 sm:$0xff] }
0x327d   :  { %7323 = vmatprep.subr.bf16.mxu0 %v7906_v1  ;;  %v5111_v44 = vsel %vm557_vm3, %v5109_v4, %v7573_v2  ;;  %v5112_v25 = vsel %vm557_vm3, %v5110_v9, %v7574_v16  ;;  %v7622_v16 = vld [vmem:[%s9334_s28 + $0x30] sm:$0xff]   ;;  %v7623_v2 = vld [vmem:[%s9334_s28 + $0x38] sm:$0xff]  }
0x327e   :  { %7318 = vmatpush3.bf16.msra.mxu1 %v7619_v30 }
0x334a   :  { %v4991_v47 = vpop.f32.mrb[144].mxu0 }
0x334b   :  { %v7299_v11 = vpop.f32.mrb[145].mxu0 }
0x334c   :  { %v4994_v19 = vpop.f32.mrb[146].mxu0  ;;  %v5039_v18 = vpop.f32.mrb[156].mxu1 }
0x334d   :  { %v7575_v23 = vpack.i.bf16 %v5039_v18, %v4991_v47  ;;  %v7300_v24 = vpop.f32.mrb[147].mxu0  ;;  %v7305_v40 = vpop.f32.mrb[157].mxu1 }
0x334e   :  { %v5042_v26 = vpop.f32.mrb[158].mxu1 }
0x334f   :  { %v7306_v50 = vpop.f32.mrb[159].mxu1  ;;  %7576 = vrot.lane.b32.xlu1 %v7575_v23, %s7923_s0 }
0x33c1   :  { %v7577_v5 = vpop.permute.xlu1 %7576 }
0x33c2   :  { %v7579_v6 = vunpack.i.h.bf16 %v7577_v5  ;;  %v7578_v7 = vunpack.i.l.bf16 %v7577_v5  ;;  %v6568_v5 = vld [vmem:[%s9337_s9 + $0x1] ss:$0 sm:$0xff] }
0x33c4   :  { %v5114_v27 = vsel %vm2804_vm10, %v5112_v25, %v7579_v6  ;;  %v5113_v45 = vsel %vm2804_vm10, %v5111_v44, %v7578_v7 }
0x33c5   :  { %v5120_v48 = vpack.c.bf16 %v5114_v27, %v5113_v45 }
0x33c7   :  { %7312 = vmatmul.mubr.msk.bf16.vlgmr.msra.gmra.mrb[148].mxu0 %vm306_vm2, %v5120_v48 }
0x33c8   :  { %7331 = vmatprep.mubr.msk.bf16.mxu0 %vm7907_vm0, %v7906_v1  ;;  %7324 = vmatpush3.bf16.msra.mxu0 %v7620_v42  ;;  %v7924_v42 = vmov 0.0|0.0  }
0x33c9   :  { %7325 = vmatprep.subr.bf16.mxu0 %v7906_v1  ;;  %7414 = vmatprep.subr.bf16.mxu1 %v7924_v42 }
0x33cc   :  { %7326 = vmatpush3.bf16.msra.mxu0 %v7621_v20  ;;  %v7624_v20 = vld [vmem:[%s9341_s3] ss:$16 sps:$4 sm:$0xff]  }
0x33cd   :  { %7327 = vmatprep.subr.bf16.mxu0 %v7906_v1 }
0x33d0   :  { %7328 = vmatpush3.bf16.msra.mxu0 %v7622_v16 }
0x33d1   :  { %7329 = vmatprep.subr.bf16.mxu0 %v7906_v1 }
0x33d4   :  { %7330 = vmatpush3.bf16.msra.mxu0 %v7623_v2 }
0x349a   :  { %v5178_v35 = vpop.f32.mrb[148].mxu0 }
0x349b   :  { %v5179_v61 = vadd.f32 %v6555_v43, %v5178_v35  ;;  %v7313_v29 = vpop.f32.mrb[149].mxu0 }
0x349c   :  { %v5181_v32 = vpop.f32.mrb[150].mxu0 }
0x349d   :  { %v5185_v47 = vadd.f32 %v5179_v61, %v8737_v63  ;;  %v5182_v11 = vadd.f32 %v6555_v43, %v5181_v32  ;;  %v7314_v19 = vpop.f32.mrb[151].mxu0  ;;  %v6581_v61 = vld [vmem:[%s9338_s13 + $0x1] ss:$0 sm:$0xff] }
0x349f   :  { %v5186_v18 = vadd.f32 %v5182_v11, %v8739_v0  ;;  %v5191_v23 = vsel %vm306_vm2, %v5185_v47, 0.0 }
0x34a0   :  { %5192 = vadd.xlane.f32.xlu0 %v5191_v23 }
0x34a1   :  { %v5194_v24 = vsel %vm306_vm2, %v5186_v18, 0.0 }
0x34a2   :  { %5195 = vadd.xlane.f32.xlu1 %v5194_v24 }
0x352d   :  { %v5193_v40 = vpop.xlane.xlu0 %5192 }
0x352e   :  { %v5197_v26 = vmul.f32 0.03125, %v5193_v40 }
0x352f   :  { %v5196_v50 = vpop.xlane.xlu1 %5195 }
0x3530   :  { %v5199_v51 = vsub.f32 %v5185_v47, %v5197_v26  ;;  %v5198_v28 = vmul.f32 0.03125, %v5196_v50 }
0x3532   :  { %v5200_v63 = vsub.f32 %v5186_v18, %v5198_v28  ;;  %v5201_v58 = vmul.f32 %v5199_v51, %v5199_v51 }
0x3534   :  { %v5203_v39 = vsel %vm306_vm2, %v5201_v58, 0.0  ;;  %v5202_v0 = vmul.f32 %v5200_v63, %v5200_v63 }
0x3535   :  { %5204 = vadd.xlane.f32.xlu0 %v5203_v39 }
0x3536   :  { %v5206_v31 = vsel %vm306_vm2, %v5202_v0, 0.0 }
0x3539   :  { %5207 = vadd.xlane.f32.xlu0 %v5206_v31 }
0x35c2   :  { %v5205_v10 = vpop.xlane.xlu0 %5204 }
0x35c3   :  { %v5209_v22 = vmul.f32 0.03125, %v5205_v10  ;;  %v7626_v10 = vld [vmem:[%s9341_s3 + $0x4] ss:$16 sps:$4 sm:$0xff]  }
0x35c4   :  { %5727 = vmatprep.subr.bf16.mxu0 %v7626_v10 }
0x35c5   :  { %v5211_v38 = vadd.f32 1e-05, %v5209_v22  ;;  %v7630_v22 = vld [vmem:[%s9341_s3 + $0x20] ss:$16 sps:$4 sm:$0xff]  }
0x35c6   :  { %v5208_v46 = vpop.xlane.xlu0 %5207 }
0x35c7   :  { %7788 = vrsqrt.f32 %v5211_v38  ;;  %v5210_v52 = vmul.f32 0.03125, %v5208_v46  ;;  %v7632_v38 = vld [vmem:[%s9341_s3 + $0x24] ss:$16 sps:$4 sm:$0xff]  }
0x35c9   :  { %v5212_v54 = vadd.f32 1e-05, %v5210_v52 }
0x35cb   :  { %7790 = vrsqrt.f32 %v5212_v54 }
0x35d1   :  { %v7789_v55 = vpop.eup %7788 }
0x35d2   :  { %v5215_v60 = vmul.f32 %v7789_v55, %v5199_v51 }
0x35d4   :  { %v5223_v62 = vmul.f32 %v6561_v3, %v5215_v60 }
0x35d5   :  { %v7791_v8 = vpop.eup %7790 }
0x35d6   :  { %v5216_v21 = vmul.f32 %v7791_v8, %v5200_v63  ;;  %v5231_v41 = vadd.f32 %v6562_v14, %v5223_v62  ;;  %v6589_v62 = vld [vmem:[%s9339_s25 + $0x1] ss:$0 sm:$0xff] }
0x35d8   :  { %v5224_v56 = vmul.f32 %v6561_v3, %v5216_v21 }
0x35da   :  { %v5232_v4 = vadd.f32 %v6562_v14, %v5224_v56 }
0x35dc   :  { %v5238_v9 = vpack.c.bf16 %v5232_v4, %v5231_v41 }
0x35de   :  { %7320 = vmatmul.mubr.msk.bf16.vlgmr.msra.gmra.mrb[160].mxu1 %vm306_vm2, %v5238_v9 }
0x35df   :  { %7339 = vmatprep.mubr.msk.f32.mxu1 %vm7907_vm0, %v7906_v1 }
0x36b1   :  { %v5296_v6 = vpop.f32.mrb[160].mxu1 }
0x36b2   :  { %v5297_v7 = vadd.f32 %v6568_v5, %v5296_v6  ;;  %v7321_v44 = vpop.f32.mrb[161].mxu1  ;;  %v5439_v6 = vld [vmem:[%s9342_s8] sm:$0x3] }
0x36b3   :  { %v5299_v25 = vpop.f32.mrb[162].mxu1  ;;  %v7627_v44 = vld [vmem:[%s9341_s3 + $0x8] ss:$16 sps:$4 sm:$0xff]  }
0x36b4   :  { %v5300_v27 = vadd.f32 %v6568_v5, %v5299_v25  ;;  %v7322_v45 = vpop.f32.mrb[163].mxu1  ;;  %v5303_v48 = vmax.f32 %v5297_v7, 0.0  ;;  %v7629_v7 = vld [vmem:[%s9341_s3 + $0xc] ss:$16 sps:$4 sm:$0xff]  }
0x36b5   :  { %v7635_v25 = vld [vmem:[%s9341_s3 + $0x2c] ss:$16 sps:$4 sm:$0xff]   ;;  %v7636_v45 = vld [vmem:[%s9343_s14] sm:$0xff]  }
0x36b6   :  { %v5304_v43 = vmax.f32 %v5300_v27, 0.0 }
0x36b8   :  { %v5314_v35 = vpack.c.bf16 %v5304_v43, %v5303_v48  ;;  %v7637_v48 = vld [vmem:[%s9343_s14 + $0x8] sm:$0xff]  }
0x36ba   :  { %7332 = vmatmul.mubr.msk.bf16.vlgmr.msra.gmra.mrb[152].mxu0 %vm3031_vm11, %v5314_v35  ;;  %v9208_v35 = vld [vmem:[%s9344_s19] sm:$0xf] }
0x36bb   :  { %5759 = vmatprep.mubr.bf16.mxu0 %v7909_v49  ;;  %5728 = vmatpush1.bf16.msra.mxu0 %v7624_v20 }
0x36bc   :  { %5729 = vmatprep.subr.bf16.mxu0 %v7632_v38 }
0x36bf   :  { %5730 = vmatpush1.bf16.msra.mxu0 %v7630_v22 }
0x36c0   :  { %7356 = vmatprep.subr.bf16.mxu0 %v7906_v1 }
0x378d   :  { %v5384_v29 = vpop.f32.mrb[152].mxu0 }
0x378e   :  { %v5385_v32 = vadd.f32 %v6581_v61, %v5384_v29  ;;  %v7333_v47 = vpop.f32.mrb[153].mxu0  ;;  %v5667_v29 = vrot.slane %v9208_v35, %v8322_v17 }
0x378f   :  { %v5387_v11 = vpop.f32.mrb[154].mxu0 }
0x3790   :  { %v5391_v19 = vadd.f32 %v5385_v32, %v5231_v41  ;;  %v5388_v18 = vadd.f32 %v6581_v61, %v5387_v11  ;;  %v7334_v23 = vpop.f32.mrb[155].mxu0  ;;  %v5678_v61 = vsub.s32 3, %v8311_v12 }
0x3792   :  { %v5392_v24 = vadd.f32 %v5388_v18, %v5232_v4  ;;  %v5397_v40 = vsel %vm306_vm2, %v5391_v19, 0.0  ;;  %v6590_v4 = vld [vmem:[%s9340_s29 + $0x1] ss:$0 sm:$0xff]  ;;  %v5679_v32 = vrot.slane %v9208_v35, %v5678_v61 }
0x3793   :  { %5398 = vadd.xlane.f32.xlu1 %v5397_v40 }
0x3794   :  { %v5400_v26 = vsel %vm306_vm2, %v5392_v24, 0.0 }
0x3795   :  { %5401 = vadd.xlane.f32.xlu0 %v5400_v26 }
0x3820   :  { %v5399_v50 = vpop.xlane.xlu1 %5398 }
0x3821   :  { %v5403_v51 = vmul.f32 0.03125, %v5399_v50 }
0x3822   :  { %v5402_v28 = vpop.xlane.xlu0 %5401 }
0x3823   :  { %v5405_v63 = vsub.f32 %v5391_v19, %v5403_v51  ;;  %v5404_v58 = vmul.f32 0.03125, %v5402_v28 }
0x3825   :  { %v5406_v39 = vsub.f32 %v5392_v24, %v5404_v58  ;;  %v5407_v0 = vmul.f32 %v5405_v63, %v5405_v63  ;;  %v7639_v58 = vld [vmem:[%s9345_s24 + $0x8] sm:$0xff]  }
0x3827   :  { %v5409_v31 = vsel %vm306_vm2, %v5407_v0, 0.0  ;;  %v5408_v36 = vmul.f32 %v5406_v39, %v5406_v39 }
0x3828   :  { %5410 = vadd.xlane.f32.xlu1 %v5409_v31 }
0x3829   :  { %v5412_v30 = vsel %vm306_vm2, %v5408_v36, 0.0  ;;  %v5671_v36 = vrot.slane %v9208_v35, %v8314_v13 }
0x382a   :  { %5413 = vadd.xlane.f32.xlu0 %v5412_v30 }
0x38b5   :  { %v5411_v46 = vpop.xlane.xlu1 %5410 }
0x38b6   :  { %v5415_v52 = vmul.f32 0.03125, %v5411_v46 }
0x38b7   :  { %v5414_v54 = vpop.xlane.xlu0 %5413 }
0x38b8   :  { %v5417_v55 = vadd.f32 1e-05, %v5415_v52  ;;  %v5416_v60 = vmul.f32 0.03125, %v5414_v54  ;;  %v7640_v52 = vld [vmem:[%s9347_s6] sm:$0xff]  }
0x38ba   :  { %7792 = vrsqrt.f32 %v5417_v55  ;;  %v5418_v3 = vadd.f32 1e-05, %v5416_v60 }
0x38bc   :  { %7794 = vrsqrt.f32 %v5418_v3  ;;  %v6140_v3 = vld [vmem:[%s9348_s12] sm:$0xff] }
0x38c4   :  { %v7793_v8 = vpop.eup %7792 }
0x38c5   :  { %v5421_v21 = vmul.f32 %v7793_v8, %v5405_v63  ;;  %v7638_v63 = vld [vmem:[%s9345_s24] sm:$0xff]   ;;  %v6141_v8 = vld [vmem:[%s9348_s12 + $0x8] sm:$0xff] }
0x38c6   :  { %v7795_v14 = vpop.eup %7794 }
0x38c7   :  { %v5422_v56 = vmul.f32 %v7795_v14, %v5406_v39  ;;  %v5429_v41 = vmul.f32 %v6589_v62, %v5421_v21  ;;  %v6604_v39 = vld [vmem:[%s9346_s30] ss:$0 sm:$0xff]  ;;  %v6142_v14 = vld [vmem:[%s9348_s12 + $0x10] sm:$0xff] }
0x38c9   :  { %v5430_v9 = vmul.f32 %v6589_v62, %v5422_v56  ;;  %v5437_v16 = vadd.f32 %v6590_v4, %v5429_v41  ;;  %v7424_v62 = vpack.c.bf16 %v6141_v8, %v6140_v3  ;;  %v6143_v56 = vld [vmem:[%s9348_s12 + $0x18] sm:$0xff] }
0x38ca   :  { %v7427_v41 = vpack.c.bf16 %v6143_v56, %v6142_v14  ;;  %v6612_v56 = vld [vmem:[#allocation3] ss:$0 sm:$0xff] }
0x38cb   :  { %v5438_v2 = vadd.f32 %v6590_v4, %v5430_v9  ;;  %v7641_v9 = vld [vmem:[%s9349_s20] sm:$0xff]  }
0x38cd   :  { %v7415_v5 = vpack.c.bf16 %v5438_v2, %v5437_v16  ;;  %v7642_v16 = vld [vmem:[%s9349_s20 + $0x8] sm:$0xff]   ;;  %v6608_v2 = vld [vmem:[%s9350_s4] ss:$0 sm:$0xff] }
0x38cf   :  { %7416 = vmatpush3.bf16.msra.mxu1 %v7415_v5 }
0x38d0   :  { %7417 = vmatprep.subr.bf16.mxu1 %v7924_v42 }
0x38d2   :  { %7340 = vmatmul.mubr.msk.f32.vlgmr.msra.gmra.mrb[164].mxu1 %vm235_vm1, %v5439_v6 }
0x38d3   :  { %7419 = vmatpush3.bf16.msra.mxu1 %v7418_v59  ;;  %7346 = vmatprep.mubr.msk.f32.mxu1 %vm7907_vm0, %v7906_v1 }
0x38d4   :  { %7420 = vmatprep.subr.bf16.mxu1 %v7924_v42 }
0x38d6   :  { %7347 = vmatmul.mubr.msk.f32.vlgmr.msra.gmra.mrb[166].mxu1 %vm235_vm1, %v5439_v6 }
0x38d7   :  { %7422 = vmatpush3.bf16.msra.mxu1 %v7421_v37  ;;  %7353 = vmatprep.mubr.msk.f32.mxu1 %vm7907_vm0, %v7906_v1 }
0x38d8   :  { %5768 = vmatprep.subr.bf16.mxu1 %v7629_v7 }
0x38da   :  { %7354 = vmatmul.mubr.msk.f32.vlgmr.msra.gmra.mrb[168].mxu1 %vm235_vm1, %v5439_v6 }
0x38db   :  { %5769 = vmatpush1.bf16.msra.mxu1 %v7627_v44  ;;  %5800 = vmatprep.mubr.bf16.mxu1 %v7909_v49 }
0x38dc   :  { %5770 = vmatprep.subr.bf16.mxu1 %v7635_v25  ;;  %v5675_v25 = vrot.slane %v9208_v35, %v8318_v15 }
0x38df   :  { %5771 = vmatpush1.bf16.msra.mxu1 %v7633_v53 }
0x38e0   :  { %7364 = vmatprep.subr.bf16.mxu1 %v7906_v1 }
0x39a5   :  { %v9190_v57 = vpop.f32.mrb[164].mxu1 }
0x39a6   :  { %v5661_v59 = vpack.c.bf16 %v9190_v57, %v9190_v57  ;;  %v7341_v33 = vpop.f32.mrb[165].mxu1 }
0x39a8   :  { %6602 = vmatmul.mubr.msk.bf16.vlgmr.msra.gmra.mrb[156].mxu0 %vm306_vm2, %v5661_v59  ;;  %6603 = vmatmul.mubr.msk.bf16.vlgmr.msra.gmra.mrb[172].mxu1 %vm306_vm2, %v5661_v59 }
0x39a9   :  { %v5579_v34 = vpop.f32.mrb[166].mxu1  ;;  %7360 = vmatprep.mubr.msk.bf16.mxu0 %vm7907_vm0, %v7906_v1  ;;  %7368 = vmatprep.mubr.msk.bf16.mxu1 %vm7907_vm0, %v7906_v1 }
0x39aa   :  { %v7348_v37 = vpop.f32.mrb[167].mxu1  ;;  %7357 = vmatpush3.bf16.msra.mxu0 %v7636_v45  ;;  %v6145_v43 = vsel %vm6144_vm4, %v5579_v34, -inf  ;;  %7365 = vmatpush3.bf16.msra.mxu1 %v7638_v63  ;;  %v7643_v45 = vld [vmem:[%s8156_s17] sm:$0xff]   ;;  %s7925_s17 = smov 91  }
0x39ab   :  { %7358 = vmatprep.subr.bf16.mxu0 %v7906_v1  ;;  %6146 = vmax.xlane.f32.xlu1 %v6145_v43 }
0x39ac   :  { %7366 = vmatprep.subr.bf16.mxu1 %v7906_v1 }
0x39ad   :  { %v9200_v49 = vpop.f32.mrb[168].mxu1 }
0x39ae   :  { %v7355_v27 = vpop.f32.mrb[169].mxu1  ;;  %7359 = vmatpush3.bf16.msra.mxu0 %v7637_v48  ;;  %7367 = vmatpush3.bf16.msra.mxu1 %v7639_v58 }
0x39af   :  { %7372 = vmatprep.subr.bf16.mxu0 %v7906_v1  ;;  %7380 = vmatprep.subr.bf16.mxu1 %v7906_v1  ;;  %v6616_v27 = vld [vmem:[#allocation5] ss:$0 sm:$0xff] }
0x3a38   :  { %v6147_v0 = vpop.xlane.xlu1 %6146 }
0x3a39   :  { %v9230_v22 = vsub.f32 %v5579_v34, %v6147_v0 }
0x3a3b   :  { %v6149_v60 = vmul.f32 1.442695, %v9230_v22 }
0x3a3d   :  { %7796 = vpow2.f32 %v6149_v60 }
0x3a47   :  { %v7797_v4 = vpop.eup %7796 }
0x3a7b   :  { %v5761_v47 = vpop.f32.mrb[156].mxu0  ;;  %v9214_v11 = vpop.f32.mrb[172].mxu1 }
0x3a7c   :  { %v5762_v19 = vadd.f32 %v5761_v47, %v5667_v29  ;;  %v5804_v18 = vpop.f32.mrb[173].mxu1  ;;  %v5763_v23 = vpop.f32.mrb[157].mxu0  ;;  %v5803_v48 = vadd.f32 %v9214_v11, %v5675_v25 }
0x3a7d   :  { %v9216_v24 = vadd.f32 %v5804_v18, %v5679_v32  ;;  %v5765_v40 = vpop.f32.mrb[158].mxu0  ;;  %v5806_v26 = vpop.f32.mrb[174].mxu1  ;;  %v5764_v54 = vadd.f32 %v5763_v23, %v5671_v36 }
0x3a7e   :  { %v5809_v50 = vmax.f32 %v5762_v19, 0.0  ;;  %v5807_v12 = vpop.f32.mrb[175].mxu1  ;;  %v5766_v51 = vpop.f32.mrb[159].mxu0  ;;  %v5811_v15 = vmax.f32 %v5803_v48, 0.0 }
0x3a7f   :  { %v6227_v17 = vsel %vm6144_vm4, %v9216_v24, -inf  ;;  %v5810_v13 = vmax.f32 %v5764_v54, 0.0 }
0x3a80   :  { %v5816_v28 = vpack.c.bf16 %v5809_v50, %v5809_v50  ;;  %6228 = vmax.xlane.f32.xlu0 %v6227_v17  ;;  %v6077_v11 = vpack.c.bf16 %v5811_v15, %v5811_v15 }
0x3a81   :  { %v6018_v21 = vpack.c.bf16 %v5810_v13, %v5810_v13 }
0x3a82   :  { %7361 = vmatmul.mubr.msk.bf16.vlgmr.msra.gmra.mrb[160].mxu0 %vm306_vm2, %v5816_v28 }
0x3a83   :  { %7376 = vmatprep.mubr.msk.bf16.mxu0 %vm7907_vm0, %v7906_v1  ;;  %7373 = vmatpush3.bf16.msra.mxu0 %v7641_v9 }
0x3a84   :  { %7374 = vmatprep.subr.bf16.mxu0 %v7906_v1 }
0x3a87   :  { %7375 = vmatpush3.bf16.msra.mxu0 %v7642_v16 }
0x3a88   :  { %7386 = vmatprep.subr.bf16.mxu0 %v7906_v1 }
0x3b0d   :  { %v6229_v53 = vpop.xlane.xlu0 %6228 }
0x3b0e   :  { %v6230_v37 = vsub.f32 %v9216_v24, %v6229_v53 }
0x3b10   :  { %v6231_v47 = vmul.f32 1.442695, %v6230_v37 }
0x3b12   :  { %7798 = vpow2.f32 %v6231_v47 }
0x3b1c   :  { %v7799_v24 = vpop.eup %7798 }
0x3b55   :  { %v5873_v31 = vpop.f32.mrb[160].mxu0 }
0x3b56   :  { %v5874_v30 = vadd.f32 %v6604_v39, %v5873_v31  ;;  %v7362_v20 = vpop.f32.mrb[161].mxu0 }
0x3b57   :  { %v5876_v10 = vpop.f32.mrb[162].mxu0 }
0x3b58   :  { %v5879_v38 = vmax.f32 %v5874_v30, 0.0  ;;  %v7363_v46 = vpop.f32.mrb[163].mxu0 }
0x3b5a   :  { %v5884_v55 = vpack.c.bf16 %v5879_v38, %v5879_v38 }
0x3b5c   :  { %7369 = vmatmul.mubr.msk.bf16.vlgmr.msra.gmra.mrb[176].mxu1 %vm306_vm2, %v5884_v55 }
0x3b5d   :  { %7381 = vmatpush3.bf16.msra.mxu1 %v7640_v52  ;;  %7382 = vmatprep.mubr.msk.bf16.mxu1 %vm7907_vm0, %v7906_v1 }
0x3b5e   :  { %7423 = vmatprep.subr.bf16.mxu1 %v7924_v42 }
0x3b64   :  { %7383 = vmatmul.mubr.msk.bf16.vlgmr.msra.gmra.mrb[180].mxu1 %vm235_vm1, %v6018_v21 }
0x3b65   :  { %7425 = vmatpush3.bf16.msra.mxu1 %v7424_v62  ;;  %7400 = vmatprep.mubr.msk.f32.mxu1 %vm7907_vm0, %v7906_v1 }
0x3b66   :  { %7426 = vmatprep.subr.bf16.mxu1 %v7924_v42 }
0x3b69   :  { %7428 = vmatpush3.bf16.msra.mxu1 %v7427_v41 }
0x3b6c   :  { %7401 = vmatmul.mubr.msk.f32.vlgmr.msra.gmra.mrb[170].mxu1 %vm306_vm2, %v7797_v4 }
0x3c2f   :  { %v5941_v5 = vpop.f32.mrb[176].mxu1 }
0x3c30   :  { %v5942_v6 = vadd.f32 %v6608_v2, %v5941_v5  ;;  %v7370_v7 = vpop.f32.mrb[177].mxu1 }
0x3c31   :  { %v5944_v44 = vpop.f32.mrb[178].mxu1 }
0x3c32   :  { %v5947_v59 = vadd.f32 %v5942_v6, %v5809_v50  ;;  %v7371_v33 = vpop.f32.mrb[179].mxu1 }
0x3c34   :  { %v5948_v34 = vmax.f32 %v5947_v59, 0.0 }
0x3c36   :  { %v5953_v43 = vpack.c.bf16 %v5948_v34, %v5948_v34 }
0x3c37   :  { %v6069_v61 = vpop.f32.mrb[180].mxu1 }
0x3c38   :  { %v6070_v29 = vadd.f32 %v6616_v27, %v6069_v61  ;;  %7377 = vmatmul.mubr.msk.bf16.vlgmr.msra.gmra.mrb[164].mxu0 %vm306_vm2, %v5953_v43  ;;  %v7384_v32 = vpop.f32.mrb[181].mxu1 }
0x3c39   :  { %v6072_v19 = vpop.f32.mrb[182].mxu1  ;;  %7387 = vmatpush3.bf16.msra.mxu0 %v7643_v45  ;;  %7388 = vmatprep.mubr.msk.bf16.mxu0 %vm7907_vm0, %v7906_v1 }
0x3c3a   :  { %6328 = vrot.lane.b32.xlu0 %v6070_v29, %s7919_s15  ;;  %v7385_v35 = vpop.f32.mrb[183].mxu1  ;;  %7429 = vmatprep.subr.bf16.mxu0 %v7924_v42 }
0x3c3e   :  { %6340 = vrot.lane.b32.xlu0 %v9200_v49, %s7925_s17 }
0x3c3f   :  { %v6220_v18 = vpop.f32.mrb[170].mxu1 }
0x3c40   :  { %7389 = vmatmul.mubr.msk.bf16.vlgmr.msra.gmra.mrb[168].mxu0 %vm235_vm1, %v6077_v11  ;;  %v7402_v23 = vpop.f32.mrb[171].mxu1  ;;  %7800 = vlog2.f32 %v6220_v18 }
0x3c41   :  { %7431 = vmatpush3.bf16.msra.mxu0 %v7424_v62  ;;  %7411 = vmatprep.mubr.msk.f32.mxu0 %vm7907_vm0, %v7906_v1  ;;  %v6619_v1 = vld [vmem:[#allocation2] ss:$0 sm:$0xff]  ;;  %vm6316_vm0 = vcmask 1041408  }
0x3c42   :  { %7432 = vmatprep.subr.bf16.mxu0 %v7924_v42 }
0x3c45   :  { %7434 = vmatpush3.bf16.msra.mxu0 %v7427_v41 }
0x3c48   :  { %7412 = vmatmul.mubr.msk.f32.vlgmr.msra.gmra.mrb[172].mxu0 %vm306_vm2, %v7799_v24  ;;  %vm6344_vm2 = vcmask 465920  }
0x3c4a   :  { %v7801_v49 = vpop.eup %7800 }
0x3c4b   :  { %v6225_v63 = vmul.f32 0.6931472, %v7801_v49 }
0x3c4d   :  { %v6226_v39 = vsub.f32 %v9230_v22, %v6225_v63 }
0x3c4f   :  { %v6309_v36 = vmul.f32 1.442695, %v6226_v39 }
0x3cac   :  { %v6329_v2 = vpop.permute.xlu0 %6328 }
0x3cb0   :  { %v6341_v53 = vpop.permute.xlu0 %6340 }
0x3d0b   :  { %v6010_v40 = vpop.f32.mrb[164].mxu0 }
0x3d0c   :  { %v7378_v26 = vpop.f32.mrb[165].mxu0  ;;  %v6011_v4 = vadd.f32 %v6612_v56, %v6010_v40 }
0x3d0d   :  { %v6013_v50 = vpop.f32.mrb[166].mxu0 }
0x3d0e   :  { %v7379_v12 = vpop.f32.mrb[167].mxu0  ;;  %v6343_v7 = vsel %vm235_vm1, %v6011_v4, %v6329_v2 }
0x3d13   :  { %v6128_v51 = vpop.f32.mrb[168].mxu0 }
0x3d14   :  { %v7390_v17 = vpop.f32.mrb[169].mxu0  ;;  %v6129_v31 = vadd.f32 %v6619_v1, %v6128_v51 }
0x3d15   :  { %v6131_v28 = vpop.f32.mrb[170].mxu0 }
0x3d16   :  { %v7391_v58 = vpop.f32.mrb[171].mxu0  ;;  %v6622_v30 = vmul.f32 -1.442695, %v6129_v31 }
0x3d1b   :  { %v6302_v0 = vpop.f32.mrb[172].mxu0 }
0x3d1c   :  { %7802 = vlog2.f32 %v6302_v0  ;;  %v7413_v42 = vpop.f32.mrb[173].mxu0 }
0x3d1d   :  { %7804 = vpow2.f32 %v6309_v36 }
0x3d1e   :  { %7806 = vpow2.f32 %v6622_v30 }
0x3d26   :  { %v7803_v20 = vpop.eup %7802 }
0x3d27   :  { %v6307_v10 = vmul.f32 0.6931472, %v7803_v20  ;;  %v7805_v52 = vpop.eup %7804 }
0x3d28   :  { %v7807_v55 = vpop.eup %7806 }
0x3d29   :  { %v6308_v38 = vsub.f32 %v6230_v37, %v6307_v10  ;;  %v6137_v22 = vadd.f32 1.0, %v7807_v55 }
0x3d2b   :  { %v6311_v46 = vsub.f32 %v6226_v39, %v6308_v38  ;;  %7808 = vrcp.f32 %v6137_v22 }
0x3d2d   :  { %v6312_v54 = vmul.f32 %v7805_v52, %v6311_v46 }
0x3d2f   :  { %v6313_v60 = vsel %vm6144_vm4, %v6312_v54, 0.0 }
0x3d30   :  { %6314 = vadd.xlane.f32.xlu1 %v6313_v60 }
0x3d35   :  { %v7809_v13 = vpop.eup %7808 }
0x3d41   :  { %6332 = vrot.lane.b32.xlu1 %v7809_v13, %s7926_s2 }
0x3d45   :  { %6336 = vrot.lane.b32.xlu1 %v9190_v57, %s7927_s10 }
0x3dbd   :  { %v6315_v3 = vpop.xlane.xlu1 %6314 }
0x3dbe   :  { %v6317_v8 = vsel %vm6316_vm0, %v6315_v3, 0.0 }
0x3dbf   :  { %v6318_v62 = vrot.slane %v6317_v8, 4 }
0x3dc1   :  { %v6319_v21 = vadd.f32 %v6318_v62, %v6317_v8  ;;  %v6333_v16 = vpop.permute.xlu1 %6332 }
0x3dc2   :  { %v6345_v57 = vsel %vm6344_vm2, %v6343_v7, %v6333_v16 }
0x3dc3   :  { %v6320_v14 = vrot.slane %v6319_v21, 2 }
0x3dc5   :  { %v6321_v41 = vadd.f32 %v6320_v14, %v6319_v21  ;;  %v6337_v25 = vpop.permute.xlu1 %6336 }
0x3dc7   :  { %v6322_v9 = vrot.slane %v6321_v41, 1 }
0x3dc9   :  { %v6323_v5 = vadd.f32 %v6322_v9, %v6321_v41 }
0x3dcb   :  { %v6325_v6 = vmul.f32 0.125, %v6323_v5 }
0x3dcd   :  { %v6347_v44 = vsel %vm6346_vm7, %v6345_v57, %v6325_v6 }
0x3dce   :  { %v6349_v59 = vsel %vm6348_vm12, %v6347_v44, %v6337_v25 }
0x3dcf   :  { %v6351_v33 = vsel %vm6350_vm13, %v6349_v59, %v6341_v53 }
0x3dd0   :  { %v6353_v34 = vsel %vm6352_vm14, %v6351_v33, 0.0 }
0x3dd1   :  { %6354 = vst [vmem:[%s8164_s27] sm:$0x3] %v6353_v34 }
0x3dd2   :  { %6359 = vsyncpa [#allocation4], 1 }
0x3dd3   :  { %6360 = vsyncpa [#allocation6], 1 }

</bundles_post_ra>
